<compile_context>
chip_gen: v5e
topology: v5e:2x2
jax: 0.10.0
libtpu: 0.0.40
codegen_flags: <defaults>
</compile_context>

<pallas_src>
import functools

import jax
import jax.numpy as jnp
from jax import lax
from jax.experimental import pallas as pl
from jax.experimental.pallas import tpu as pltpu

N_CONTEXT = 14
N_QUERY = 1
TOTAL_SAMPLES = N_CONTEXT + N_QUERY  # N = 15


def _round_up(x, m):
    return (x + m - 1) // m * m


ROWS_PAD = _round_up(N_CONTEXT, 8)   # 14 context rows padded to 16 (sublane tiles)


def build_mask():
    m = jnp.zeros((TOTAL_SAMPLES, TOTAL_SAMPLES), dtype=jnp.float32)
    m = m.at[:N_CONTEXT, :N_CONTEXT].set(jnp.eye(N_CONTEXT, dtype=jnp.float32))
    m = m.at[N_CONTEXT:, :N_CONTEXT].set(1.0)
    return m


def _check_mask(mask):
    """Kernel hard-codes the module's fixed mask (eye on context rows + dense
    query row) and assumes h_tilde(q,k)=<q,k>; verify the mask when concrete."""
    if mask is None:
        return
    expected = build_mask()
    if tuple(mask.shape) != tuple(expected.shape):
        raise ValueError("mask shape %s does not match the module's fixed "
                         "(%d, %d) mask" % (mask.shape, TOTAL_SAMPLES, TOTAL_SAMPLES))
    try:
        ok = bool(jnp.all(mask == expected))
    except jax.errors.ConcretizationTypeError:
        return  # traced mask: cannot verify structure at trace time
    if not ok:
        raise ValueError("kernel only supports the module's fixed mask "
                         "(eye on context rows, dense query row)")


def _transformer_kernel(zc_ref, zq_ref, a_ref, wv_ref, out_ref, *,
                        num_layers, num_heads, d_model_cov):
    """Batch-vectorized forward for one batch tile, strip-mined over lane chunks.

    zc_ref:  (d+1, n_chunks, ROWS_PAD, CHUNK) VMEM  context rows (padded), batch on lanes
    zq_ref:  (d+1, n_chunks, 1, CHUNK)        VMEM  query row, batch on lanes
    a_ref:   (L*H*d*d,)                       SMEM  folded A[l,h] = Wq^T Wk, flattened
    wv_ref:  (L*H*(d+1)^2,)                   SMEM  Wv[l,h] (PyTorch (out,in)), flattened
    out_ref: (n_chunks, 1, CHUNK)             VMEM  prediction Z_L[query, d] per sample
    """
    d = d_model_cov
    dp1 = d + 1
    n_chunks = zc_ref.shape[1]

    def chunk_body(ci, carry):
        # Load one 128-lane batch strip: per-channel context slab + query row.
        Zc = [zc_ref[c, ci] for c in range(dp1)]      # (ROWS_PAD, CHUNK) each
        Zq = [zq_ref[c, ci] for c in range(dp1)]      # (1, CHUNK) each

        for l in range(num_layers):                   # layers sequential: static unroll
            last = l == num_layers - 1
            X = Zc[:d]                                # covariate channels, context rows
            xq = Zq[:d]                               # covariate channels, query row

            # ---- context-row (diagonal) scores: S[i,i] = x_i^T A_h x_i ----
            # Symmetrized quadratic form with the pairwise-product basis shared
            # across heads.  Skipped on the last layer: context rows never
            # reach the emitted prediction.
            s_diag = [None] * num_heads
            if not last:
                prod = {}
                for a in range(d):
                    for b in range(a, d):
                        prod[(a, b)] = X[a] * X[b]
                for h in range(num_heads):
                    base = (l * num_heads + h) * d * d
                    s = None
                    for a in range(d):
                        for b in range(a, d):
                            coef = a_ref[base + a * d + b]
                            if a != b:                 # scalar (SMEM) add, free
                                coef = coef + a_ref[base + b * d + a]
                            t = coef * prod[(a, b)]
                            s = t if s is None else s + t
                    s_diag[h] = s

            acc_c = [None] * dp1   # context-row head sum (unused on last layer)
            acc_q = [None] * dp1   # query-row head sum (only channel d on last layer)

            for h in range(num_heads):                # heads summed: static unroll
                a_base = (l * num_heads + h) * d * d
                wv_base = (l * num_heads + h) * dp1 * dp1

                def A(i, j, _b=a_base):
                    return a_ref[_b + i * d + j]

                def WV(o, c, _b=wv_base):
                    return wv_ref[_b + o * dp1 + c]

                # Query-row scores over context columns: S[q,j] = x_q^T A x_j.
                # w[a] = (x_q^T A)[a] is a cheap (1, CHUNK) vector.
                w = []
                for a in range(d):
                    t = A(0, a) * xq[0]
                    for b in range(1, d):
                        t = t + A(b, a) * xq[b]
                    w.append(t)
                s_q = w[0] * X[0]
                for a in range(1, d):
                    s_q = s_q + w[a] * X[a]            # (ROWS_PAD, CHUNK); 0 on pad rows

                # T_q[c] = sum_j S[q,j] * Z[j,c]  (cross-sublane reduce -> XLU slot)
                Tq = [jnp.sum(s_q * Zc[c], axis=0, keepdims=True) for c in range(dp1)]

                # Query-row update U[q,o] = sum_c Wv[o,c] * T_q[c].
                for o in ((d,) if last else range(dp1)):
                    u = WV(o, 0) * Tq[0]
                    for c in range(1, dp1):
                        u = u + WV(o, c) * Tq[c]
                    acc_q[o] = u if acc_q[o] is None else acc_q[o] + u

                # Context-row update with Wv fused into the score scaling:
                #   U[i,o] = S[i,i] * sum_c Wv[o,c] * Z[i,c]
                if not last:
                    for o in range(dp1):
                        v = WV(o, 0) * Zc[0]
                        for c in range(1, dp1):
                            v = v + WV(o, c) * Zc[c]
                        u = s_diag[h] * v
                        acc_c[o] = u if acc_c[o] is None else acc_c[o] + u

            if last:
                # Emit only what the module returns: Z_L[query, d] per sample.
                out_ref[ci] = Zq[d] + acc_q[d]
            else:
                # Residual connection.
                Zc = [Zc[c] + acc_c[c] for c in range(dp1)]
                Zq = [Zq[c] + acc_q[c] for c in range(dp1)]
        return carry

    lax.fori_loop(0, n_chunks, chunk_body, 0)


def transformer_forward(X, Y, mask, Wq, Wk, Wv, *, batch_tile=4096, lane_chunk=128):
    """X: (B, N, d), Y: (B, N, 1). Returns the prediction of shape (B,).

    `mask` is accepted for interface parity with the PyTorch module; the kernel
    exploits the module's fixed mask structure (verified when concrete).
    """
    B, N, d = X.shape
    L, H = Wq.shape[0], Wq.shape[1]
    dp1 = d + 1
    if N != TOTAL_SAMPLES or N_QUERY != 1:
        raise ValueError("kernel supports the module's fixed N_CONTEXT=14 / N_QUERY=1 layout")
    if L < 1 or H < 1:
        raise ValueError("need at least one layer and one head")
    _check_mask(mask)

    # ---- tiling: batch on lanes, big grid tiles strip-mined in lane chunks --
    chunk = max(128, _round_up(int(lane_chunk), 128))       # lane strip width
    B_eff = _round_up(max(B, 1), chunk)                     # batch at chunk granularity
    tb_cap = min(max(chunk, _round_up(int(batch_tile), chunk)), B_eff)
    num_blocks = -(-B_eff // tb_cap)                        # ceil div
    if num_blocks == 1 and B_eff >= 2 * chunk:
        num_blocks = 2      # v7x: give both TensorCores a block (harmless elsewhere)
    TB = _round_up(-(-B_eff // num_blocks), chunk)          # per-grid-step batch tile
    n_chunks = TB // chunk
    B_pad = TB * num_blocks
    total_chunks = B_pad // chunk

    # ---- parameter folding: A[l,h] = Wq^T Wk, flattened into SMEM scalars ---
    A = jnp.einsum('lhka,lhkb->lhab', Wq.astype(jnp.float32), Wk.astype(jnp.float32))
    a_flat = A.reshape(-1)
    wv_flat = Wv.astype(jnp.float32).reshape(-1)

    # ---- input plumbing: (B,N,d)+(B,N,1) -> chunked batch-on-lanes layout ---
    # (a producer emitting this layout directly would remove this HBM pass)
    Z = jnp.concatenate([X.astype(jnp.float32), Y.astype(jnp.float32)], axis=-1)
    Z = jnp.pad(Z, ((0, B_pad - B), (0, 0), (0, 0)))        # (B_pad, N, d+1)
    Zc = jnp.pad(Z[:, :N_CONTEXT, :],
                 ((0, 0), (0, ROWS_PAD - N_CONTEXT), (0, 0)))       # (B_pad, 16, d+1)
    Zc = Zc.reshape(total_chunks, chunk, ROWS_PAD, dp1).transpose(3, 0, 2, 1)
    Zq = Z[:, N_CONTEXT, :].reshape(total_chunks, chunk, dp1).transpose(2, 0, 1)
    Zq = Zq[:, :, None, :]                                  # (d+1, total_chunks, 1, chunk)

    kernel = functools.partial(_transformer_kernel, num_layers=L, num_heads=H,
                               d_model_cov=d)

    blk_bytes = 4 * n_chunks * chunk * (dp1 * ROWS_PAD + dp1 + 1)
    pred = pl.pallas_call(
        kernel,
        out_shape=jax.ShapeDtypeStruct((total_chunks, 1, chunk), jnp.float32),
        grid=(num_blocks,),
        in_specs=[
            pl.BlockSpec((dp1, n_chunks, ROWS_PAD, chunk), lambda b: (0, b, 0, 0)),
            pl.BlockSpec((dp1, n_chunks, 1, chunk), lambda b: (0, b, 0, 0)),
            pl.BlockSpec(memory_space=pltpu.MemorySpace.SMEM),   # folded A scalars
            pl.BlockSpec(memory_space=pltpu.MemorySpace.SMEM),   # Wv scalars
        ],
        out_specs=pl.BlockSpec((n_chunks, 1, chunk), lambda b: (b, 0, 0)),
        compiler_params=pltpu.CompilerParams(
            dimension_semantics=("parallel",),
            # Explicit scoped-VMEM budget (v5e default is 16 MiB): double-buffered
            # input/output blocks plus headroom; tiny for this kernel.
            vmem_limit_bytes=int(min(64 << 20, max(16 << 20, 4 * blk_bytes))),
        ),
    )(Zc, Zq, a_flat, wv_flat)

    return pred.reshape(-1)[:B]                             # (B,)


def reference_forward(X, Y, mask, Wq, Wk, Wv):
    """Pure-JAX reference mirroring the PyTorch forward exactly."""
    d = X.shape[-1]
    L, H = Wq.shape[0], Wq.shape[1]
    Z = jnp.concatenate([X, Y], axis=-1)
    for l in range(L):
        Xl = Z[:, :, :d]
        acc = jnp.zeros_like(Z)
        for h in range(H):
            Q = jnp.einsum('bnd,kd->bnk', Xl, Wq[l, h])
            K = jnp.einsum('bnd,kd->bnk', Xl, Wk[l, h])
            S = jnp.einsum('bik,bjk->bij', Q, K)             # h_tilde = dot product
            T = jnp.einsum('bij,bjc->bic', S * mask[None], Z)
            U = jnp.einsum('bic,oc->bio', T, Wv[l, h])
            acc = acc + U
        Z = Z + acc
    return Z[:, N_CONTEXT, d:].squeeze(-1)


def _make_inputs(key, B, d_model_cov, num_heads, num_layers):
    d_k = d_model_cov // num_heads
    N = TOTAL_SAMPLES
    kx, ky, kq, kk, kv = jax.random.split(key, 5)
    X = jax.random.normal(kx, (B, N, d_model_cov), dtype=jnp.float32)
    Y = jax.random.normal(ky, (B, N, 1), dtype=jnp.float32)
    Y = Y.at[:, N_CONTEXT:, :].set(0.0)           # query target zeroed
    # Parameters: i.i.d. N(0, 0.02^2), PyTorch Linear weight layout (out, in).
    Wq = 0.02 * jax.random.normal(kq, (num_layers, num_heads, d_k, d_model_cov),
                                  dtype=jnp.float32)
    Wk = 0.02 * jax.random.normal(kk, (num_layers, num_heads, d_k, d_model_cov),
                                  dtype=jnp.float32)
    Wv = 0.02 * jax.random.normal(kv, (num_layers, num_heads, d_model_cov + 1,
                                       d_model_cov + 1), dtype=jnp.float32)
    return X, Y, Wq, Wk, Wv


if __name__ == "__main__":
    d_model_cov = 4
    num_heads = 2
    num_layers = 2
    mask = build_mask()

    # Small config consistent with the module (B=2) -> single block, single chunk.
    X, Y, Wq, Wk, Wv = _make_inputs(jax.random.PRNGKey(0), 2,
                                    d_model_cov, num_heads, num_layers)
    out = jax.block_until_ready(transformer_forward(X, Y, mask, Wq, Wk, Wv))
    ref = reference_forward(X, Y, mask, Wq, Wk, Wv)
    assert out.shape == (2,)
    assert jnp.allclose(out, ref, atol=1e-5, rtol=1e-5)

    # Larger batch: exercises padding, 2 grid blocks and the in-kernel chunk loop.
    X2, Y2, Wq2, Wk2, Wv2 = _make_inputs(jax.random.PRNGKey(0), 260,
                                         d_model_cov, num_heads, num_layers)
    out2 = jax.block_until_ready(
        transformer_forward(X2, Y2, mask, Wq2, Wk2, Wv2))
    ref2 = reference_forward(X2, Y2, mask, Wq2, Wk2, Wv2)
    assert out2.shape == (260,)
    assert jnp.allclose(out2, ref2, atol=1e-5, rtol=1e-5)

    print("KERNEL_OK")
</pallas_src>

<mosaic_0001>
module attributes {stable_mosaic.version = 11 : i64} {
  func.func @_transformer_kernel(%arg0: i32, %arg1: memref<5x1x16x128xf32, #tpu.memory_space<vmem>>, %arg2: memref<5x1x1x128xf32, #tpu.memory_space<vmem>>, %arg3: memref<64xf32, #tpu.memory_space<smem>>, %arg4: memref<100xf32, #tpu.memory_space<smem>>, %arg5: memref<1x1x128xf32, #tpu.memory_space<vmem>>) attributes {dimension_semantics = [#tpu.dimension_semantics<parallel>], iteration_bounds = array<i64: 1>, scalar_prefetch = 0 : i64, scratch_operands = 0 : i64, tpu.core_type = #tpu.core_type<tc>, window_params = [{transform_indices = @transform_0, window_bounds = array<i64: 5, 1, 16, 128>}, {transform_indices = @transform_1, window_bounds = array<i64: 5, 1, 1, 128>}, {transform_indices = @transform_2, window_bounds = array<i64: 64>}, {transform_indices = @transform_3, window_bounds = array<i64: 100>}, {transform_indices = @transform_4, window_bounds = array<i64: 1, 1, 128>}]} {
    %c0_i32 = arith.constant 0 : i32
    %c0 = arith.constant 0 : index
    %0 = arith.index_cast %c0_i32 : i32 to index
    %c0_0 = arith.constant 0 : index
    %c0_1 = arith.constant 0 : index
    %1 = vector.load %arg1[%c0, %0, %c0_0, %c0_1] : memref<5x1x16x128xf32, #tpu.memory_space<vmem>>, vector<1x1x16x128xf32>
    %2 = vector.shape_cast %1 : vector<1x1x16x128xf32> to vector<16x128xf32>
    %c1 = arith.constant 1 : index
    %3 = arith.index_cast %c0_i32 : i32 to index
    %c0_2 = arith.constant 0 : index
    %c0_3 = arith.constant 0 : index
    %4 = vector.load %arg1[%c1, %3, %c0_2, %c0_3] : memref<5x1x16x128xf32, #tpu.memory_space<vmem>>, vector<1x1x16x128xf32>
    %5 = vector.shape_cast %4 : vector<1x1x16x128xf32> to vector<16x128xf32>
    %c2 = arith.constant 2 : index
    %6 = arith.index_cast %c0_i32 : i32 to index
    %c0_4 = arith.constant 0 : index
    %c0_5 = arith.constant 0 : index
    %7 = vector.load %arg1[%c2, %6, %c0_4, %c0_5] : memref<5x1x16x128xf32, #tpu.memory_space<vmem>>, vector<1x1x16x128xf32>
    %8 = vector.shape_cast %7 : vector<1x1x16x128xf32> to vector<16x128xf32>
    %c3 = arith.constant 3 : index
    %9 = arith.index_cast %c0_i32 : i32 to index
    %c0_6 = arith.constant 0 : index
    %c0_7 = arith.constant 0 : index
    %10 = vector.load %arg1[%c3, %9, %c0_6, %c0_7] : memref<5x1x16x128xf32, #tpu.memory_space<vmem>>, vector<1x1x16x128xf32>
    %11 = vector.shape_cast %10 : vector<1x1x16x128xf32> to vector<16x128xf32>
    %c4 = arith.constant 4 : index
    %12 = arith.index_cast %c0_i32 : i32 to index
    %c0_8 = arith.constant 0 : index
    %c0_9 = arith.constant 0 : index
    %13 = vector.load %arg1[%c4, %12, %c0_8, %c0_9] : memref<5x1x16x128xf32, #tpu.memory_space<vmem>>, vector<1x1x16x128xf32>
    %14 = vector.shape_cast %13 : vector<1x1x16x128xf32> to vector<16x128xf32>
    %c0_10 = arith.constant 0 : index
    %15 = arith.index_cast %c0_i32 : i32 to index
    %c0_11 = arith.constant 0 : index
    %c0_12 = arith.constant 0 : index
    %16 = vector.load %arg2[%c0_10, %15, %c0_11, %c0_12] : memref<5x1x1x128xf32, #tpu.memory_space<vmem>>, vector<1x1x1x128xf32>
    %17 = vector.shape_cast %16 : vector<1x1x1x128xf32> to vector<1x128xf32>
    %c1_13 = arith.constant 1 : index
    %18 = arith.index_cast %c0_i32 : i32 to index
    %c0_14 = arith.constant 0 : index
    %c0_15 = arith.constant 0 : index
    %19 = vector.load %arg2[%c1_13, %18, %c0_14, %c0_15] : memref<5x1x1x128xf32, #tpu.memory_space<vmem>>, vector<1x1x1x128xf32>
    %20 = vector.shape_cast %19 : vector<1x1x1x128xf32> to vector<1x128xf32>
    %c2_16 = arith.constant 2 : index
    %21 = arith.index_cast %c0_i32 : i32 to index
    %c0_17 = arith.constant 0 : index
    %c0_18 = arith.constant 0 : index
    %22 = vector.load %arg2[%c2_16, %21, %c0_17, %c0_18] : memref<5x1x1x128xf32, #tpu.memory_space<vmem>>, vector<1x1x1x128xf32>
    %23 = vector.shape_cast %22 : vector<1x1x1x128xf32> to vector<1x128xf32>
    %c3_19 = arith.constant 3 : index
    %24 = arith.index_cast %c0_i32 : i32 to index
    %c0_20 = arith.constant 0 : index
    %c0_21 = arith.constant 0 : index
    %25 = vector.load %arg2[%c3_19, %24, %c0_20, %c0_21] : memref<5x1x1x128xf32, #tpu.memory_space<vmem>>, vector<1x1x1x128xf32>
    %26 = vector.shape_cast %25 : vector<1x1x1x128xf32> to vector<1x128xf32>
    %c4_22 = arith.constant 4 : index
    %27 = arith.index_cast %c0_i32 : i32 to index
    %c0_23 = arith.constant 0 : index
    %c0_24 = arith.constant 0 : index
    %28 = vector.load %arg2[%c4_22, %27, %c0_23, %c0_24] : memref<5x1x1x128xf32, #tpu.memory_space<vmem>>, vector<1x1x1x128xf32>
    %29 = vector.shape_cast %28 : vector<1x1x1x128xf32> to vector<1x128xf32>
    %30 = arith.mulf %2, %2 : vector<16x128xf32>
    %31 = arith.mulf %2, %5 : vector<16x128xf32>
    %32 = arith.mulf %2, %8 : vector<16x128xf32>
    %33 = arith.mulf %2, %11 : vector<16x128xf32>
    %34 = arith.mulf %5, %5 : vector<16x128xf32>
    %35 = arith.mulf %5, %8 : vector<16x128xf32>
    %36 = arith.mulf %5, %11 : vector<16x128xf32>
    %37 = arith.mulf %8, %8 : vector<16x128xf32>
    %38 = arith.mulf %8, %11 : vector<16x128xf32>
    %39 = arith.mulf %11, %11 : vector<16x128xf32>
    %c0_25 = arith.constant 0 : index
    %40 = memref.load %arg3[%c0_25] : memref<64xf32, #tpu.memory_space<smem>>
    %41 = vector.broadcast %40 : f32 to vector<16x128xf32>
    %42 = arith.mulf %41, %30 : vector<16x128xf32>
    %c1_26 = arith.constant 1 : index
    %43 = memref.load %arg3[%c1_26] : memref<64xf32, #tpu.memory_space<smem>>
    %c4_27 = arith.constant 4 : index
    %44 = memref.load %arg3[%c4_27] : memref<64xf32, #tpu.memory_space<smem>>
    %45 = arith.addf %43, %44 : f32
    %46 = vector.broadcast %45 : f32 to vector<16x128xf32>
    %47 = arith.mulf %46, %31 : vector<16x128xf32>
    %48 = arith.addf %42, %47 : vector<16x128xf32>
    %c2_28 = arith.constant 2 : index
    %49 = memref.load %arg3[%c2_28] : memref<64xf32, #tpu.memory_space<smem>>
    %c8 = arith.constant 8 : index
    %50 = memref.load %arg3[%c8] : memref<64xf32, #tpu.memory_space<smem>>
    %51 = arith.addf %49, %50 : f32
    %52 = vector.broadcast %51 : f32 to vector<16x128xf32>
    %53 = arith.mulf %52, %32 : vector<16x128xf32>
    %54 = arith.addf %48, %53 : vector<16x128xf32>
    %c3_29 = arith.constant 3 : index
    %55 = memref.load %arg3[%c3_29] : memref<64xf32, #tpu.memory_space<smem>>
    %c12 = arith.constant 12 : index
    %56 = memref.load %arg3[%c12] : memref<64xf32, #tpu.memory_space<smem>>
    %57 = arith.addf %55, %56 : f32
    %58 = vector.broadcast %57 : f32 to vector<16x128xf32>
    %59 = arith.mulf %58, %33 : vector<16x128xf32>
    %60 = arith.addf %54, %59 : vector<16x128xf32>
    %c5 = arith.constant 5 : index
    %61 = memref.load %arg3[%c5] : memref<64xf32, #tpu.memory_space<smem>>
    %62 = vector.broadcast %61 : f32 to vector<16x128xf32>
    %63 = arith.mulf %62, %34 : vector<16x128xf32>
    %64 = arith.addf %60, %63 : vector<16x128xf32>
    %c6 = arith.constant 6 : index
    %65 = memref.load %arg3[%c6] : memref<64xf32, #tpu.memory_space<smem>>
    %c9 = arith.constant 9 : index
    %66 = memref.load %arg3[%c9] : memref<64xf32, #tpu.memory_space<smem>>
    %67 = arith.addf %65, %66 : f32
    %68 = vector.broadcast %67 : f32 to vector<16x128xf32>
    %69 = arith.mulf %68, %35 : vector<16x128xf32>
    %70 = arith.addf %64, %69 : vector<16x128xf32>
    %c7 = arith.constant 7 : index
    %71 = memref.load %arg3[%c7] : memref<64xf32, #tpu.memory_space<smem>>
    %c13 = arith.constant 13 : index
    %72 = memref.load %arg3[%c13] : memref<64xf32, #tpu.memory_space<smem>>
    %73 = arith.addf %71, %72 : f32
    %74 = vector.broadcast %73 : f32 to vector<16x128xf32>
    %75 = arith.mulf %74, %36 : vector<16x128xf32>
    %76 = arith.addf %70, %75 : vector<16x128xf32>
    %c10 = arith.constant 10 : index
    %77 = memref.load %arg3[%c10] : memref<64xf32, #tpu.memory_space<smem>>
    %78 = vector.broadcast %77 : f32 to vector<16x128xf32>
    %79 = arith.mulf %78, %37 : vector<16x128xf32>
    %80 = arith.addf %76, %79 : vector<16x128xf32>
    %c11 = arith.constant 11 : index
    %81 = memref.load %arg3[%c11] : memref<64xf32, #tpu.memory_space<smem>>
    %c14 = arith.constant 14 : index
    %82 = memref.load %arg3[%c14] : memref<64xf32, #tpu.memory_space<smem>>
    %83 = arith.addf %81, %82 : f32
    %84 = vector.broadcast %83 : f32 to vector<16x128xf32>
    %85 = arith.mulf %84, %38 : vector<16x128xf32>
    %86 = arith.addf %80, %85 : vector<16x128xf32>
    %c15 = arith.constant 15 : index
    %87 = memref.load %arg3[%c15] : memref<64xf32, #tpu.memory_space<smem>>
    %88 = vector.broadcast %87 : f32 to vector<16x128xf32>
    %89 = arith.mulf %88, %39 : vector<16x128xf32>
    %90 = arith.addf %86, %89 : vector<16x128xf32>
    %c16 = arith.constant 16 : index
    %91 = memref.load %arg3[%c16] : memref<64xf32, #tpu.memory_space<smem>>
    %92 = vector.broadcast %91 : f32 to vector<16x128xf32>
    %93 = arith.mulf %92, %30 : vector<16x128xf32>
    %c17 = arith.constant 17 : index
    %94 = memref.load %arg3[%c17] : memref<64xf32, #tpu.memory_space<smem>>
    %c20 = arith.constant 20 : index
    %95 = memref.load %arg3[%c20] : memref<64xf32, #tpu.memory_space<smem>>
    %96 = arith.addf %94, %95 : f32
    %97 = vector.broadcast %96 : f32 to vector<16x128xf32>
    %98 = arith.mulf %97, %31 : vector<16x128xf32>
    %99 = arith.addf %93, %98 : vector<16x128xf32>
    %c18 = arith.constant 18 : index
    %100 = memref.load %arg3[%c18] : memref<64xf32, #tpu.memory_space<smem>>
    %c24 = arith.constant 24 : index
    %101 = memref.load %arg3[%c24] : memref<64xf32, #tpu.memory_space<smem>>
    %102 = arith.addf %100, %101 : f32
    %103 = vector.broadcast %102 : f32 to vector<16x128xf32>
    %104 = arith.mulf %103, %32 : vector<16x128xf32>
    %105 = arith.addf %99, %104 : vector<16x128xf32>
    %c19 = arith.constant 19 : index
    %106 = memref.load %arg3[%c19] : memref<64xf32, #tpu.memory_space<smem>>
    %c28 = arith.constant 28 : index
    %107 = memref.load %arg3[%c28] : memref<64xf32, #tpu.memory_space<smem>>
    %108 = arith.addf %106, %107 : f32
    %109 = vector.broadcast %108 : f32 to vector<16x128xf32>
    %110 = arith.mulf %109, %33 : vector<16x128xf32>
    %111 = arith.addf %105, %110 : vector<16x128xf32>
    %c21 = arith.constant 21 : index
    %112 = memref.load %arg3[%c21] : memref<64xf32, #tpu.memory_space<smem>>
    %113 = vector.broadcast %112 : f32 to vector<16x128xf32>
    %114 = arith.mulf %113, %34 : vector<16x128xf32>
    %115 = arith.addf %111, %114 : vector<16x128xf32>
    %c22 = arith.constant 22 : index
    %116 = memref.load %arg3[%c22] : memref<64xf32, #tpu.memory_space<smem>>
    %c25 = arith.constant 25 : index
    %117 = memref.load %arg3[%c25] : memref<64xf32, #tpu.memory_space<smem>>
    %118 = arith.addf %116, %117 : f32
    %119 = vector.broadcast %118 : f32 to vector<16x128xf32>
    %120 = arith.mulf %119, %35 : vector<16x128xf32>
    %121 = arith.addf %115, %120 : vector<16x128xf32>
    %c23 = arith.constant 23 : index
    %122 = memref.load %arg3[%c23] : memref<64xf32, #tpu.memory_space<smem>>
    %c29 = arith.constant 29 : index
    %123 = memref.load %arg3[%c29] : memref<64xf32, #tpu.memory_space<smem>>
    %124 = arith.addf %122, %123 : f32
    %125 = vector.broadcast %124 : f32 to vector<16x128xf32>
    %126 = arith.mulf %125, %36 : vector<16x128xf32>
    %127 = arith.addf %121, %126 : vector<16x128xf32>
    %c26 = arith.constant 26 : index
    %128 = memref.load %arg3[%c26] : memref<64xf32, #tpu.memory_space<smem>>
    %129 = vector.broadcast %128 : f32 to vector<16x128xf32>
    %130 = arith.mulf %129, %37 : vector<16x128xf32>
    %131 = arith.addf %127, %130 : vector<16x128xf32>
    %c27 = arith.constant 27 : index
    %132 = memref.load %arg3[%c27] : memref<64xf32, #tpu.memory_space<smem>>
    %c30 = arith.constant 30 : index
    %133 = memref.load %arg3[%c30] : memref<64xf32, #tpu.memory_space<smem>>
    %134 = arith.addf %132, %133 : f32
    %135 = vector.broadcast %134 : f32 to vector<16x128xf32>
    %136 = arith.mulf %135, %38 : vector<16x128xf32>
    %137 = arith.addf %131, %136 : vector<16x128xf32>
    %c31 = arith.constant 31 : index
    %138 = memref.load %arg3[%c31] : memref<64xf32, #tpu.memory_space<smem>>
    %139 = vector.broadcast %138 : f32 to vector<16x128xf32>
    %140 = arith.mulf %139, %39 : vector<16x128xf32>
    %141 = arith.addf %137, %140 : vector<16x128xf32>
    %c0_30 = arith.constant 0 : index
    %142 = memref.load %arg3[%c0_30] : memref<64xf32, #tpu.memory_space<smem>>
    %143 = vector.broadcast %142 : f32 to vector<1x128xf32>
    %144 = arith.mulf %143, %17 : vector<1x128xf32>
    %c4_31 = arith.constant 4 : index
    %145 = memref.load %arg3[%c4_31] : memref<64xf32, #tpu.memory_space<smem>>
    %146 = vector.broadcast %145 : f32 to vector<1x128xf32>
    %147 = arith.mulf %146, %20 : vector<1x128xf32>
    %148 = arith.addf %144, %147 : vector<1x128xf32>
    %c8_32 = arith.constant 8 : index
    %149 = memref.load %arg3[%c8_32] : memref<64xf32, #tpu.memory_space<smem>>
    %150 = vector.broadcast %149 : f32 to vector<1x128xf32>
    %151 = arith.mulf %150, %23 : vector<1x128xf32>
    %152 = arith.addf %148, %151 : vector<1x128xf32>
    %c12_33 = arith.constant 12 : index
    %153 = memref.load %arg3[%c12_33] : memref<64xf32, #tpu.memory_space<smem>>
    %154 = vector.broadcast %153 : f32 to vector<1x128xf32>
    %155 = arith.mulf %154, %26 : vector<1x128xf32>
    %156 = arith.addf %152, %155 : vector<1x128xf32>
    %c1_34 = arith.constant 1 : index
    %157 = memref.load %arg3[%c1_34] : memref<64xf32, #tpu.memory_space<smem>>
    %158 = vector.broadcast %157 : f32 to vector<1x128xf32>
    %159 = arith.mulf %158, %17 : vector<1x128xf32>
    %c5_35 = arith.constant 5 : index
    %160 = memref.load %arg3[%c5_35] : memref<64xf32, #tpu.memory_space<smem>>
    %161 = vector.broadcast %160 : f32 to vector<1x128xf32>
    %162 = arith.mulf %161, %20 : vector<1x128xf32>
    %163 = arith.addf %159, %162 : vector<1x128xf32>
    %c9_36 = arith.constant 9 : index
    %164 = memref.load %arg3[%c9_36] : memref<64xf32, #tpu.memory_space<smem>>
    %165 = vector.broadcast %164 : f32 to vector<1x128xf32>
    %166 = arith.mulf %165, %23 : vector<1x128xf32>
    %167 = arith.addf %163, %166 : vector<1x128xf32>
    %c13_37 = arith.constant 13 : index
    %168 = memref.load %arg3[%c13_37] : memref<64xf32, #tpu.memory_space<smem>>
    %169 = vector.broadcast %168 : f32 to vector<1x128xf32>
    %170 = arith.mulf %169, %26 : vector<1x128xf32>
    %171 = arith.addf %167, %170 : vector<1x128xf32>
    %c2_38 = arith.constant 2 : index
    %172 = memref.load %arg3[%c2_38] : memref<64xf32, #tpu.memory_space<smem>>
    %173 = vector.broadcast %172 : f32 to vector<1x128xf32>
    %174 = arith.mulf %173, %17 : vector<1x128xf32>
    %c6_39 = arith.constant 6 : index
    %175 = memref.load %arg3[%c6_39] : memref<64xf32, #tpu.memory_space<smem>>
    %176 = vector.broadcast %175 : f32 to vector<1x128xf32>
    %177 = arith.mulf %176, %20 : vector<1x128xf32>
    %178 = arith.addf %174, %177 : vector<1x128xf32>
    %c10_40 = arith.constant 10 : index
    %179 = memref.load %arg3[%c10_40] : memref<64xf32, #tpu.memory_space<smem>>
    %180 = vector.broadcast %179 : f32 to vector<1x128xf32>
    %181 = arith.mulf %180, %23 : vector<1x128xf32>
    %182 = arith.addf %178, %181 : vector<1x128xf32>
    %c14_41 = arith.constant 14 : index
    %183 = memref.load %arg3[%c14_41] : memref<64xf32, #tpu.memory_space<smem>>
    %184 = vector.broadcast %183 : f32 to vector<1x128xf32>
    %185 = arith.mulf %184, %26 : vector<1x128xf32>
    %186 = arith.addf %182, %185 : vector<1x128xf32>
    %c3_42 = arith.constant 3 : index
    %187 = memref.load %arg3[%c3_42] : memref<64xf32, #tpu.memory_space<smem>>
    %188 = vector.broadcast %187 : f32 to vector<1x128xf32>
    %189 = arith.mulf %188, %17 : vector<1x128xf32>
    %c7_43 = arith.constant 7 : index
    %190 = memref.load %arg3[%c7_43] : memref<64xf32, #tpu.memory_space<smem>>
    %191 = vector.broadcast %190 : f32 to vector<1x128xf32>
    %192 = arith.mulf %191, %20 : vector<1x128xf32>
    %193 = arith.addf %189, %192 : vector<1x128xf32>
    %c11_44 = arith.constant 11 : index
    %194 = memref.load %arg3[%c11_44] : memref<64xf32, #tpu.memory_space<smem>>
    %195 = vector.broadcast %194 : f32 to vector<1x128xf32>
    %196 = arith.mulf %195, %23 : vector<1x128xf32>
    %197 = arith.addf %193, %196 : vector<1x128xf32>
    %c15_45 = arith.constant 15 : index
    %198 = memref.load %arg3[%c15_45] : memref<64xf32, #tpu.memory_space<smem>>
    %199 = vector.broadcast %198 : f32 to vector<1x128xf32>
    %200 = arith.mulf %199, %26 : vector<1x128xf32>
    %201 = arith.addf %197, %200 : vector<1x128xf32>
    %202 = vector.broadcast %156 : vector<1x128xf32> to vector<16x128xf32>
    %203 = arith.mulf %202, %2 : vector<16x128xf32>
    %204 = vector.broadcast %171 : vector<1x128xf32> to vector<16x128xf32>
    %205 = arith.mulf %204, %5 : vector<16x128xf32>
    %206 = arith.addf %203, %205 : vector<16x128xf32>
    %207 = vector.broadcast %186 : vector<1x128xf32> to vector<16x128xf32>
    %208 = arith.mulf %207, %8 : vector<16x128xf32>
    %209 = arith.addf %206, %208 : vector<16x128xf32>
    %210 = vector.broadcast %201 : vector<1x128xf32> to vector<16x128xf32>
    %211 = arith.mulf %210, %11 : vector<16x128xf32>
    %212 = arith.addf %209, %211 : vector<16x128xf32>
    %213 = arith.mulf %212, %2 : vector<16x128xf32>
    %cst = arith.constant dense<0.000000e+00> : vector<128xf32>
    %214 = vector.multi_reduction <add>, %213, %cst [0] : vector<16x128xf32> to vector<128xf32>
    %215 = vector.shape_cast %214 : vector<128xf32> to vector<1x128xf32>
    %216 = arith.mulf %212, %5 : vector<16x128xf32>
    %cst_46 = arith.constant dense<0.000000e+00> : vector<128xf32>
    %217 = vector.multi_reduction <add>, %216, %cst_46 [0] : vector<16x128xf32> to vector<128xf32>
    %218 = vector.shape_cast %217 : vector<128xf32> to vector<1x128xf32>
    %219 = arith.mulf %212, %8 : vector<16x128xf32>
    %cst_47 = arith.constant dense<0.000000e+00> : vector<128xf32>
    %220 = vector.multi_reduction <add>, %219, %cst_47 [0] : vector<16x128xf32> to vector<128xf32>
    %221 = vector.shape_cast %220 : vector<128xf32> to vector<1x128xf32>
    %222 = arith.mulf %212, %11 : vector<16x128xf32>
    %cst_48 = arith.constant dense<0.000000e+00> : vector<128xf32>
    %223 = vector.multi_reduction <add>, %222, %cst_48 [0] : vector<16x128xf32> to vector<128xf32>
    %224 = vector.shape_cast %223 : vector<128xf32> to vector<1x128xf32>
    %225 = arith.mulf %212, %14 : vector<16x128xf32>
    %cst_49 = arith.constant dense<0.000000e+00> : vector<128xf32>
    %226 = vector.multi_reduction <add>, %225, %cst_49 [0] : vector<16x128xf32> to vector<128xf32>
    %227 = vector.shape_cast %226 : vector<128xf32> to vector<1x128xf32>
    %c0_50 = arith.constant 0 : index
    %228 = memref.load %arg4[%c0_50] : memref<100xf32, #tpu.memory_space<smem>>
    %229 = vector.broadcast %228 : f32 to vector<1x128xf32>
    %230 = arith.mulf %229, %215 : vector<1x128xf32>
    %c1_51 = arith.constant 1 : index
    %231 = memref.load %arg4[%c1_51] : memref<100xf32, #tpu.memory_space<smem>>
    %232 = vector.broadcast %231 : f32 to vector<1x128xf32>
    %233 = arith.mulf %232, %218 : vector<1x128xf32>
    %234 = arith.addf %230, %233 : vector<1x128xf32>
    %c2_52 = arith.constant 2 : index
    %235 = memref.load %arg4[%c2_52] : memref<100xf32, #tpu.memory_space<smem>>
    %236 = vector.broadcast %235 : f32 to vector<1x128xf32>
    %237 = arith.mulf %236, %221 : vector<1x128xf32>
    %238 = arith.addf %234, %237 : vector<1x128xf32>
    %c3_53 = arith.constant 3 : index
    %239 = memref.load %arg4[%c3_53] : memref<100xf32, #tpu.memory_space<smem>>
    %240 = vector.broadcast %239 : f32 to vector<1x128xf32>
    %241 = arith.mulf %240, %224 : vector<1x128xf32>
    %242 = arith.addf %238, %241 : vector<1x128xf32>
    %c4_54 = arith.constant 4 : index
    %243 = memref.load %arg4[%c4_54] : memref<100xf32, #tpu.memory_space<smem>>
    %244 = vector.broadcast %243 : f32 to vector<1x128xf32>
    %245 = arith.mulf %244, %227 : vector<1x128xf32>
    %246 = arith.addf %242, %245 : vector<1x128xf32>
    %c5_55 = arith.constant 5 : index
    %247 = memref.load %arg4[%c5_55] : memref<100xf32, #tpu.memory_space<smem>>
    %248 = vector.broadcast %247 : f32 to vector<1x128xf32>
    %249 = arith.mulf %248, %215 : vector<1x128xf32>
    %c6_56 = arith.constant 6 : index
    %250 = memref.load %arg4[%c6_56] : memref<100xf32, #tpu.memory_space<smem>>
    %251 = vector.broadcast %250 : f32 to vector<1x128xf32>
    %252 = arith.mulf %251, %218 : vector<1x128xf32>
    %253 = arith.addf %249, %252 : vector<1x128xf32>
    %c7_57 = arith.constant 7 : index
    %254 = memref.load %arg4[%c7_57] : memref<100xf32, #tpu.memory_space<smem>>
    %255 = vector.broadcast %254 : f32 to vector<1x128xf32>
    %256 = arith.mulf %255, %221 : vector<1x128xf32>
    %257 = arith.addf %253, %256 : vector<1x128xf32>
    %c8_58 = arith.constant 8 : index
    %258 = memref.load %arg4[%c8_58] : memref<100xf32, #tpu.memory_space<smem>>
    %259 = vector.broadcast %258 : f32 to vector<1x128xf32>
    %260 = arith.mulf %259, %224 : vector<1x128xf32>
    %261 = arith.addf %257, %260 : vector<1x128xf32>
    %c9_59 = arith.constant 9 : index
    %262 = memref.load %arg4[%c9_59] : memref<100xf32, #tpu.memory_space<smem>>
    %263 = vector.broadcast %262 : f32 to vector<1x128xf32>
    %264 = arith.mulf %263, %227 : vector<1x128xf32>
    %265 = arith.addf %261, %264 : vector<1x128xf32>
    %c10_60 = arith.constant 10 : index
    %266 = memref.load %arg4[%c10_60] : memref<100xf32, #tpu.memory_space<smem>>
    %267 = vector.broadcast %266 : f32 to vector<1x128xf32>
    %268 = arith.mulf %267, %215 : vector<1x128xf32>
    %c11_61 = arith.constant 11 : index
    %269 = memref.load %arg4[%c11_61] : memref<100xf32, #tpu.memory_space<smem>>
    %270 = vector.broadcast %269 : f32 to vector<1x128xf32>
    %271 = arith.mulf %270, %218 : vector<1x128xf32>
    %272 = arith.addf %268, %271 : vector<1x128xf32>
    %c12_62 = arith.constant 12 : index
    %273 = memref.load %arg4[%c12_62] : memref<100xf32, #tpu.memory_space<smem>>
    %274 = vector.broadcast %273 : f32 to vector<1x128xf32>
    %275 = arith.mulf %274, %221 : vector<1x128xf32>
    %276 = arith.addf %272, %275 : vector<1x128xf32>
    %c13_63 = arith.constant 13 : index
    %277 = memref.load %arg4[%c13_63] : memref<100xf32, #tpu.memory_space<smem>>
    %278 = vector.broadcast %277 : f32 to vector<1x128xf32>
    %279 = arith.mulf %278, %224 : vector<1x128xf32>
    %280 = arith.addf %276, %279 : vector<1x128xf32>
    %c14_64 = arith.constant 14 : index
    %281 = memref.load %arg4[%c14_64] : memref<100xf32, #tpu.memory_space<smem>>
    %282 = vector.broadcast %281 : f32 to vector<1x128xf32>
    %283 = arith.mulf %282, %227 : vector<1x128xf32>
    %284 = arith.addf %280, %283 : vector<1x128xf32>
    %c15_65 = arith.constant 15 : index
    %285 = memref.load %arg4[%c15_65] : memref<100xf32, #tpu.memory_space<smem>>
    %286 = vector.broadcast %285 : f32 to vector<1x128xf32>
    %287 = arith.mulf %286, %215 : vector<1x128xf32>
    %c16_66 = arith.constant 16 : index
    %288 = memref.load %arg4[%c16_66] : memref<100xf32, #tpu.memory_space<smem>>
    %289 = vector.broadcast %288 : f32 to vector<1x128xf32>
    %290 = arith.mulf %289, %218 : vector<1x128xf32>
    %291 = arith.addf %287, %290 : vector<1x128xf32>
    %c17_67 = arith.constant 17 : index
    %292 = memref.load %arg4[%c17_67] : memref<100xf32, #tpu.memory_space<smem>>
    %293 = vector.broadcast %292 : f32 to vector<1x128xf32>
    %294 = arith.mulf %293, %221 : vector<1x128xf32>
    %295 = arith.addf %291, %294 : vector<1x128xf32>
    %c18_68 = arith.constant 18 : index
    %296 = memref.load %arg4[%c18_68] : memref<100xf32, #tpu.memory_space<smem>>
    %297 = vector.broadcast %296 : f32 to vector<1x128xf32>
    %298 = arith.mulf %297, %224 : vector<1x128xf32>
    %299 = arith.addf %295, %298 : vector<1x128xf32>
    %c19_69 = arith.constant 19 : index
    %300 = memref.load %arg4[%c19_69] : memref<100xf32, #tpu.memory_space<smem>>
    %301 = vector.broadcast %300 : f32 to vector<1x128xf32>
    %302 = arith.mulf %301, %227 : vector<1x128xf32>
    %303 = arith.addf %299, %302 : vector<1x128xf32>
    %c20_70 = arith.constant 20 : index
    %304 = memref.load %arg4[%c20_70] : memref<100xf32, #tpu.memory_space<smem>>
    %305 = vector.broadcast %304 : f32 to vector<1x128xf32>
    %306 = arith.mulf %305, %215 : vector<1x128xf32>
    %c21_71 = arith.constant 21 : index
    %307 = memref.load %arg4[%c21_71] : memref<100xf32, #tpu.memory_space<smem>>
    %308 = vector.broadcast %307 : f32 to vector<1x128xf32>
    %309 = arith.mulf %308, %218 : vector<1x128xf32>
    %310 = arith.addf %306, %309 : vector<1x128xf32>
    %c22_72 = arith.constant 22 : index
    %311 = memref.load %arg4[%c22_72] : memref<100xf32, #tpu.memory_space<smem>>
    %312 = vector.broadcast %311 : f32 to vector<1x128xf32>
    %313 = arith.mulf %312, %221 : vector<1x128xf32>
    %314 = arith.addf %310, %313 : vector<1x128xf32>
    %c23_73 = arith.constant 23 : index
    %315 = memref.load %arg4[%c23_73] : memref<100xf32, #tpu.memory_space<smem>>
    %316 = vector.broadcast %315 : f32 to vector<1x128xf32>
    %317 = arith.mulf %316, %224 : vector<1x128xf32>
    %318 = arith.addf %314, %317 : vector<1x128xf32>
    %c24_74 = arith.constant 24 : index
    %319 = memref.load %arg4[%c24_74] : memref<100xf32, #tpu.memory_space<smem>>
    %320 = vector.broadcast %319 : f32 to vector<1x128xf32>
    %321 = arith.mulf %320, %227 : vector<1x128xf32>
    %322 = arith.addf %318, %321 : vector<1x128xf32>
    %c0_75 = arith.constant 0 : index
    %323 = memref.load %arg4[%c0_75] : memref<100xf32, #tpu.memory_space<smem>>
    %324 = vector.broadcast %323 : f32 to vector<16x128xf32>
    %325 = arith.mulf %324, %2 : vector<16x128xf32>
    %c1_76 = arith.constant 1 : index
    %326 = memref.load %arg4[%c1_76] : memref<100xf32, #tpu.memory_space<smem>>
    %327 = vector.broadcast %326 : f32 to vector<16x128xf32>
    %328 = arith.mulf %327, %5 : vector<16x128xf32>
    %329 = arith.addf %325, %328 : vector<16x128xf32>
    %c2_77 = arith.constant 2 : index
    %330 = memref.load %arg4[%c2_77] : memref<100xf32, #tpu.memory_space<smem>>
    %331 = vector.broadcast %330 : f32 to vector<16x128xf32>
    %332 = arith.mulf %331, %8 : vector<16x128xf32>
    %333 = arith.addf %329, %332 : vector<16x128xf32>
    %c3_78 = arith.constant 3 : index
    %334 = memref.load %arg4[%c3_78] : memref<100xf32, #tpu.memory_space<smem>>
    %335 = vector.broadcast %334 : f32 to vector<16x128xf32>
    %336 = arith.mulf %335, %11 : vector<16x128xf32>
    %337 = arith.addf %333, %336 : vector<16x128xf32>
    %c4_79 = arith.constant 4 : index
    %338 = memref.load %arg4[%c4_79] : memref<100xf32, #tpu.memory_space<smem>>
    %339 = vector.broadcast %338 : f32 to vector<16x128xf32>
    %340 = arith.mulf %339, %14 : vector<16x128xf32>
    %341 = arith.addf %337, %340 : vector<16x128xf32>
    %342 = arith.mulf %90, %341 : vector<16x128xf32>
    %c5_80 = arith.constant 5 : index
    %343 = memref.load %arg4[%c5_80] : memref<100xf32, #tpu.memory_space<smem>>
    %344 = vector.broadcast %343 : f32 to vector<16x128xf32>
    %345 = arith.mulf %344, %2 : vector<16x128xf32>
    %c6_81 = arith.constant 6 : index
    %346 = memref.load %arg4[%c6_81] : memref<100xf32, #tpu.memory_space<smem>>
    %347 = vector.broadcast %346 : f32 to vector<16x128xf32>
    %348 = arith.mulf %347, %5 : vector<16x128xf32>
    %349 = arith.addf %345, %348 : vector<16x128xf32>
    %c7_82 = arith.constant 7 : index
    %350 = memref.load %arg4[%c7_82] : memref<100xf32, #tpu.memory_space<smem>>
    %351 = vector.broadcast %350 : f32 to vector<16x128xf32>
    %352 = arith.mulf %351, %8 : vector<16x128xf32>
    %353 = arith.addf %349, %352 : vector<16x128xf32>
    %c8_83 = arith.constant 8 : index
    %354 = memref.load %arg4[%c8_83] : memref<100xf32, #tpu.memory_space<smem>>
    %355 = vector.broadcast %354 : f32 to vector<16x128xf32>
    %356 = arith.mulf %355, %11 : vector<16x128xf32>
    %357 = arith.addf %353, %356 : vector<16x128xf32>
    %c9_84 = arith.constant 9 : index
    %358 = memref.load %arg4[%c9_84] : memref<100xf32, #tpu.memory_space<smem>>
    %359 = vector.broadcast %358 : f32 to vector<16x128xf32>
    %360 = arith.mulf %359, %14 : vector<16x128xf32>
    %361 = arith.addf %357, %360 : vector<16x128xf32>
    %362 = arith.mulf %90, %361 : vector<16x128xf32>
    %c10_85 = arith.constant 10 : index
    %363 = memref.load %arg4[%c10_85] : memref<100xf32, #tpu.memory_space<smem>>
    %364 = vector.broadcast %363 : f32 to vector<16x128xf32>
    %365 = arith.mulf %364, %2 : vector<16x128xf32>
    %c11_86 = arith.constant 11 : index
    %366 = memref.load %arg4[%c11_86] : memref<100xf32, #tpu.memory_space<smem>>
    %367 = vector.broadcast %366 : f32 to vector<16x128xf32>
    %368 = arith.mulf %367, %5 : vector<16x128xf32>
    %369 = arith.addf %365, %368 : vector<16x128xf32>
    %c12_87 = arith.constant 12 : index
    %370 = memref.load %arg4[%c12_87] : memref<100xf32, #tpu.memory_space<smem>>
    %371 = vector.broadcast %370 : f32 to vector<16x128xf32>
    %372 = arith.mulf %371, %8 : vector<16x128xf32>
    %373 = arith.addf %369, %372 : vector<16x128xf32>
    %c13_88 = arith.constant 13 : index
    %374 = memref.load %arg4[%c13_88] : memref<100xf32, #tpu.memory_space<smem>>
    %375 = vector.broadcast %374 : f32 to vector<16x128xf32>
    %376 = arith.mulf %375, %11 : vector<16x128xf32>
    %377 = arith.addf %373, %376 : vector<16x128xf32>
    %c14_89 = arith.constant 14 : index
    %378 = memref.load %arg4[%c14_89] : memref<100xf32, #tpu.memory_space<smem>>
    %379 = vector.broadcast %378 : f32 to vector<16x128xf32>
    %380 = arith.mulf %379, %14 : vector<16x128xf32>
    %381 = arith.addf %377, %380 : vector<16x128xf32>
    %382 = arith.mulf %90, %381 : vector<16x128xf32>
    %c15_90 = arith.constant 15 : index
    %383 = memref.load %arg4[%c15_90] : memref<100xf32, #tpu.memory_space<smem>>
    %384 = vector.broadcast %383 : f32 to vector<16x128xf32>
    %385 = arith.mulf %384, %2 : vector<16x128xf32>
    %c16_91 = arith.constant 16 : index
    %386 = memref.load %arg4[%c16_91] : memref<100xf32, #tpu.memory_space<smem>>
    %387 = vector.broadcast %386 : f32 to vector<16x128xf32>
    %388 = arith.mulf %387, %5 : vector<16x128xf32>
    %389 = arith.addf %385, %388 : vector<16x128xf32>
    %c17_92 = arith.constant 17 : index
    %390 = memref.load %arg4[%c17_92] : memref<100xf32, #tpu.memory_space<smem>>
    %391 = vector.broadcast %390 : f32 to vector<16x128xf32>
    %392 = arith.mulf %391, %8 : vector<16x128xf32>
    %393 = arith.addf %389, %392 : vector<16x128xf32>
    %c18_93 = arith.constant 18 : index
    %394 = memref.load %arg4[%c18_93] : memref<100xf32, #tpu.memory_space<smem>>
    %395 = vector.broadcast %394 : f32 to vector<16x128xf32>
    %396 = arith.mulf %395, %11 : vector<16x128xf32>
    %397 = arith.addf %393, %396 : vector<16x128xf32>
    %c19_94 = arith.constant 19 : index
    %398 = memref.load %arg4[%c19_94] : memref<100xf32, #tpu.memory_space<smem>>
    %399 = vector.broadcast %398 : f32 to vector<16x128xf32>
    %400 = arith.mulf %399, %14 : vector<16x128xf32>
    %401 = arith.addf %397, %400 : vector<16x128xf32>
    %402 = arith.mulf %90, %401 : vector<16x128xf32>
    %c20_95 = arith.constant 20 : index
    %403 = memref.load %arg4[%c20_95] : memref<100xf32, #tpu.memory_space<smem>>
    %404 = vector.broadcast %403 : f32 to vector<16x128xf32>
    %405 = arith.mulf %404, %2 : vector<16x128xf32>
    %c21_96 = arith.constant 21 : index
    %406 = memref.load %arg4[%c21_96] : memref<100xf32, #tpu.memory_space<smem>>
    %407 = vector.broadcast %406 : f32 to vector<16x128xf32>
    %408 = arith.mulf %407, %5 : vector<16x128xf32>
    %409 = arith.addf %405, %408 : vector<16x128xf32>
    %c22_97 = arith.constant 22 : index
    %410 = memref.load %arg4[%c22_97] : memref<100xf32, #tpu.memory_space<smem>>
    %411 = vector.broadcast %410 : f32 to vector<16x128xf32>
    %412 = arith.mulf %411, %8 : vector<16x128xf32>
    %413 = arith.addf %409, %412 : vector<16x128xf32>
    %c23_98 = arith.constant 23 : index
    %414 = memref.load %arg4[%c23_98] : memref<100xf32, #tpu.memory_space<smem>>
    %415 = vector.broadcast %414 : f32 to vector<16x128xf32>
    %416 = arith.mulf %415, %11 : vector<16x128xf32>
    %417 = arith.addf %413, %416 : vector<16x128xf32>
    %c24_99 = arith.constant 24 : index
    %418 = memref.load %arg4[%c24_99] : memref<100xf32, #tpu.memory_space<smem>>
    %419 = vector.broadcast %418 : f32 to vector<16x128xf32>
    %420 = arith.mulf %419, %14 : vector<16x128xf32>
    %421 = arith.addf %417, %420 : vector<16x128xf32>
    %422 = arith.mulf %90, %421 : vector<16x128xf32>
    %c16_100 = arith.constant 16 : index
    %423 = memref.load %arg3[%c16_100] : memref<64xf32, #tpu.memory_space<smem>>
    %424 = vector.broadcast %423 : f32 to vector<1x128xf32>
    %425 = arith.mulf %424, %17 : vector<1x128xf32>
    %c20_101 = arith.constant 20 : index
    %426 = memref.load %arg3[%c20_101] : memref<64xf32, #tpu.memory_space<smem>>
    %427 = vector.broadcast %426 : f32 to vector<1x128xf32>
    %428 = arith.mulf %427, %20 : vector<1x128xf32>
    %429 = arith.addf %425, %428 : vector<1x128xf32>
    %c24_102 = arith.constant 24 : index
    %430 = memref.load %arg3[%c24_102] : memref<64xf32, #tpu.memory_space<smem>>
    %431 = vector.broadcast %430 : f32 to vector<1x128xf32>
    %432 = arith.mulf %431, %23 : vector<1x128xf32>
    %433 = arith.addf %429, %432 : vector<1x128xf32>
    %c28_103 = arith.constant 28 : index
    %434 = memref.load %arg3[%c28_103] : memref<64xf32, #tpu.memory_space<smem>>
    %435 = vector.broadcast %434 : f32 to vector<1x128xf32>
    %436 = arith.mulf %435, %26 : vector<1x128xf32>
    %437 = arith.addf %433, %436 : vector<1x128xf32>
    %c17_104 = arith.constant 17 : index
    %438 = memref.load %arg3[%c17_104] : memref<64xf32, #tpu.memory_space<smem>>
    %439 = vector.broadcast %438 : f32 to vector<1x128xf32>
    %440 = arith.mulf %439, %17 : vector<1x128xf32>
    %c21_105 = arith.constant 21 : index
    %441 = memref.load %arg3[%c21_105] : memref<64xf32, #tpu.memory_space<smem>>
    %442 = vector.broadcast %441 : f32 to vector<1x128xf32>
    %443 = arith.mulf %442, %20 : vector<1x128xf32>
    %444 = arith.addf %440, %443 : vector<1x128xf32>
    %c25_106 = arith.constant 25 : index
    %445 = memref.load %arg3[%c25_106] : memref<64xf32, #tpu.memory_space<smem>>
    %446 = vector.broadcast %445 : f32 to vector<1x128xf32>
    %447 = arith.mulf %446, %23 : vector<1x128xf32>
    %448 = arith.addf %444, %447 : vector<1x128xf32>
    %c29_107 = arith.constant 29 : index
    %449 = memref.load %arg3[%c29_107] : memref<64xf32, #tpu.memory_space<smem>>
    %450 = vector.broadcast %449 : f32 to vector<1x128xf32>
    %451 = arith.mulf %450, %26 : vector<1x128xf32>
    %452 = arith.addf %448, %451 : vector<1x128xf32>
    %c18_108 = arith.constant 18 : index
    %453 = memref.load %arg3[%c18_108] : memref<64xf32, #tpu.memory_space<smem>>
    %454 = vector.broadcast %453 : f32 to vector<1x128xf32>
    %455 = arith.mulf %454, %17 : vector<1x128xf32>
    %c22_109 = arith.constant 22 : index
    %456 = memref.load %arg3[%c22_109] : memref<64xf32, #tpu.memory_space<smem>>
    %457 = vector.broadcast %456 : f32 to vector<1x128xf32>
    %458 = arith.mulf %457, %20 : vector<1x128xf32>
    %459 = arith.addf %455, %458 : vector<1x128xf32>
    %c26_110 = arith.constant 26 : index
    %460 = memref.load %arg3[%c26_110] : memref<64xf32, #tpu.memory_space<smem>>
    %461 = vector.broadcast %460 : f32 to vector<1x128xf32>
    %462 = arith.mulf %461, %23 : vector<1x128xf32>
    %463 = arith.addf %459, %462 : vector<1x128xf32>
    %c30_111 = arith.constant 30 : index
    %464 = memref.load %arg3[%c30_111] : memref<64xf32, #tpu.memory_space<smem>>
    %465 = vector.broadcast %464 : f32 to vector<1x128xf32>
    %466 = arith.mulf %465, %26 : vector<1x128xf32>
    %467 = arith.addf %463, %466 : vector<1x128xf32>
    %c19_112 = arith.constant 19 : index
    %468 = memref.load %arg3[%c19_112] : memref<64xf32, #tpu.memory_space<smem>>
    %469 = vector.broadcast %468 : f32 to vector<1x128xf32>
    %470 = arith.mulf %469, %17 : vector<1x128xf32>
    %c23_113 = arith.constant 23 : index
    %471 = memref.load %arg3[%c23_113] : memref<64xf32, #tpu.memory_space<smem>>
    %472 = vector.broadcast %471 : f32 to vector<1x128xf32>
    %473 = arith.mulf %472, %20 : vector<1x128xf32>
    %474 = arith.addf %470, %473 : vector<1x128xf32>
    %c27_114 = arith.constant 27 : index
    %475 = memref.load %arg3[%c27_114] : memref<64xf32, #tpu.memory_space<smem>>
    %476 = vector.broadcast %475 : f32 to vector<1x128xf32>
    %477 = arith.mulf %476, %23 : vector<1x128xf32>
    %478 = arith.addf %474, %477 : vector<1x128xf32>
    %c31_115 = arith.constant 31 : index
    %479 = memref.load %arg3[%c31_115] : memref<64xf32, #tpu.memory_space<smem>>
    %480 = vector.broadcast %479 : f32 to vector<1x128xf32>
    %481 = arith.mulf %480, %26 : vector<1x128xf32>
    %482 = arith.addf %478, %481 : vector<1x128xf32>
    %483 = vector.broadcast %437 : vector<1x128xf32> to vector<16x128xf32>
    %484 = arith.mulf %483, %2 : vector<16x128xf32>
    %485 = vector.broadcast %452 : vector<1x128xf32> to vector<16x128xf32>
    %486 = arith.mulf %485, %5 : vector<16x128xf32>
    %487 = arith.addf %484, %486 : vector<16x128xf32>
    %488 = vector.broadcast %467 : vector<1x128xf32> to vector<16x128xf32>
    %489 = arith.mulf %488, %8 : vector<16x128xf32>
    %490 = arith.addf %487, %489 : vector<16x128xf32>
    %491 = vector.broadcast %482 : vector<1x128xf32> to vector<16x128xf32>
    %492 = arith.mulf %491, %11 : vector<16x128xf32>
    %493 = arith.addf %490, %492 : vector<16x128xf32>
    %494 = arith.mulf %493, %2 : vector<16x128xf32>
    %cst_116 = arith.constant dense<0.000000e+00> : vector<128xf32>
    %495 = vector.multi_reduction <add>, %494, %cst_116 [0] : vector<16x128xf32> to vector<128xf32>
    %496 = vector.shape_cast %495 : vector<128xf32> to vector<1x128xf32>
    %497 = arith.mulf %493, %5 : vector<16x128xf32>
    %cst_117 = arith.constant dense<0.000000e+00> : vector<128xf32>
    %498 = vector.multi_reduction <add>, %497, %cst_117 [0] : vector<16x128xf32> to vector<128xf32>
    %499 = vector.shape_cast %498 : vector<128xf32> to vector<1x128xf32>
    %500 = arith.mulf %493, %8 : vector<16x128xf32>
    %cst_118 = arith.constant dense<0.000000e+00> : vector<128xf32>
    %501 = vector.multi_reduction <add>, %500, %cst_118 [0] : vector<16x128xf32> to vector<128xf32>
    %502 = vector.shape_cast %501 : vector<128xf32> to vector<1x128xf32>
    %503 = arith.mulf %493, %11 : vector<16x128xf32>
    %cst_119 = arith.constant dense<0.000000e+00> : vector<128xf32>
    %504 = vector.multi_reduction <add>, %503, %cst_119 [0] : vector<16x128xf32> to vector<128xf32>
    %505 = vector.shape_cast %504 : vector<128xf32> to vector<1x128xf32>
    %506 = arith.mulf %493, %14 : vector<16x128xf32>
    %cst_120 = arith.constant dense<0.000000e+00> : vector<128xf32>
    %507 = vector.multi_reduction <add>, %506, %cst_120 [0] : vector<16x128xf32> to vector<128xf32>
    %508 = vector.shape_cast %507 : vector<128xf32> to vector<1x128xf32>
    %c25_121 = arith.constant 25 : index
    %509 = memref.load %arg4[%c25_121] : memref<100xf32, #tpu.memory_space<smem>>
    %510 = vector.broadcast %509 : f32 to vector<1x128xf32>
    %511 = arith.mulf %510, %496 : vector<1x128xf32>
    %c26_122 = arith.constant 26 : index
    %512 = memref.load %arg4[%c26_122] : memref<100xf32, #tpu.memory_space<smem>>
    %513 = vector.broadcast %512 : f32 to vector<1x128xf32>
    %514 = arith.mulf %513, %499 : vector<1x128xf32>
    %515 = arith.addf %511, %514 : vector<1x128xf32>
    %c27_123 = arith.constant 27 : index
    %516 = memref.load %arg4[%c27_123] : memref<100xf32, #tpu.memory_space<smem>>
    %517 = vector.broadcast %516 : f32 to vector<1x128xf32>
    %518 = arith.mulf %517, %502 : vector<1x128xf32>
    %519 = arith.addf %515, %518 : vector<1x128xf32>
    %c28_124 = arith.constant 28 : index
    %520 = memref.load %arg4[%c28_124] : memref<100xf32, #tpu.memory_space<smem>>
    %521 = vector.broadcast %520 : f32 to vector<1x128xf32>
    %522 = arith.mulf %521, %505 : vector<1x128xf32>
    %523 = arith.addf %519, %522 : vector<1x128xf32>
    %c29_125 = arith.constant 29 : index
    %524 = memref.load %arg4[%c29_125] : memref<100xf32, #tpu.memory_space<smem>>
    %525 = vector.broadcast %524 : f32 to vector<1x128xf32>
    %526 = arith.mulf %525, %508 : vector<1x128xf32>
    %527 = arith.addf %523, %526 : vector<1x128xf32>
    %528 = arith.addf %246, %527 : vector<1x128xf32>
    %c30_126 = arith.constant 30 : index
    %529 = memref.load %arg4[%c30_126] : memref<100xf32, #tpu.memory_space<smem>>
    %530 = vector.broadcast %529 : f32 to vector<1x128xf32>
    %531 = arith.mulf %530, %496 : vector<1x128xf32>
    %c31_127 = arith.constant 31 : index
    %532 = memref.load %arg4[%c31_127] : memref<100xf32, #tpu.memory_space<smem>>
    %533 = vector.broadcast %532 : f32 to vector<1x128xf32>
    %534 = arith.mulf %533, %499 : vector<1x128xf32>
    %535 = arith.addf %531, %534 : vector<1x128xf32>
    %c32 = arith.constant 32 : index
    %536 = memref.load %arg4[%c32] : memref<100xf32, #tpu.memory_space<smem>>
    %537 = vector.broadcast %536 : f32 to vector<1x128xf32>
    %538 = arith.mulf %537, %502 : vector<1x128xf32>
    %539 = arith.addf %535, %538 : vector<1x128xf32>
    %c33 = arith.constant 33 : index
    %540 = memref.load %arg4[%c33] : memref<100xf32, #tpu.memory_space<smem>>
    %541 = vector.broadcast %540 : f32 to vector<1x128xf32>
    %542 = arith.mulf %541, %505 : vector<1x128xf32>
    %543 = arith.addf %539, %542 : vector<1x128xf32>
    %c34 = arith.constant 34 : index
    %544 = memref.load %arg4[%c34] : memref<100xf32, #tpu.memory_space<smem>>
    %545 = vector.broadcast %544 : f32 to vector<1x128xf32>
    %546 = arith.mulf %545, %508 : vector<1x128xf32>
    %547 = arith.addf %543, %546 : vector<1x128xf32>
    %548 = arith.addf %265, %547 : vector<1x128xf32>
    %c35 = arith.constant 35 : index
    %549 = memref.load %arg4[%c35] : memref<100xf32, #tpu.memory_space<smem>>
    %550 = vector.broadcast %549 : f32 to vector<1x128xf32>
    %551 = arith.mulf %550, %496 : vector<1x128xf32>
    %c36 = arith.constant 36 : index
    %552 = memref.load %arg4[%c36] : memref<100xf32, #tpu.memory_space<smem>>
    %553 = vector.broadcast %552 : f32 to vector<1x128xf32>
    %554 = arith.mulf %553, %499 : vector<1x128xf32>
    %555 = arith.addf %551, %554 : vector<1x128xf32>
    %c37 = arith.constant 37 : index
    %556 = memref.load %arg4[%c37] : memref<100xf32, #tpu.memory_space<smem>>
    %557 = vector.broadcast %556 : f32 to vector<1x128xf32>
    %558 = arith.mulf %557, %502 : vector<1x128xf32>
    %559 = arith.addf %555, %558 : vector<1x128xf32>
    %c38 = arith.constant 38 : index
    %560 = memref.load %arg4[%c38] : memref<100xf32, #tpu.memory_space<smem>>
    %561 = vector.broadcast %560 : f32 to vector<1x128xf32>
    %562 = arith.mulf %561, %505 : vector<1x128xf32>
    %563 = arith.addf %559, %562 : vector<1x128xf32>
    %c39 = arith.constant 39 : index
    %564 = memref.load %arg4[%c39] : memref<100xf32, #tpu.memory_space<smem>>
    %565 = vector.broadcast %564 : f32 to vector<1x128xf32>
    %566 = arith.mulf %565, %508 : vector<1x128xf32>
    %567 = arith.addf %563, %566 : vector<1x128xf32>
    %568 = arith.addf %284, %567 : vector<1x128xf32>
    %c40 = arith.constant 40 : index
    %569 = memref.load %arg4[%c40] : memref<100xf32, #tpu.memory_space<smem>>
    %570 = vector.broadcast %569 : f32 to vector<1x128xf32>
    %571 = arith.mulf %570, %496 : vector<1x128xf32>
    %c41 = arith.constant 41 : index
    %572 = memref.load %arg4[%c41] : memref<100xf32, #tpu.memory_space<smem>>
    %573 = vector.broadcast %572 : f32 to vector<1x128xf32>
    %574 = arith.mulf %573, %499 : vector<1x128xf32>
    %575 = arith.addf %571, %574 : vector<1x128xf32>
    %c42 = arith.constant 42 : index
    %576 = memref.load %arg4[%c42] : memref<100xf32, #tpu.memory_space<smem>>
    %577 = vector.broadcast %576 : f32 to vector<1x128xf32>
    %578 = arith.mulf %577, %502 : vector<1x128xf32>
    %579 = arith.addf %575, %578 : vector<1x128xf32>
    %c43 = arith.constant 43 : index
    %580 = memref.load %arg4[%c43] : memref<100xf32, #tpu.memory_space<smem>>
    %581 = vector.broadcast %580 : f32 to vector<1x128xf32>
    %582 = arith.mulf %581, %505 : vector<1x128xf32>
    %583 = arith.addf %579, %582 : vector<1x128xf32>
    %c44 = arith.constant 44 : index
    %584 = memref.load %arg4[%c44] : memref<100xf32, #tpu.memory_space<smem>>
    %585 = vector.broadcast %584 : f32 to vector<1x128xf32>
    %586 = arith.mulf %585, %508 : vector<1x128xf32>
    %587 = arith.addf %583, %586 : vector<1x128xf32>
    %588 = arith.addf %303, %587 : vector<1x128xf32>
    %c45 = arith.constant 45 : index
    %589 = memref.load %arg4[%c45] : memref<100xf32, #tpu.memory_space<smem>>
    %590 = vector.broadcast %589 : f32 to vector<1x128xf32>
    %591 = arith.mulf %590, %496 : vector<1x128xf32>
    %c46 = arith.constant 46 : index
    %592 = memref.load %arg4[%c46] : memref<100xf32, #tpu.memory_space<smem>>
    %593 = vector.broadcast %592 : f32 to vector<1x128xf32>
    %594 = arith.mulf %593, %499 : vector<1x128xf32>
    %595 = arith.addf %591, %594 : vector<1x128xf32>
    %c47 = arith.constant 47 : index
    %596 = memref.load %arg4[%c47] : memref<100xf32, #tpu.memory_space<smem>>
    %597 = vector.broadcast %596 : f32 to vector<1x128xf32>
    %598 = arith.mulf %597, %502 : vector<1x128xf32>
    %599 = arith.addf %595, %598 : vector<1x128xf32>
    %c48 = arith.constant 48 : index
    %600 = memref.load %arg4[%c48] : memref<100xf32, #tpu.memory_space<smem>>
    %601 = vector.broadcast %600 : f32 to vector<1x128xf32>
    %602 = arith.mulf %601, %505 : vector<1x128xf32>
    %603 = arith.addf %599, %602 : vector<1x128xf32>
    %c49 = arith.constant 49 : index
    %604 = memref.load %arg4[%c49] : memref<100xf32, #tpu.memory_space<smem>>
    %605 = vector.broadcast %604 : f32 to vector<1x128xf32>
    %606 = arith.mulf %605, %508 : vector<1x128xf32>
    %607 = arith.addf %603, %606 : vector<1x128xf32>
    %608 = arith.addf %322, %607 : vector<1x128xf32>
    %c25_128 = arith.constant 25 : index
    %609 = memref.load %arg4[%c25_128] : memref<100xf32, #tpu.memory_space<smem>>
    %610 = vector.broadcast %609 : f32 to vector<16x128xf32>
    %611 = arith.mulf %610, %2 : vector<16x128xf32>
    %c26_129 = arith.constant 26 : index
    %612 = memref.load %arg4[%c26_129] : memref<100xf32, #tpu.memory_space<smem>>
    %613 = vector.broadcast %612 : f32 to vector<16x128xf32>
    %614 = arith.mulf %613, %5 : vector<16x128xf32>
    %615 = arith.addf %611, %614 : vector<16x128xf32>
    %c27_130 = arith.constant 27 : index
    %616 = memref.load %arg4[%c27_130] : memref<100xf32, #tpu.memory_space<smem>>
    %617 = vector.broadcast %616 : f32 to vector<16x128xf32>
    %618 = arith.mulf %617, %8 : vector<16x128xf32>
    %619 = arith.addf %615, %618 : vector<16x128xf32>
    %c28_131 = arith.constant 28 : index
    %620 = memref.load %arg4[%c28_131] : memref<100xf32, #tpu.memory_space<smem>>
    %621 = vector.broadcast %620 : f32 to vector<16x128xf32>
    %622 = arith.mulf %621, %11 : vector<16x128xf32>
    %623 = arith.addf %619, %622 : vector<16x128xf32>
    %c29_132 = arith.constant 29 : index
    %624 = memref.load %arg4[%c29_132] : memref<100xf32, #tpu.memory_space<smem>>
    %625 = vector.broadcast %624 : f32 to vector<16x128xf32>
    %626 = arith.mulf %625, %14 : vector<16x128xf32>
    %627 = arith.addf %623, %626 : vector<16x128xf32>
    %628 = arith.mulf %141, %627 : vector<16x128xf32>
    %629 = arith.addf %342, %628 : vector<16x128xf32>
    %c30_133 = arith.constant 30 : index
    %630 = memref.load %arg4[%c30_133] : memref<100xf32, #tpu.memory_space<smem>>
    %631 = vector.broadcast %630 : f32 to vector<16x128xf32>
    %632 = arith.mulf %631, %2 : vector<16x128xf32>
    %c31_134 = arith.constant 31 : index
    %633 = memref.load %arg4[%c31_134] : memref<100xf32, #tpu.memory_space<smem>>
    %634 = vector.broadcast %633 : f32 to vector<16x128xf32>
    %635 = arith.mulf %634, %5 : vector<16x128xf32>
    %636 = arith.addf %632, %635 : vector<16x128xf32>
    %c32_135 = arith.constant 32 : index
    %637 = memref.load %arg4[%c32_135] : memref<100xf32, #tpu.memory_space<smem>>
    %638 = vector.broadcast %637 : f32 to vector<16x128xf32>
    %639 = arith.mulf %638, %8 : vector<16x128xf32>
    %640 = arith.addf %636, %639 : vector<16x128xf32>
    %c33_136 = arith.constant 33 : index
    %641 = memref.load %arg4[%c33_136] : memref<100xf32, #tpu.memory_space<smem>>
    %642 = vector.broadcast %641 : f32 to vector<16x128xf32>
    %643 = arith.mulf %642, %11 : vector<16x128xf32>
    %644 = arith.addf %640, %643 : vector<16x128xf32>
    %c34_137 = arith.constant 34 : index
    %645 = memref.load %arg4[%c34_137] : memref<100xf32, #tpu.memory_space<smem>>
    %646 = vector.broadcast %645 : f32 to vector<16x128xf32>
    %647 = arith.mulf %646, %14 : vector<16x128xf32>
    %648 = arith.addf %644, %647 : vector<16x128xf32>
    %649 = arith.mulf %141, %648 : vector<16x128xf32>
    %650 = arith.addf %362, %649 : vector<16x128xf32>
    %c35_138 = arith.constant 35 : index
    %651 = memref.load %arg4[%c35_138] : memref<100xf32, #tpu.memory_space<smem>>
    %652 = vector.broadcast %651 : f32 to vector<16x128xf32>
    %653 = arith.mulf %652, %2 : vector<16x128xf32>
    %c36_139 = arith.constant 36 : index
    %654 = memref.load %arg4[%c36_139] : memref<100xf32, #tpu.memory_space<smem>>
    %655 = vector.broadcast %654 : f32 to vector<16x128xf32>
    %656 = arith.mulf %655, %5 : vector<16x128xf32>
    %657 = arith.addf %653, %656 : vector<16x128xf32>
    %c37_140 = arith.constant 37 : index
    %658 = memref.load %arg4[%c37_140] : memref<100xf32, #tpu.memory_space<smem>>
    %659 = vector.broadcast %658 : f32 to vector<16x128xf32>
    %660 = arith.mulf %659, %8 : vector<16x128xf32>
    %661 = arith.addf %657, %660 : vector<16x128xf32>
    %c38_141 = arith.constant 38 : index
    %662 = memref.load %arg4[%c38_141] : memref<100xf32, #tpu.memory_space<smem>>
    %663 = vector.broadcast %662 : f32 to vector<16x128xf32>
    %664 = arith.mulf %663, %11 : vector<16x128xf32>
    %665 = arith.addf %661, %664 : vector<16x128xf32>
    %c39_142 = arith.constant 39 : index
    %666 = memref.load %arg4[%c39_142] : memref<100xf32, #tpu.memory_space<smem>>
    %667 = vector.broadcast %666 : f32 to vector<16x128xf32>
    %668 = arith.mulf %667, %14 : vector<16x128xf32>
    %669 = arith.addf %665, %668 : vector<16x128xf32>
    %670 = arith.mulf %141, %669 : vector<16x128xf32>
    %671 = arith.addf %382, %670 : vector<16x128xf32>
    %c40_143 = arith.constant 40 : index
    %672 = memref.load %arg4[%c40_143] : memref<100xf32, #tpu.memory_space<smem>>
    %673 = vector.broadcast %672 : f32 to vector<16x128xf32>
    %674 = arith.mulf %673, %2 : vector<16x128xf32>
    %c41_144 = arith.constant 41 : index
    %675 = memref.load %arg4[%c41_144] : memref<100xf32, #tpu.memory_space<smem>>
    %676 = vector.broadcast %675 : f32 to vector<16x128xf32>
    %677 = arith.mulf %676, %5 : vector<16x128xf32>
    %678 = arith.addf %674, %677 : vector<16x128xf32>
    %c42_145 = arith.constant 42 : index
    %679 = memref.load %arg4[%c42_145] : memref<100xf32, #tpu.memory_space<smem>>
    %680 = vector.broadcast %679 : f32 to vector<16x128xf32>
    %681 = arith.mulf %680, %8 : vector<16x128xf32>
    %682 = arith.addf %678, %681 : vector<16x128xf32>
    %c43_146 = arith.constant 43 : index
    %683 = memref.load %arg4[%c43_146] : memref<100xf32, #tpu.memory_space<smem>>
    %684 = vector.broadcast %683 : f32 to vector<16x128xf32>
    %685 = arith.mulf %684, %11 : vector<16x128xf32>
    %686 = arith.addf %682, %685 : vector<16x128xf32>
    %c44_147 = arith.constant 44 : index
    %687 = memref.load %arg4[%c44_147] : memref<100xf32, #tpu.memory_space<smem>>
    %688 = vector.broadcast %687 : f32 to vector<16x128xf32>
    %689 = arith.mulf %688, %14 : vector<16x128xf32>
    %690 = arith.addf %686, %689 : vector<16x128xf32>
    %691 = arith.mulf %141, %690 : vector<16x128xf32>
    %692 = arith.addf %402, %691 : vector<16x128xf32>
    %c45_148 = arith.constant 45 : index
    %693 = memref.load %arg4[%c45_148] : memref<100xf32, #tpu.memory_space<smem>>
    %694 = vector.broadcast %693 : f32 to vector<16x128xf32>
    %695 = arith.mulf %694, %2 : vector<16x128xf32>
    %c46_149 = arith.constant 46 : index
    %696 = memref.load %arg4[%c46_149] : memref<100xf32, #tpu.memory_space<smem>>
    %697 = vector.broadcast %696 : f32 to vector<16x128xf32>
    %698 = arith.mulf %697, %5 : vector<16x128xf32>
    %699 = arith.addf %695, %698 : vector<16x128xf32>
    %c47_150 = arith.constant 47 : index
    %700 = memref.load %arg4[%c47_150] : memref<100xf32, #tpu.memory_space<smem>>
    %701 = vector.broadcast %700 : f32 to vector<16x128xf32>
    %702 = arith.mulf %701, %8 : vector<16x128xf32>
    %703 = arith.addf %699, %702 : vector<16x128xf32>
    %c48_151 = arith.constant 48 : index
    %704 = memref.load %arg4[%c48_151] : memref<100xf32, #tpu.memory_space<smem>>
    %705 = vector.broadcast %704 : f32 to vector<16x128xf32>
    %706 = arith.mulf %705, %11 : vector<16x128xf32>
    %707 = arith.addf %703, %706 : vector<16x128xf32>
    %c49_152 = arith.constant 49 : index
    %708 = memref.load %arg4[%c49_152] : memref<100xf32, #tpu.memory_space<smem>>
    %709 = vector.broadcast %708 : f32 to vector<16x128xf32>
    %710 = arith.mulf %709, %14 : vector<16x128xf32>
    %711 = arith.addf %707, %710 : vector<16x128xf32>
    %712 = arith.mulf %141, %711 : vector<16x128xf32>
    %713 = arith.addf %422, %712 : vector<16x128xf32>
    %714 = arith.addf %2, %629 : vector<16x128xf32>
    %715 = arith.addf %5, %650 : vector<16x128xf32>
    %716 = arith.addf %8, %671 : vector<16x128xf32>
    %717 = arith.addf %11, %692 : vector<16x128xf32>
    %718 = arith.addf %14, %713 : vector<16x128xf32>
    %719 = arith.addf %17, %528 : vector<1x128xf32>
    %720 = arith.addf %20, %548 : vector<1x128xf32>
    %721 = arith.addf %23, %568 : vector<1x128xf32>
    %722 = arith.addf %26, %588 : vector<1x128xf32>
    %723 = arith.addf %29, %608 : vector<1x128xf32>
    %c32_153 = arith.constant 32 : index
    %724 = memref.load %arg3[%c32_153] : memref<64xf32, #tpu.memory_space<smem>>
    %725 = vector.broadcast %724 : f32 to vector<1x128xf32>
    %726 = arith.mulf %725, %719 : vector<1x128xf32>
    %c36_154 = arith.constant 36 : index
    %727 = memref.load %arg3[%c36_154] : memref<64xf32, #tpu.memory_space<smem>>
    %728 = vector.broadcast %727 : f32 to vector<1x128xf32>
    %729 = arith.mulf %728, %720 : vector<1x128xf32>
    %730 = arith.addf %726, %729 : vector<1x128xf32>
    %c40_155 = arith.constant 40 : index
    %731 = memref.load %arg3[%c40_155] : memref<64xf32, #tpu.memory_space<smem>>
    %732 = vector.broadcast %731 : f32 to vector<1x128xf32>
    %733 = arith.mulf %732, %721 : vector<1x128xf32>
    %734 = arith.addf %730, %733 : vector<1x128xf32>
    %c44_156 = arith.constant 44 : index
    %735 = memref.load %arg3[%c44_156] : memref<64xf32, #tpu.memory_space<smem>>
    %736 = vector.broadcast %735 : f32 to vector<1x128xf32>
    %737 = arith.mulf %736, %722 : vector<1x128xf32>
    %738 = arith.addf %734, %737 : vector<1x128xf32>
    %c33_157 = arith.constant 33 : index
    %739 = memref.load %arg3[%c33_157] : memref<64xf32, #tpu.memory_space<smem>>
    %740 = vector.broadcast %739 : f32 to vector<1x128xf32>
    %741 = arith.mulf %740, %719 : vector<1x128xf32>
    %c37_158 = arith.constant 37 : index
    %742 = memref.load %arg3[%c37_158] : memref<64xf32, #tpu.memory_space<smem>>
    %743 = vector.broadcast %742 : f32 to vector<1x128xf32>
    %744 = arith.mulf %743, %720 : vector<1x128xf32>
    %745 = arith.addf %741, %744 : vector<1x128xf32>
    %c41_159 = arith.constant 41 : index
    %746 = memref.load %arg3[%c41_159] : memref<64xf32, #tpu.memory_space<smem>>
    %747 = vector.broadcast %746 : f32 to vector<1x128xf32>
    %748 = arith.mulf %747, %721 : vector<1x128xf32>
    %749 = arith.addf %745, %748 : vector<1x128xf32>
    %c45_160 = arith.constant 45 : index
    %750 = memref.load %arg3[%c45_160] : memref<64xf32, #tpu.memory_space<smem>>
    %751 = vector.broadcast %750 : f32 to vector<1x128xf32>
    %752 = arith.mulf %751, %722 : vector<1x128xf32>
    %753 = arith.addf %749, %752 : vector<1x128xf32>
    %c34_161 = arith.constant 34 : index
    %754 = memref.load %arg3[%c34_161] : memref<64xf32, #tpu.memory_space<smem>>
    %755 = vector.broadcast %754 : f32 to vector<1x128xf32>
    %756 = arith.mulf %755, %719 : vector<1x128xf32>
    %c38_162 = arith.constant 38 : index
    %757 = memref.load %arg3[%c38_162] : memref<64xf32, #tpu.memory_space<smem>>
    %758 = vector.broadcast %757 : f32 to vector<1x128xf32>
    %759 = arith.mulf %758, %720 : vector<1x128xf32>
    %760 = arith.addf %756, %759 : vector<1x128xf32>
    %c42_163 = arith.constant 42 : index
    %761 = memref.load %arg3[%c42_163] : memref<64xf32, #tpu.memory_space<smem>>
    %762 = vector.broadcast %761 : f32 to vector<1x128xf32>
    %763 = arith.mulf %762, %721 : vector<1x128xf32>
    %764 = arith.addf %760, %763 : vector<1x128xf32>
    %c46_164 = arith.constant 46 : index
    %765 = memref.load %arg3[%c46_164] : memref<64xf32, #tpu.memory_space<smem>>
    %766 = vector.broadcast %765 : f32 to vector<1x128xf32>
    %767 = arith.mulf %766, %722 : vector<1x128xf32>
    %768 = arith.addf %764, %767 : vector<1x128xf32>
    %c35_165 = arith.constant 35 : index
    %769 = memref.load %arg3[%c35_165] : memref<64xf32, #tpu.memory_space<smem>>
    %770 = vector.broadcast %769 : f32 to vector<1x128xf32>
    %771 = arith.mulf %770, %719 : vector<1x128xf32>
    %c39_166 = arith.constant 39 : index
    %772 = memref.load %arg3[%c39_166] : memref<64xf32, #tpu.memory_space<smem>>
    %773 = vector.broadcast %772 : f32 to vector<1x128xf32>
    %774 = arith.mulf %773, %720 : vector<1x128xf32>
    %775 = arith.addf %771, %774 : vector<1x128xf32>
    %c43_167 = arith.constant 43 : index
    %776 = memref.load %arg3[%c43_167] : memref<64xf32, #tpu.memory_space<smem>>
    %777 = vector.broadcast %776 : f32 to vector<1x128xf32>
    %778 = arith.mulf %777, %721 : vector<1x128xf32>
    %779 = arith.addf %775, %778 : vector<1x128xf32>
    %c47_168 = arith.constant 47 : index
    %780 = memref.load %arg3[%c47_168] : memref<64xf32, #tpu.memory_space<smem>>
    %781 = vector.broadcast %780 : f32 to vector<1x128xf32>
    %782 = arith.mulf %781, %722 : vector<1x128xf32>
    %783 = arith.addf %779, %782 : vector<1x128xf32>
    %784 = vector.broadcast %738 : vector<1x128xf32> to vector<16x128xf32>
    %785 = arith.mulf %784, %714 : vector<16x128xf32>
    %786 = vector.broadcast %753 : vector<1x128xf32> to vector<16x128xf32>
    %787 = arith.mulf %786, %715 : vector<16x128xf32>
    %788 = arith.addf %785, %787 : vector<16x128xf32>
    %789 = vector.broadcast %768 : vector<1x128xf32> to vector<16x128xf32>
    %790 = arith.mulf %789, %716 : vector<16x128xf32>
    %791 = arith.addf %788, %790 : vector<16x128xf32>
    %792 = vector.broadcast %783 : vector<1x128xf32> to vector<16x128xf32>
    %793 = arith.mulf %792, %717 : vector<16x128xf32>
    %794 = arith.addf %791, %793 : vector<16x128xf32>
    %795 = arith.mulf %794, %714 : vector<16x128xf32>
    %cst_169 = arith.constant dense<0.000000e+00> : vector<128xf32>
    %796 = vector.multi_reduction <add>, %795, %cst_169 [0] : vector<16x128xf32> to vector<128xf32>
    %797 = vector.shape_cast %796 : vector<128xf32> to vector<1x128xf32>
    %798 = arith.mulf %794, %715 : vector<16x128xf32>
    %cst_170 = arith.constant dense<0.000000e+00> : vector<128xf32>
    %799 = vector.multi_reduction <add>, %798, %cst_170 [0] : vector<16x128xf32> to vector<128xf32>
    %800 = vector.shape_cast %799 : vector<128xf32> to vector<1x128xf32>
    %801 = arith.mulf %794, %716 : vector<16x128xf32>
    %cst_171 = arith.constant dense<0.000000e+00> : vector<128xf32>
    %802 = vector.multi_reduction <add>, %801, %cst_171 [0] : vector<16x128xf32> to vector<128xf32>
    %803 = vector.shape_cast %802 : vector<128xf32> to vector<1x128xf32>
    %804 = arith.mulf %794, %717 : vector<16x128xf32>
    %cst_172 = arith.constant dense<0.000000e+00> : vector<128xf32>
    %805 = vector.multi_reduction <add>, %804, %cst_172 [0] : vector<16x128xf32> to vector<128xf32>
    %806 = vector.shape_cast %805 : vector<128xf32> to vector<1x128xf32>
    %807 = arith.mulf %794, %718 : vector<16x128xf32>
    %cst_173 = arith.constant dense<0.000000e+00> : vector<128xf32>
    %808 = vector.multi_reduction <add>, %807, %cst_173 [0] : vector<16x128xf32> to vector<128xf32>
    %809 = vector.shape_cast %808 : vector<128xf32> to vector<1x128xf32>
    %c70 = arith.constant 70 : index
    %810 = memref.load %arg4[%c70] : memref<100xf32, #tpu.memory_space<smem>>
    %811 = vector.broadcast %810 : f32 to vector<1x128xf32>
    %812 = arith.mulf %811, %797 : vector<1x128xf32>
    %c71 = arith.constant 71 : index
    %813 = memref.load %arg4[%c71] : memref<100xf32, #tpu.memory_space<smem>>
    %814 = vector.broadcast %813 : f32 to vector<1x128xf32>
    %815 = arith.mulf %814, %800 : vector<1x128xf32>
    %816 = arith.addf %812, %815 : vector<1x128xf32>
    %c72 = arith.constant 72 : index
    %817 = memref.load %arg4[%c72] : memref<100xf32, #tpu.memory_space<smem>>
    %818 = vector.broadcast %817 : f32 to vector<1x128xf32>
    %819 = arith.mulf %818, %803 : vector<1x128xf32>
    %820 = arith.addf %816, %819 : vector<1x128xf32>
    %c73 = arith.constant 73 : index
    %821 = memref.load %arg4[%c73] : memref<100xf32, #tpu.memory_space<smem>>
    %822 = vector.broadcast %821 : f32 to vector<1x128xf32>
    %823 = arith.mulf %822, %806 : vector<1x128xf32>
    %824 = arith.addf %820, %823 : vector<1x128xf32>
    %c74 = arith.constant 74 : index
    %825 = memref.load %arg4[%c74] : memref<100xf32, #tpu.memory_space<smem>>
    %826 = vector.broadcast %825 : f32 to vector<1x128xf32>
    %827 = arith.mulf %826, %809 : vector<1x128xf32>
    %828 = arith.addf %824, %827 : vector<1x128xf32>
    %c48_174 = arith.constant 48 : index
    %829 = memref.load %arg3[%c48_174] : memref<64xf32, #tpu.memory_space<smem>>
    %830 = vector.broadcast %829 : f32 to vector<1x128xf32>
    %831 = arith.mulf %830, %719 : vector<1x128xf32>
    %c52 = arith.constant 52 : index
    %832 = memref.load %arg3[%c52] : memref<64xf32, #tpu.memory_space<smem>>
    %833 = vector.broadcast %832 : f32 to vector<1x128xf32>
    %834 = arith.mulf %833, %720 : vector<1x128xf32>
    %835 = arith.addf %831, %834 : vector<1x128xf32>
    %c56 = arith.constant 56 : index
    %836 = memref.load %arg3[%c56] : memref<64xf32, #tpu.memory_space<smem>>
    %837 = vector.broadcast %836 : f32 to vector<1x128xf32>
    %838 = arith.mulf %837, %721 : vector<1x128xf32>
    %839 = arith.addf %835, %838 : vector<1x128xf32>
    %c60 = arith.constant 60 : index
    %840 = memref.load %arg3[%c60] : memref<64xf32, #tpu.memory_space<smem>>
    %841 = vector.broadcast %840 : f32 to vector<1x128xf32>
    %842 = arith.mulf %841, %722 : vector<1x128xf32>
    %843 = arith.addf %839, %842 : vector<1x128xf32>
    %c49_175 = arith.constant 49 : index
    %844 = memref.load %arg3[%c49_175] : memref<64xf32, #tpu.memory_space<smem>>
    %845 = vector.broadcast %844 : f32 to vector<1x128xf32>
    %846 = arith.mulf %845, %719 : vector<1x128xf32>
    %c53 = arith.constant 53 : index
    %847 = memref.load %arg3[%c53] : memref<64xf32, #tpu.memory_space<smem>>
    %848 = vector.broadcast %847 : f32 to vector<1x128xf32>
    %849 = arith.mulf %848, %720 : vector<1x128xf32>
    %850 = arith.addf %846, %849 : vector<1x128xf32>
    %c57 = arith.constant 57 : index
    %851 = memref.load %arg3[%c57] : memref<64xf32, #tpu.memory_space<smem>>
    %852 = vector.broadcast %851 : f32 to vector<1x128xf32>
    %853 = arith.mulf %852, %721 : vector<1x128xf32>
    %854 = arith.addf %850, %853 : vector<1x128xf32>
    %c61 = arith.constant 61 : index
    %855 = memref.load %arg3[%c61] : memref<64xf32, #tpu.memory_space<smem>>
    %856 = vector.broadcast %855 : f32 to vector<1x128xf32>
    %857 = arith.mulf %856, %722 : vector<1x128xf32>
    %858 = arith.addf %854, %857 : vector<1x128xf32>
    %c50 = arith.constant 50 : index
    %859 = memref.load %arg3[%c50] : memref<64xf32, #tpu.memory_space<smem>>
    %860 = vector.broadcast %859 : f32 to vector<1x128xf32>
    %861 = arith.mulf %860, %719 : vector<1x128xf32>
    %c54 = arith.constant 54 : index
    %862 = memref.load %arg3[%c54] : memref<64xf32, #tpu.memory_space<smem>>
    %863 = vector.broadcast %862 : f32 to vector<1x128xf32>
    %864 = arith.mulf %863, %720 : vector<1x128xf32>
    %865 = arith.addf %861, %864 : vector<1x128xf32>
    %c58 = arith.constant 58 : index
    %866 = memref.load %arg3[%c58] : memref<64xf32, #tpu.memory_space<smem>>
    %867 = vector.broadcast %866 : f32 to vector<1x128xf32>
    %868 = arith.mulf %867, %721 : vector<1x128xf32>
    %869 = arith.addf %865, %868 : vector<1x128xf32>
    %c62 = arith.constant 62 : index
    %870 = memref.load %arg3[%c62] : memref<64xf32, #tpu.memory_space<smem>>
    %871 = vector.broadcast %870 : f32 to vector<1x128xf32>
    %872 = arith.mulf %871, %722 : vector<1x128xf32>
    %873 = arith.addf %869, %872 : vector<1x128xf32>
    %c51 = arith.constant 51 : index
    %874 = memref.load %arg3[%c51] : memref<64xf32, #tpu.memory_space<smem>>
    %875 = vector.broadcast %874 : f32 to vector<1x128xf32>
    %876 = arith.mulf %875, %719 : vector<1x128xf32>
    %c55 = arith.constant 55 : index
    %877 = memref.load %arg3[%c55] : memref<64xf32, #tpu.memory_space<smem>>
    %878 = vector.broadcast %877 : f32 to vector<1x128xf32>
    %879 = arith.mulf %878, %720 : vector<1x128xf32>
    %880 = arith.addf %876, %879 : vector<1x128xf32>
    %c59 = arith.constant 59 : index
    %881 = memref.load %arg3[%c59] : memref<64xf32, #tpu.memory_space<smem>>
    %882 = vector.broadcast %881 : f32 to vector<1x128xf32>
    %883 = arith.mulf %882, %721 : vector<1x128xf32>
    %884 = arith.addf %880, %883 : vector<1x128xf32>
    %c63 = arith.constant 63 : index
    %885 = memref.load %arg3[%c63] : memref<64xf32, #tpu.memory_space<smem>>
    %886 = vector.broadcast %885 : f32 to vector<1x128xf32>
    %887 = arith.mulf %886, %722 : vector<1x128xf32>
    %888 = arith.addf %884, %887 : vector<1x128xf32>
    %889 = vector.broadcast %843 : vector<1x128xf32> to vector<16x128xf32>
    %890 = arith.mulf %889, %714 : vector<16x128xf32>
    %891 = vector.broadcast %858 : vector<1x128xf32> to vector<16x128xf32>
    %892 = arith.mulf %891, %715 : vector<16x128xf32>
    %893 = arith.addf %890, %892 : vector<16x128xf32>
    %894 = vector.broadcast %873 : vector<1x128xf32> to vector<16x128xf32>
    %895 = arith.mulf %894, %716 : vector<16x128xf32>
    %896 = arith.addf %893, %895 : vector<16x128xf32>
    %897 = vector.broadcast %888 : vector<1x128xf32> to vector<16x128xf32>
    %898 = arith.mulf %897, %717 : vector<16x128xf32>
    %899 = arith.addf %896, %898 : vector<16x128xf32>
    %900 = arith.mulf %899, %714 : vector<16x128xf32>
    %cst_176 = arith.constant dense<0.000000e+00> : vector<128xf32>
    %901 = vector.multi_reduction <add>, %900, %cst_176 [0] : vector<16x128xf32> to vector<128xf32>
    %902 = vector.shape_cast %901 : vector<128xf32> to vector<1x128xf32>
    %903 = arith.mulf %899, %715 : vector<16x128xf32>
    %cst_177 = arith.constant dense<0.000000e+00> : vector<128xf32>
    %904 = vector.multi_reduction <add>, %903, %cst_177 [0] : vector<16x128xf32> to vector<128xf32>
    %905 = vector.shape_cast %904 : vector<128xf32> to vector<1x128xf32>
    %906 = arith.mulf %899, %716 : vector<16x128xf32>
    %cst_178 = arith.constant dense<0.000000e+00> : vector<128xf32>
    %907 = vector.multi_reduction <add>, %906, %cst_178 [0] : vector<16x128xf32> to vector<128xf32>
    %908 = vector.shape_cast %907 : vector<128xf32> to vector<1x128xf32>
    %909 = arith.mulf %899, %717 : vector<16x128xf32>
    %cst_179 = arith.constant dense<0.000000e+00> : vector<128xf32>
    %910 = vector.multi_reduction <add>, %909, %cst_179 [0] : vector<16x128xf32> to vector<128xf32>
    %911 = vector.shape_cast %910 : vector<128xf32> to vector<1x128xf32>
    %912 = arith.mulf %899, %718 : vector<16x128xf32>
    %cst_180 = arith.constant dense<0.000000e+00> : vector<128xf32>
    %913 = vector.multi_reduction <add>, %912, %cst_180 [0] : vector<16x128xf32> to vector<128xf32>
    %914 = vector.shape_cast %913 : vector<128xf32> to vector<1x128xf32>
    %c95 = arith.constant 95 : index
    %915 = memref.load %arg4[%c95] : memref<100xf32, #tpu.memory_space<smem>>
    %916 = vector.broadcast %915 : f32 to vector<1x128xf32>
    %917 = arith.mulf %916, %902 : vector<1x128xf32>
    %c96 = arith.constant 96 : index
    %918 = memref.load %arg4[%c96] : memref<100xf32, #tpu.memory_space<smem>>
    %919 = vector.broadcast %918 : f32 to vector<1x128xf32>
    %920 = arith.mulf %919, %905 : vector<1x128xf32>
    %921 = arith.addf %917, %920 : vector<1x128xf32>
    %c97 = arith.constant 97 : index
    %922 = memref.load %arg4[%c97] : memref<100xf32, #tpu.memory_space<smem>>
    %923 = vector.broadcast %922 : f32 to vector<1x128xf32>
    %924 = arith.mulf %923, %908 : vector<1x128xf32>
    %925 = arith.addf %921, %924 : vector<1x128xf32>
    %c98 = arith.constant 98 : index
    %926 = memref.load %arg4[%c98] : memref<100xf32, #tpu.memory_space<smem>>
    %927 = vector.broadcast %926 : f32 to vector<1x128xf32>
    %928 = arith.mulf %927, %911 : vector<1x128xf32>
    %929 = arith.addf %925, %928 : vector<1x128xf32>
    %c99 = arith.constant 99 : index
    %930 = memref.load %arg4[%c99] : memref<100xf32, #tpu.memory_space<smem>>
    %931 = vector.broadcast %930 : f32 to vector<1x128xf32>
    %932 = arith.mulf %931, %914 : vector<1x128xf32>
    %933 = arith.addf %929, %932 : vector<1x128xf32>
    %934 = arith.addf %828, %933 : vector<1x128xf32>
    %935 = arith.addf %723, %934 : vector<1x128xf32>
    %936 = arith.index_cast %c0_i32 : i32 to index
    %c0_181 = arith.constant 0 : index
    %c0_182 = arith.constant 0 : index
    %937 = vector.load %arg5[%936, %c0_181, %c0_182] : memref<1x1x128xf32, #tpu.memory_space<vmem>>, vector<1x1x128xf32>
    %938 = vector.shape_cast %937 : vector<1x1x128xf32> to vector<1x128xf32>
    %939 = vector.shape_cast %935 : vector<1x128xf32> to vector<1x1x128xf32>
    tpu.vector_store %arg5[%936, %c0_181, %c0_182], %939 {strides = array<i32>} : memref<1x1x128xf32, #tpu.memory_space<vmem>>, vector<1x1x128xf32>,
    %c1_i32 = arith.constant 1 : i32
    return
  }
  func.func @transform_0(%arg0: i32) -> (i32, i32, i32, i32) {
    %c0_i32 = arith.constant 0 : i32
    %c0_i32_0 = arith.constant 0 : i32
    %c0_i32_1 = arith.constant 0 : i32
    %c0_i32_2 = arith.constant 0 : i32
    return %c0_i32, %arg0, %c0_i32_0, %c0_i32_1 : i32, i32, i32, i32
  }
  func.func @transform_1(%arg0: i32) -> (i32, i32, i32, i32) {
    %c0_i32 = arith.constant 0 : i32
    %c0_i32_0 = arith.constant 0 : i32
    %c0_i32_1 = arith.constant 0 : i32
    %c0_i32_2 = arith.constant 0 : i32
    return %c0_i32, %arg0, %c0_i32_0, %c0_i32_1 : i32, i32, i32, i32
  }
  func.func @transform_2(%arg0: i32) -> i32 {
    %c0_i32 = arith.constant 0 : i32
    %c0_i32_0 = arith.constant 0 : i32
    return %c0_i32 : i32
  }
  func.func @transform_3(%arg0: i32) -> i32 {
    %c0_i32 = arith.constant 0 : i32
    %c0_i32_0 = arith.constant 0 : i32
    return %c0_i32 : i32
  }
  func.func @transform_4(%arg0: i32) -> (i32, i32, i32) {
    %c0_i32 = arith.constant 0 : i32
    %c0_i32_0 = arith.constant 0 : i32
    %c0_i32_1 = arith.constant 0 : i32
    return %arg0, %c0_i32, %c0_i32_0 : i32, i32, i32
  }
}

</mosaic_0001>

<bundles_post_ra>
// kernel: tpu_custom_call.1
= control target key start
LH: loop header
LB: loop body
LE: loop exit
PB: predicated region body
PF: predicated region fallthrough
CT: control target
= control target key end

     0   :  { %9 = vsyncpa [#allocation3], 0  ;;  %s2851_s0 = inlined_call_operand.hbm [shape: f32[5,1,16,128], index: 0, kind: input, shape index: {}]   ;;  %s2852_s1 = inlined_call_operand.hbm [shape: f32[5,1,1,128], index: 1, kind: input, shape index: {}]   ;;  %s2853_s2 = inlined_call_operand.vmem [shape: f32[64], index: 2, kind: input, shape index: {}]   ;;  %s2854_s3 = inlined_call_operand.vmem [shape: f32[100], index: 3, kind: input, shape index: {}]   ;;  %s2855_s4 = inlined_call_operand.hbm [shape: f32[1,1,128], index: 4, kind: output, shape index: {}]  }
   0x1   :  { %10 = vsyncpa [#allocation7], 0 }
   0x2   :  { %11 = vsyncpa [#allocation5], 0 }
   0x3   :  { %12 = vsyncpa [#allocation10], 0 }
   0x4   :  { %13 = vsyncpa [#allocation4], 0  ;;  %s18_s17 = sshll.u32 %s2851_s0, 4  ;;  %s1474_s18 = smov [#allocation2]   ;;  %s19_s17 = int_to_ptr.hbm [resolvable:$true] %s18_s17 }
   0x5   :  { %s20_s19 = sshll.u32 %s1474_s18, 4  ;;  %s31_s22 = sshll.u32 %s2852_s1, 4  ;;  %s21_s19 = int_to_ptr.vmem [resolvable:$true] %s20_s19  ;;  %s32_s22 = int_to_ptr.hbm [resolvable:$true] %s31_s22 }
   0x6   :  { %s1475_s23 = smov 128   ;;  %s1476_s24 = smov 8  }
   0x7   :  { %26 = dma.hbm_to_vmem [thread:$0]  %s19_s17, 1280, %s21_s19, [#allocation3], %s1475_s23, %s1475_s23, %s1476_s24  }
   0x8   :  { %s1477_s25 = smov [#allocation6]   ;;  %s1478_s27 = smov 16  }
   0x9   :  { %s33_s26 = sshll.u32 %s1477_s25, 4  ;;  %s1479_s28 = smov 1   ;;  %s34_s26 = int_to_ptr.vmem [resolvable:$true] %s33_s26 }
   0xa   :  { %39 = dma.hbm_to_vmem [thread:$0]  %s32_s22, 80, %s34_s26, [#allocation7], %s1478_s27, %s1478_s27, %s1479_s28  }
   0xb   :  { %s45_s30 = sshll.u32 %s2853_s2, 4  ;;  %s54_s7 = sshll.u32 %s2854_s3, 4  ;;  %s46_s30 = int_to_ptr.vmem [resolvable:$true] %s45_s30  ;;  %s55_s7 = int_to_ptr.vmem [resolvable:$true] %s54_s7 }
   0xc   :  { %s1480_s1 = smov [#allocation8]   ;;  %s1481_s8 = smov [#allocation9]  }
   0xd   :  { %48 = dma.vmem_to_smem %s46_s30, 16, %s1480_s1, [#allocation5]  }
   0xe   :  { %57 = dma.vmem_to_smem %s55_s7, 16, %s1481_s8, [#allocation10]  }
   0xf   :  { %1464 = dma.done.wait [#allocation3], 1280  }
  0x10   :  { %1465 = vsyncadd [#allocation3], 4294966016 }
  0x11   :  { %1466 = dma.done.wait [#allocation7], 80  }
  0x12   :  { %1467 = vsyncadd [#allocation7], 4294967216 }
  0x13   :  { %1468 = dma.done.wait [#allocation5], 16  }
  0x14   :  { %1469 = vsyncadd [#allocation5], 4294967280 }
  0x15   :  { %1470 = dma.done.wait [#allocation10], 16  }
  0x16   :  { %1471 = vsyncadd [#allocation10], 4294967280 }
  0x17   :  { %74 = sfence }
  0x18   :  { %s118_s2 = sld [smem:[#allocation8]]  ;;  %v1527_v0 = vld [vmem:[#allocation2] sm:$0xff]  ;;  %v1531_v1 = vld [vmem:[#allocation6] sm:$0x1]  ;;  %v1533_v2 = vld [vmem:[#allocation6 + $0x1] sm:$0x1] }
  0x19   :  { %s1520_s9 = sld [smem:[#allocation8 + $0x1]]  ;;  %v1535_v5 = vld [vmem:[#allocation2 + $0x8] sm:$0xff]  ;;  %v1537_v6 = vld [vmem:[#allocation2 + $0x10] sm:$0xff]  ;;  %v1539_v7 = vld [vmem:[#allocation2 + $0x18] sm:$0xff]  ;;  %v1543_v8 = vmul.f32 %v1527_v0, %v1527_v0 }
  0x1a   :  { %s1224_s10 = sld [smem:[#allocation8 + $0x4]]  ;;  %v1549_v9 = vmul.f32 %v1535_v5, %v1535_v5  ;;  %v1553_v10 = vmul.f32 %v1537_v6, %v1527_v0  ;;  %v1557_v11 = vmul.f32 %v1539_v7, %v1535_v5  ;;  %v1565_v15 = vld [vmem:[#allocation2 + $0x20] sm:$0xff]  ;;  %v1567_v16 = vld [vmem:[#allocation6 + $0x2] sm:$0x1]  ;;  %v1580_v21 = vld [vmem:[#allocation2 + $0x28] sm:$0xff]  ;;  %v1636_v55 = vmul.f32 %v1537_v6, %v1537_v6 }
  0x1b   :  { %s1522_s3 = sld [smem:[#allocation8 + $0x8]]  ;;  %v1574_v18 = vmul.f32 %v1565_v15, %v1527_v0  ;;  %v1591_v26 = vmul.f32 %v1580_v21, %v1535_v5  ;;  %v1595_v30 = vld [vmem:[#allocation6 + $0x3] sm:$0x1]  ;;  %v1618_v46 = vld [vmem:[#allocation2 + $0x38] sm:$0xff]  ;;  %v1640_v56 = vmul.f32 %v1539_v7, %v1539_v7 }
  0x1c   :  { %s1524_s11 = sld [smem:[#allocation8 + $0x2]]  ;;  %v1611_v41 = vld [vmem:[#allocation2 + $0x30] sm:$0xff]  ;;  %v1628_v51 = vmul.f32 %v1618_v46, %v1535_v5 }
  0x1d   :  { %s1529_s13 = sld [smem:[#allocation8 + $0xc]]  ;;  %v1622_v47 = vmul.f32 %v1611_v41, %v1527_v0 }
  0x1e   :  { %v119_v3 = vstv %s118_s2  ;;  %s1229_s14 = sld [smem:[#allocation8 + $0x5]] }
  0x1f   :  { %s1545_s15 = sld [smem:[#allocation8 + $0x6]]  ;;  %v258_v13 = vmul.f32 %v119_v3, %v1531_v1  ;;  %v120_v19 = vmul.f32 %v119_v3, %v1543_v8  ;;  %v268_v20 = vstv %s1520_s9  ;;  %v121_v22 = vmul.f32 %v119_v3, %v1549_v9 }
  0x20   :  { %s124_s12 = sadd.f32 %s1224_s10, %s1520_s9  ;;  %v259_v4 = vstv %s1224_s10  ;;  %v269_v33 = vmul.f32 %v268_v20, %v1531_v1 }
  0x21   :  { %s1559_s16 = sld [smem:[#allocation8 + $0x3]]  ;;  %v260_v14 = vmul.f32 %v259_v4, %v1533_v2  ;;  %v262_v17 = vstv %s1522_s3 }
  0x22   :  { %v125_v12 = vstv %s124_s12  ;;  %s1561_s17 = sld [smem:[#allocation8 + $0x9]]  ;;  %v263_v28 = vmul.f32 %v262_v17, %v1567_v16  ;;  %v278_v29 = vstv %s1524_s11 }
  0x23   :  { %s132_s18 = sadd.f32 %s1522_s3, %s1524_s11  ;;  %v126_v23 = vmul.f32 %v125_v12, %v1553_v10  ;;  %v127_v24 = vmul.f32 %v125_v12, %v1557_v11  ;;  %v261_v27 = vadd.f32 %v260_v14, %v258_v13  ;;  %v265_v32 = vstv %s1529_s13 }
  0x24   :  { %s1577_s19 = sld [smem:[#allocation8 + $0x7]]  ;;  %v1585_v25 = vstv %s1229_s14  ;;  %v279_v39 = vmul.f32 %v278_v29, %v1531_v1  ;;  %v266_v45 = vmul.f32 %v265_v32, %v1595_v30 }
  0x25   :  { %s1587_s20 = sld [smem:[#allocation8 + $0xd]]  ;;  %v133_v31 = vstv %s132_s18  ;;  %v270_v34 = vmul.f32 %v1585_v25, %v1533_v2  ;;  %v280_v36 = vstv %s1545_s15  ;;  %v128_v37 = vadd.f32 %v126_v23, %v120_v19 }
  0x26   :  { %s1234_s21 = sld [smem:[#allocation8 + $0xa]]  ;;  %v129_v38 = vadd.f32 %v127_v24, %v121_v22  ;;  %v281_v40 = vmul.f32 %v280_v36, %v1533_v2  ;;  %v134_v42 = vmul.f32 %v133_v31, %v1574_v18  ;;  %v135_v43 = vmul.f32 %v133_v31, %v1591_v26 }
  0x27   :  { %s140_s22 = sadd.f32 %s1529_s13, %s1559_s16  ;;  %v264_v44 = vadd.f32 %v263_v28, %v261_v27  ;;  %v271_v48 = vadd.f32 %v270_v34, %v269_v33  ;;  %v288_v50 = vstv %s1559_s16  ;;  %v148_v33 = vmul.f32 %v1585_v25, %v1636_v55 }
  0x28   :  { %s1601_s23 = sld [smem:[#allocation8 + $0xb]]  ;;  %v272_v35 = vstv %s1561_s17  ;;  %v282_v58 = vadd.f32 %v281_v40, %v279_v39  ;;  %v136_v59 = vadd.f32 %v134_v42, %v128_v37  ;;  %v137_v60 = vadd.f32 %v135_v43, %v129_v38 }
  0x29   :  { %s1607_s24 = sld [smem:[#allocation8 + $0xe]]  ;;  %v273_v49 = vmul.f32 %v272_v35, %v1567_v16  ;;  %v141_v57 = vstv %s140_s22  ;;  %v267_v61 = vadd.f32 %v266_v45, %v264_v44  ;;  %v289_v62 = vmul.f32 %v288_v50, %v1531_v1 }
  0x2a   :  { %s1615_s25 = sld [smem:[#allocation8 + $0xf]]  ;;  %v290_v54 = vstv %s1577_s19  ;;  %v142_v13 = vmul.f32 %v141_v57, %v1622_v47  ;;  %v143_v14 = vmul.f32 %v141_v57, %v1628_v51  ;;  %v149_v34 = vmul.f32 %v1585_v25, %v1640_v56 }
  0x2b   :  { %v275_v53 = vstv %s1587_s20  ;;  %s1642_s26 = sld [smem:[#allocation8 + $0x11]]  ;;  %v274_v63 = vadd.f32 %v273_v49, %v271_v48  ;;  %v291_v12 = vmul.f32 %v290_v54, %v1533_v2  ;;  %v299_v23 = vperm.slane %v267_v61, 0 }
  0x2c   :  { %v1630_v52 = vstv %s1234_s21  ;;  %s1644_s27 = sld [smem:[#allocation8 + $0x14]]  ;;  %v276_v3 = vmul.f32 %v275_v53, %v1595_v30  ;;  %v144_v31 = vadd.f32 %v142_v13, %v136_v59  ;;  %v145_v32 = vadd.f32 %v143_v14, %v137_v60 }
  0x2d   :  { %s154_s28 = sadd.f32 %s1561_s17, %s1545_s15  ;;  %v283_v4 = vmul.f32 %v1630_v52, %v1567_v16  ;;  %v292_v28 = vadd.f32 %v291_v12, %v289_v62  ;;  %v1676_v35 = vmul.f32 %v1565_v15, %v1537_v6  ;;  %v1680_v36 = vmul.f32 %v1580_v21, %v1539_v7 }
  0x2e   :  { %s1655_s29 = sld [smem:[#allocation8 + $0x10]]  ;;  %v293_v19 = vstv %s1601_s23  ;;  %v277_v24 = vadd.f32 %v276_v3, %v274_v63  ;;  %v1686_v38 = vmul.f32 %v1611_v41, %v1537_v6  ;;  %v1694_v42 = vmul.f32 %v1618_v46, %v1539_v7 }
  0x2f   :  { %v285_v17 = vstv %s1607_s24  ;;  %s1659_s0 = sld [smem:[#allocation8 + $0x12]]  ;;  %v284_v20 = vadd.f32 %v283_v4, %v282_v58  ;;  %v294_v29 = vmul.f32 %v293_v19, %v1567_v16  ;;  %v155_v39 = vstv %s154_s28 }
  0x30   :  { %v1662_v22 = vstv %s1615_s25  ;;  %s1664_s30 = sld [smem:[#allocation8 + $0x18]]  ;;  %v286_v27 = vmul.f32 %v285_v17, %v1595_v30  ;;  %v1698_v43 = vmul.f32 %v1565_v15, %v1565_v15  ;;  %v301_v44 = vmul.f32 %v299_v23, %v1527_v0 }
  0x31   :  { %s162_s6 = sadd.f32 %s1587_s20, %s1577_s19  ;;  %v295_v25 = vadd.f32 %v294_v29, %v292_v28  ;;  %v296_v40 = vmul.f32 %v1662_v22, %v1595_v30  ;;  %v304_v45 = vperm.slane %v277_v24, 0  ;;  %v150_v48 = vadd.f32 %v148_v33, %v144_v31 }
  0x32   :  { %s194_s5 = sadd.f32 %s1644_s27, %s1642_s26  ;;  %v287_v37 = vadd.f32 %v286_v27, %v284_v20  ;;  %v151_v49 = vadd.f32 %v149_v34, %v145_v32  ;;  %v156_v54 = vmul.f32 %v155_v39, %v1676_v35  ;;  %v157_v57 = vmul.f32 %v155_v39, %v1680_v36 }
  0x33   :  { %s1688_s7 = sld [smem:[#allocation8 + $0x13]]  ;;  %v302_v58 = vmul.f32 %v299_v23, %v1535_v5  ;;  %v306_v59 = vmul.f32 %v304_v45, %v1537_v6  ;;  %v297_v61 = vadd.f32 %v296_v40, %v295_v25  ;;  %v307_v62 = vmul.f32 %v304_v45, %v1539_v7 }
  0x34   :  { %s1700_s1 = sld [smem:[#allocation8 + $0x1c]]  ;;  %v195_v50 = vstv %s194_s5  ;;  %v311_v53 = vperm.slane %v287_v37, 0  ;;  %v1710_v60 = vstv %s1655_s29  ;;  %v163_v3 = vstv %s162_s6 }
  0x35   :  { %v190_v4 = vmul.f32 %v1710_v60, %v1543_v8  ;;  %v196_v12 = vmul.f32 %v195_v50, %v1553_v10  ;;  %v308_v13 = vadd.f32 %v306_v59, %v301_v44  ;;  %v191_v14 = vmul.f32 %v1710_v60, %v1549_v9  ;;  %s1729_s9 = sld [smem:[#allocation8 + $0x15]] }
  0x36   :  { %s202_s8 = sadd.f32 %s1664_s30, %s1659_s0  ;;  %v313_v63 = vmul.f32 %v311_v53, %v1565_v15  ;;  %v197_v17 = vmul.f32 %v195_v50, %v1557_v11  ;;  %v314_v20 = vmul.f32 %v311_v53, %v1580_v21  ;;  %v1723_v23 = vmul.f32 %v1580_v21, %v1580_v21 }
  0x37   :  { %v158_v24 = vadd.f32 %v156_v54, %v150_v48  ;;  %v159_v27 = vadd.f32 %v157_v57, %v151_v49  ;;  %v309_v28 = vadd.f32 %v307_v62, %v302_v58  ;;  %v164_v8 = vmul.f32 %v163_v3, %v1686_v38  ;;  %s1736_s10 = sld [smem:[#allocation8 + $0x16]] }
  0x38   :  { %v203_v19 = vstv %s202_s8  ;;  %v165_v10 = vmul.f32 %v163_v3, %v1694_v42  ;;  %v315_v9 = vadd.f32 %v313_v63, %v308_v13  ;;  %v318_v11 = vperm.slane %v297_v61, 0  ;;  %s1739_s3 = sld [smem:[#allocation8 + $0x19]]  ;;  %v1782_v13 = vld [vmem:[#allocation2 + $0x40] sm:$0xff] }
  0x39   :  { %v1733_v29 = vmul.f32 %v1611_v41, %v1611_v41  ;;  %v198_v31 = vadd.f32 %v196_v12, %v190_v4  ;;  %v204_v32 = vmul.f32 %v203_v19, %v1574_v18  ;;  %v199_v33 = vadd.f32 %v197_v17, %v191_v14  ;;  %s176_s11 = sadd.f32 %s1607_s24, %s1601_s23  ;;  %v1784_v14 = vld [vmem:[#allocation2 + $0x48] sm:$0xff] }
  0x3a   :  { %s210_s2 = sadd.f32 %s1700_s1, %s1688_s7  ;;  %v205_v34 = vmul.f32 %v203_v19, %v1591_v26  ;;  %v316_v37 = vadd.f32 %v314_v20, %v309_v28  ;;  %v320_v39 = vmul.f32 %v318_v11, %v1611_v41  ;;  %v1744_v25 = vmul.f32 %v1618_v46, %v1618_v46 }
  0x3b   :  { %v170_v40 = vmul.f32 %v1630_v52, %v1698_v43  ;;  %v321_v18 = vmul.f32 %v318_v11, %v1618_v46  ;;  %v166_v45 = vadd.f32 %v164_v8, %v158_v24  ;;  %v167_v48 = vadd.f32 %v165_v10, %v159_v27  ;;  %s1761_s12 = sld [smem:[#allocation8 + $0x17]] }
  0x3c   :  { %v211_v44 = vstv %s210_s2  ;;  %v171_v26 = vmul.f32 %v1630_v52, %v1723_v23  ;;  %v322_v49 = vadd.f32 %v320_v39, %v315_v9  ;;  %v1755_v50 = vmul.f32 %v1611_v41, %v1565_v15  ;;  %s1765_s13 = sld [smem:[#allocation8 + $0x1d]] }
  0x3d   :  { %v1759_v53 = vmul.f32 %v1618_v46, %v1580_v21  ;;  %v206_v54 = vadd.f32 %v204_v32, %v198_v31  ;;  %v207_v57 = vadd.f32 %v205_v34, %v199_v33  ;;  %v212_v58 = vmul.f32 %v211_v44, %v1622_v47  ;;  %s1771_s14 = sld [smem:[#allocation8 + $0x1a]] }
  0x3e   :  { %v213_v52 = vmul.f32 %v211_v44, %v1628_v51  ;;  %v323_v59 = vadd.f32 %v321_v18, %v316_v37  ;;  %v177_v61 = vstv %s176_s11  ;;  %v1769_v62 = vmul.f32 %v1662_v22, %v1733_v29  ;;  %s224_s15 = sadd.f32 %s1739_s3, %s1736_s10 }
  0x3f   :  { %v324_v63 = vmul.f32 %v322_v49, %v1527_v0  ;;  %v333_v3 = vmul.f32 %v322_v49, %v1537_v6  ;;  %v172_v4 = vadd.f32 %v170_v40, %v166_v45  ;;  %v173_v12 = vadd.f32 %v171_v26, %v167_v48  ;;  %s1789_s16 = sld [smem:[#allocation8 + $0x1b]] }
  0x40   :  { %v1777_v47 = vmul.f32 %v1662_v22, %v1744_v25  ;;  %v325_v51 = vmul.f32 %v323_v59, %v1535_v5  ;;  %v1787_v17 = vstv %s1729_s9  ;;  %v334_v19 = vmul.f32 %v323_v59, %v1539_v7  ;;  %s1798_s17 = sld [smem:[#allocation8 + $0x1e]] }
  0x41   :  { %v342_v20 = vmul.f32 %v322_v49, %v1565_v15  ;;  %v351_v22 = vmul.f32 %v322_v49, %v1611_v41  ;;  %v214_v24 = vadd.f32 %v212_v58, %v206_v54  ;;  %v215_v27 = vadd.f32 %v213_v52, %v207_v57  ;;  %s1800_s18 = sld [smem:[#allocation8 + $0x1f]] }
  0x42   :  { %v218_v28 = vmul.f32 %v1787_v17, %v1636_v55  ;;  %v219_v8 = vmul.f32 %v1787_v17, %v1640_v56  ;;  %v326_v10 = vadd.f32 %v325_v51, %v324_v63  ;;  %v335_v9 = vadd.f32 %v334_v19, %v333_v3  ;;  %s232_s19 = sadd.f32 %s1765_s13, %s1761_s12 }
  0x43   :  { %v343_v11 = vmul.f32 %v323_v59, %v1580_v21  ;;  %v352_v31 = vmul.f32 %v323_v59, %v1618_v46  ;;  %v178_v32 = vmul.f32 %v177_v61, %v1755_v50  ;;  %v225_v33 = vstv %s224_s15  ;;  %s1809_s20 = sld [smem:[#allocation9]] }
  0x44   :  { %v360_v34 = vmul.f32 %v322_v49, %v1782_v13  ;;  %v361_v55 = vmul.f32 %v323_v59, %v1784_v14  ;;  %v327_v37 = vrot.slane %v326_v10, 4  ;;  %v336_v56 = vrot.slane %v335_v9, 4  ;;  %s1812_s21 = sld [smem:[#allocation9 + $0x1]] }
  0x45   :  { %v344_v39 = vadd.f32 %v343_v11, %v342_v20  ;;  %v353_v40 = vadd.f32 %v352_v31, %v351_v22  ;;  %v179_v44 = vmul.f32 %v177_v61, %v1759_v53  ;;  %v220_v18 = vadd.f32 %v218_v28, %v214_v24  ;;  %s1814_s22 = sld [smem:[#allocation9 + $0x2]] }
  0x46   :  { %v221_v45 = vadd.f32 %v219_v8, %v215_v27  ;;  %v362_v48 = vadd.f32 %v361_v55, %v360_v34  ;;  %v328_v26 = vadd.f32 %v327_v37, %v326_v10  ;;  %v337_v54 = vadd.f32 %v336_v56, %v335_v9  ;;  %s1818_s23 = sld [smem:[#allocation9 + $0x5]] }
  0x47   :  { %v345_v49 = vrot.slane %v344_v39, 4  ;;  %v354_v57 = vrot.slane %v353_v40, 4  ;;  %v226_v58 = vmul.f32 %v225_v33, %v1676_v35  ;;  %v227_v52 = vmul.f32 %v225_v33, %v1680_v36  ;;  %s1820_s24 = sld [smem:[#allocation9 + $0x6]] }
  0x48   :  { %v233_v59 = vstv %s232_s19  ;;  %v363_v61 = vrot.slane %v362_v48, 4  ;;  %v329_v63 = vrot.slane %v328_v26, 2  ;;  %v338_v3 = vrot.slane %v337_v54, 2  ;;  %s246_s25 = sadd.f32 %s1798_s17, %s1789_s16 }
  0x49   :  { %v346_v51 = vadd.f32 %v345_v49, %v344_v39  ;;  %v355_v19 = vadd.f32 %v354_v57, %v353_v40  ;;  %v180_v20 = vadd.f32 %v178_v32, %v172_v4  ;;  %v181_v22 = vadd.f32 %v179_v44, %v173_v12  ;;  %s1825_s28 = sld [smem:[#allocation9 + $0x3]] }
  0x4a   :  { %v364_v24 = vadd.f32 %v363_v61, %v362_v48  ;;  %v565_v27 = vstv %s1644_s27  ;;  %v330_v28 = vadd.f32 %v329_v63, %v328_v26  ;;  %v339_v35 = vadd.f32 %v338_v3, %v337_v54  ;;  %s1828_s29 = sld [smem:[#allocation9 + $0x7]] }
  0x4b   :  { %v347_v8 = vrot.slane %v346_v51, 2  ;;  %v356_v36 = vrot.slane %v355_v19, 2  ;;  %v228_v10 = vadd.f32 %v226_v58, %v220_v18  ;;  %v229_v9 = vadd.f32 %v227_v52, %v221_v45  ;;  %s1833_s27 = sld [smem:[#allocation9 + $0xa]] }
  0x4c   :  { %v234_v11 = vmul.f32 %v233_v59, %v1686_v38  ;;  %v564_v4 = vmul.f32 %v1710_v60, %v1531_v1  ;;  %v235_v12 = vmul.f32 %v233_v59, %v1694_v42  ;;  %v331_v31 = vrot.slane %v330_v28, 1  ;;  %s1838_s5 = sld [smem:[#allocation9 + $0xb]] }
  0x4d   :  { %v340_v32 = vrot.slane %v339_v35, 1  ;;  %v348_v33 = vadd.f32 %v347_v8, %v346_v51  ;;  %v1836_v34 = vstv %s1771_s14  ;;  %v365_v55 = vrot.slane %v364_v24, 2  ;;  %s1846_s6 = sld [smem:[#allocation9 + $0x4]] }
  0x4e   :  { %v566_v38 = vmul.f32 %v565_v27, %v1533_v2  ;;  %v568_v37 = vstv %s1664_s30  ;;  %v1842_v60 = vadd.f32 %v331_v31, %v330_v28  ;;  %v357_v39 = vadd.f32 %v356_v36, %v355_v19  ;;  %s1858_s30 = sld [smem:[#allocation9 + $0x8]] }
  0x4f   :  { %v1844_v42 = vadd.f32 %v340_v32, %v339_v35  ;;  %v349_v56 = vrot.slane %v348_v33, 1  ;;  %v240_v40 = vmul.f32 %v1836_v34, %v1698_v43  ;;  %v241_v44 = vmul.f32 %v1836_v34, %v1723_v23  ;;  %s1866_s8 = sld [smem:[#allocation9 + $0x9]] }
  0x50   :  { %2875 = vst [vmem:[#allocation17_spill] sm:$0xff] %v1842_v60  ;;  %v1853_v18 = vstv %s1809_s20  ;;  %v1856_v45 = vstv %s1812_s21  ;;  %v236_v48 = vadd.f32 %v234_v11, %v228_v10  ;;  %v237_v26 = vadd.f32 %v235_v12, %v229_v9  ;;  %s1877_s2 = sld [smem:[#allocation9 + $0xc]] }
  0x51   :  { %2876 = vst [vmem:[#allocation18_spill] sm:$0xff] %v1844_v42  ;;  %v1861_v54 = vstv %s1818_s23  ;;  %v1864_v49 = vstv %s1820_s24  ;;  %v1869_v43 = vadd.f32 %v1769_v62, %v180_v20  ;;  %v1872_v23 = vadd.f32 %v1777_v47, %v181_v22  ;;  %s1885_s9 = sld [smem:[#allocation9 + $0xd]] }
  0x52   :  { %v247_v57 = vstv %s246_s25  ;;  %v366_v58 = vadd.f32 %v365_v55, %v364_v24  ;;  %v1879_v52 = vadd.f32 %v349_v56, %v348_v33  ;;  %v358_v59 = vrot.slane %v357_v39, 1  ;;  %s1894_s11 = sld [smem:[#allocation9 + $0xf]] }
  0x53   :  { %2877 = vst [vmem:[#allocation19_spill] sm:$0xff] %v1869_v43  ;;  %v371_v61 = vmul.f32 %v1853_v18, %v1842_v60  ;;  %v374_v62 = vmul.f32 %v1856_v45, %v1844_v42  ;;  %v1888_v47 = vstv %s1814_s22  ;;  %v390_v63 = vmul.f32 %v1861_v54, %v1842_v60  ;;  %s1902_s14 = sld [smem:[#allocation9 + $0x10]] }
  0x54   :  { %2878 = vst [vmem:[#allocation20_spill] sm:$0xff] %v1872_v23  ;;  %v393_v3 = vmul.f32 %v1864_v49, %v1844_v42  ;;  %v1897_v51 = vmul.f32 %v568_v37, %v1567_v16  ;;  %v242_v19 = vadd.f32 %v240_v40, %v236_v48  ;;  %v243_v20 = vadd.f32 %v241_v44, %v237_v26  ;;  %s1918_s15 = sld [smem:[#allocation9 + $0xe]] }
  0x55   :  { %2879 = vst [vmem:[#allocation21_spill] sm:$0xff] %v1879_v52  ;;  %v1900_v22 = vstv %s1828_s29  ;;  %v1904_v24 = vadd.f32 %v566_v38, %v564_v4  ;;  %v248_v27 = vmul.f32 %v247_v57, %v1755_v50  ;;  %v249_v28 = vmul.f32 %v247_v57, %v1759_v53  ;;  %s1928_s19 = sld [smem:[#allocation9 + $0x11]] }
  0x56   :  { %v1909_v35 = vstv %s1833_s27  ;;  %v1912_v8 = vstv %s1838_s5  ;;  %v1914_v36 = vadd.f32 %v358_v59, %v357_v39  ;;  %v367_v10 = vrot.slane %v366_v58, 1  ;;  %s1953_s20 = sld [smem:[#allocation9 + $0x13]] }
  0x57   :  { %v375_v9 = vadd.f32 %v374_v62, %v371_v61  ;;  %v378_v11 = vmul.f32 %v1888_v47, %v1879_v52  ;;  %v1921_v4 = vstv %s1800_s18  ;;  %v1924_v12 = vstv %s1825_s28  ;;  %s1939_s18 = sld [smem:[#allocation9 + $0x12]] }
  0x58   :  { %2880 = vst [vmem:[#allocation22_spill] sm:$0xff] %v1914_v36  ;;  %v394_v50 = vadd.f32 %v393_v3, %v390_v63  ;;  %v397_v53 = vmul.f32 %v1900_v22, %v1879_v52  ;;  %v254_v31 = vmul.f32 %v1921_v4, %v1733_v29  ;;  %v1933_v32 = vstv %s1858_s30  ;;  %s1971_s21 = sld [smem:[#allocation9 + $0x14]] }
  0x59   :  { %v409_v33 = vmul.f32 %v1909_v35, %v1842_v60  ;;  %v412_v55 = vmul.f32 %v1912_v8, %v1844_v42  ;;  %v250_v38 = vadd.f32 %v248_v27, %v242_v19  ;;  %v251_v37 = vadd.f32 %v249_v28, %v243_v20  ;;  %s1975_s22 = sld [smem:[#allocation9 + $0x15]] }
  0x5a   :  { %v255_v56 = vmul.f32 %v1921_v4, %v1744_v25  ;;  %v1944_v29 = vstv %s1877_s2  ;;  %v1946_v39 = vadd.f32 %v367_v10, %v366_v58  ;;  %v379_v40 = vadd.f32 %v378_v11, %v375_v9  ;;  %s2002_s23 = sld [smem:[#allocation9 + $0x16]] }
  0x5b   :  { %v382_v44 = vmul.f32 %v1924_v12, %v1914_v36  ;;  %v1951_v48 = vstv %s1846_s6  ;;  %v398_v26 = vadd.f32 %v397_v53, %v394_v50  ;;  %v401_v57 = vmul.f32 %v1933_v32, %v1914_v36  ;;  %s2010_s24 = sld [smem:[#allocation9 + $0x17]] }
  0x5c   :  { %2881 = vst [vmem:[#allocation23_spill] sm:$0xff] %v1946_v39  ;;  %v1958_v59 = vstv %s1866_s8  ;;  %v1961_v25 = vstv %s1885_s9  ;;  %v413_v61 = vadd.f32 %v412_v55, %v409_v33  ;;  %v416_v58 = vmul.f32 %v1944_v29, %v1879_v52  ;;  %s2058_s25 = sld [smem:[#allocation9 + $0x18]] }
  0x5d   :  { %v1966_v62 = vstv %s1894_s11  ;;  %v1969_v63 = vstv %s1902_s14  ;;  %v1973_v3 = vadd.f32 %v254_v31, %v250_v38  ;;  %v464_v19 = vmul.f32 %v1853_v18, %v1527_v0  ;;  %s2284_s28 = sld [smem:[#allocation9 + $0x23]] }
  0x5e   :  { %v465_v20 = vmul.f32 %v1853_v18, %v1535_v5  ;;  %v466_v27 = vmul.f32 %v1856_v45, %v1537_v6  ;;  %v383_v28 = vadd.f32 %v382_v44, %v379_v40  ;;  %v386_v10 = vmul.f32 %v1951_v48, %v1946_v39  ;;  %s2286_s29 = sld [smem:[#allocation9 + $0x24]] }
  0x5f   :  { %2882 = vst [vmem:[#allocation24_spill] sm:$0xff] %v1973_v3  ;;  %v405_v9 = vmul.f32 %v1958_v59, %v1946_v39  ;;  %v1988_v11 = vstv %s1918_s15  ;;  %v402_v50 = vadd.f32 %v401_v57, %v398_v26  ;;  %v420_v53 = vmul.f32 %v1961_v25, %v1914_v36  ;;  %s2295_s27 = sld [smem:[#allocation9 + $0x25]] }
  0x60   :  { %v428_v18 = vmul.f32 %v1966_v62, %v1842_v60  ;;  %v431_v31 = vmul.f32 %v1969_v63, %v1844_v42  ;;  %v417_v33 = vadd.f32 %v416_v58, %v413_v61  ;;  %v1997_v55 = vstv %s1928_s19  ;;  %s2297_s5 = sld [smem:[#allocation9 + $0x26]] }
  0x61   :  { %v2000_v38 = vstv %s1939_s18  ;;  %v467_v40 = vmul.f32 %v1856_v45, %v1539_v7  ;;  %v2006_v44 = vadd.f32 %v255_v56, %v251_v37  ;;  %v424_v26 = vmul.f32 %v1988_v11, %v1946_v39  ;;  %s2306_s6 = sld [smem:[#allocation9 + $0x27]] }
  0x62   :  { %v468_v57 = vadd.f32 %v466_v27, %v464_v19  ;;  %v470_v61 = vmul.f32 %v1888_v47, %v1565_v15  ;;  %v2014_v58 = vadd.f32 %v386_v10, %v383_v28  ;;  %v2017_v42 = vstv %s1953_s20  ;;  %s2308_s30 = sld [smem:[#allocation9 + $0x28]] }
  0x63   :  { %2883 = vst [vmem:[#allocation25_spill] sm:$0xff] %v2006_v44  ;;  %v484_v60 = vmul.f32 %v1861_v54, %v1527_v0  ;;  %v486_v45 = vmul.f32 %v1864_v49, %v1537_v6  ;;  %v2023_v37 = vadd.f32 %v405_v9, %v402_v50  ;;  %v432_v56 = vadd.f32 %v431_v31, %v428_v18  ;;  %s2317_s8 = sld [smem:[#allocation9 + $0x29]] }
  0x64   :  { %2884 = vst [vmem:[#allocation26_spill] sm:$0xff] %v2014_v58  ;;  %v435_v44 = vmul.f32 %v1997_v55, %v1879_v52  ;;  %v439_v19 = vmul.f32 %v2000_v38, %v1914_v36  ;;  %v421_v27 = vadd.f32 %v420_v53, %v417_v33  ;;  %v2030_v28 = vstv %s1971_s21  ;;  %s2322_s2 = sld [smem:[#allocation9 + $0x2a]] }
  0x65   :  { %2885 = vst [vmem:[#allocation27_spill] sm:$0xff] %v2023_v37  ;;  %v469_v10 = vadd.f32 %v467_v40, %v465_v20  ;;  %v471_v58 = vmul.f32 %v1888_v47, %v1580_v21  ;;  %v443_v3 = vmul.f32 %v2017_v42, %v1946_v39  ;;  %v2037_v9 = vstv %s1975_s22  ;;  %s2324_s9 = sld [smem:[#allocation9 + $0x2b]] }
  0x66   :  { %2886 = vst [vmem:[#allocation28_spill] sm:$0xff] %v2030_v28  ;;  %v472_v50 = vadd.f32 %v470_v61, %v468_v57  ;;  %v474_v18 = vmul.f32 %v1924_v12, %v1611_v41  ;;  %v485_v53 = vmul.f32 %v1861_v54, %v1535_v5  ;;  %v487_v31 = vmul.f32 %v1864_v49, %v1539_v7  ;;  %s2330_s11 = sld [smem:[#allocation9 + $0x2c]] }
  0x67   :  { %2887 = vst [vmem:[#allocation29_spill] sm:$0xff] %v2037_v9  ;;  %v488_v20 = vadd.f32 %v486_v45, %v484_v60  ;;  %v490_v47 = vmul.f32 %v1900_v22, %v1565_v15  ;;  %v504_v33 = vmul.f32 %v1909_v35, %v1527_v0  ;;  %v505_v40 = vmul.f32 %v1909_v35, %v1535_v5  ;;  %s2342_s14 = sld [smem:[#allocation9 + $0x2d]] }
  0x68   :  { %v506_v57 = vmul.f32 %v1912_v8, %v1537_v6  ;;  %v507_v61 = vmul.f32 %v1912_v8, %v1539_v7  ;;  %v436_v54 = vadd.f32 %v435_v44, %v432_v56  ;;  %v2056_v39 = vstv %s2002_s23  ;;  %s2350_s15 = sld [smem:[#allocation9 + $0x2e]] }
  0x69   :  { %2888 = vst [vmem:[#allocation30_spill] sm:$0xff] %v2056_v39  ;;  %v473_v60 = vadd.f32 %v471_v58, %v469_v10  ;;  %v475_v49 = vmul.f32 %v1924_v12, %v1618_v46  ;;  %v2062_v45 = vadd.f32 %v424_v26, %v421_v27  ;;  %v2065_v36 = vstv %s2010_s24  ;;  %s2359_s19 = sld [smem:[#allocation9 + $0x2f]] }
  0x6a   :  { %2890 = vst [vmem:[#allocation32_spill] sm:$0xff] %v2065_v36  ;;  %v478_v35 = vmul.f32 %v1951_v48, %v1782_v13  ;;  %v491_v52 = vmul.f32 %v1900_v22, %v1580_v21  ;;  %v476_v8 = vadd.f32 %v474_v18, %v472_v50  ;;  %v489_v44 = vadd.f32 %v487_v31, %v485_v53  ;;  %s2363_s18 = sld [smem:[#allocation9 + $0x30]] }
  0x6b   :  { %2889 = vst [vmem:[#allocation31_spill] sm:$0xff] %v2062_v45  ;;  %v492_v56 = vadd.f32 %v490_v47, %v488_v20  ;;  %v494_v37 = vmul.f32 %v1933_v32, %v1611_v41  ;;  %v508_v58 = vadd.f32 %v506_v57, %v504_v33  ;;  %v509_v10 = vadd.f32 %v507_v61, %v505_v40  ;;  %s2375_s20 = sld [smem:[#allocation9 + $0x31]] }
  0x6c   :  { %v510_v12 = vmul.f32 %v1944_v29, %v1565_v15  ;;  %v511_v26 = vmul.f32 %v1944_v29, %v1580_v21  ;;  %v440_v27 = vadd.f32 %v439_v19, %v436_v54  ;;  %v477_v45 = vadd.f32 %v475_v49, %v473_v60  ;;  %s2521_s21 = sld [smem:[#allocation8 + $0x20]] }
  0x6d   :  { %v479_v22 = vmul.f32 %v1951_v48, %v1784_v14  ;;  %v495_v50 = vmul.f32 %v1933_v32, %v1618_v46  ;;  %v524_v18 = vmul.f32 %v1966_v62, %v1527_v0  ;;  %v525_v53 = vmul.f32 %v1966_v62, %v1535_v5  ;;  %s2523_s22 = sld [smem:[#allocation8 + $0x24]] }
  0x6e   :  { %v526_v31 = vmul.f32 %v1969_v63, %v1537_v6  ;;  %v527_v29 = vmul.f32 %v1969_v63, %v1539_v7  ;;  %v480_v19 = vadd.f32 %v478_v35, %v476_v8  ;;  %v493_v20 = vadd.f32 %v491_v52, %v489_v44  ;;  %s2535_s23 = sld [smem:[#allocation8 + $0x28]] }
  0x6f   :  { %v496_v47 = vadd.f32 %v494_v37, %v492_v56  ;;  %v498_v48 = vmul.f32 %v1958_v59, %v1782_v13  ;;  %v512_v33 = vadd.f32 %v510_v12, %v508_v58  ;;  %v513_v32 = vadd.f32 %v511_v26, %v509_v10  ;;  %s2541_s24 = sld [smem:[#allocation8 + $0x2c]] }
  0x70   :  { %v514_v40 = vmul.f32 %v1961_v25, %v1611_v41  ;;  %v515_v62 = vmul.f32 %v1961_v25, %v1618_v46  ;;  %v2095_v57 = vadd.f32 %v443_v3, %v440_v27  ;;  %v2098_v61 = vstv %s2058_s25  ;;  %s2547_s25 = sld [smem:[#allocation8 + $0x21]] }
  0x71   :  { %2891 = vst [vmem:[#allocation33_spill] sm:$0xff] %v2098_v61  ;;  %v2100_v54 = vadd.f32 %v479_v22, %v477_v45  ;;  %v2104_v52 = vmul.f32 %v1958_v59, %v1784_v14  ;;  %v528_v63 = vadd.f32 %v526_v31, %v524_v18  ;;  %v529_v37 = vadd.f32 %v527_v29, %v525_v53 }
  0x72   :  { %v530_v60 = vmul.f32 %v1997_v55, %v1565_v15  ;;  %v531_v49 = vmul.f32 %v1997_v55, %v1580_v21  ;;  %v2111_v25 = vmul.f32 %v480_v19, %v1869_v43  ;;  %v2113_v3 = vadd.f32 %v495_v50, %v493_v20 }
  0x73   :  { %v2115_v45 = vadd.f32 %v498_v48, %v496_v47  ;;  %v2119_v59 = vmul.f32 %v1988_v11, %v1782_v13  ;;  %v2121_v35 = vadd.f32 %v514_v40, %v512_v33  ;;  %v2123_v8 = vadd.f32 %v515_v62, %v513_v32 }
  0x74   :  { %v2127_v44 = vmul.f32 %v1988_v11, %v1784_v14  ;;  %v534_v55 = vmul.f32 %v2000_v38, %v1611_v41  ;;  %v535_v56 = vmul.f32 %v2000_v38, %v1618_v46  ;;  %v2135_v58 = vmul.f32 %v2017_v42, %v1782_v13 }
  0x75   :  { %v2139_v10 = vmul.f32 %v2017_v42, %v1784_v14  ;;  %v544_v11 = vmul.f32 %v2030_v28, %v1527_v0  ;;  %v532_v12 = vadd.f32 %v530_v60, %v528_v63  ;;  %v533_v26 = vadd.f32 %v531_v49, %v529_v37 }
  0x76   :  { %v571_v27 = vstv %s1700_s1  ;;  %v574_v22 = vstv %s1642_s26  ;;  %v545_v38 = vmul.f32 %v2030_v28, %v1535_v5  ;;  %v570_v50 = vadd.f32 %v1897_v51, %v1904_v24  ;;  %s2183_s26 = sld [smem:[#allocation9 + $0x19]] }
  0x77   :  { %v572_v18 = vmul.f32 %v571_v27, %v1595_v30  ;;  %v575_v42 = vmul.f32 %v574_v22, %v1531_v1  ;;  %v546_v53 = vmul.f32 %v2037_v9, %v1537_v6  ;;  %v547_v31 = vmul.f32 %v2037_v9, %v1539_v7  ;;  %s2201_s1 = sld [smem:[#allocation9 + $0x1c]] }
  0x78   :  { %v576_v29 = vmul.f32 %v1787_v17, %v1533_v2  ;;  %v578_v19 = vstv %s1739_s3  ;;  %v550_v20 = vmul.f32 %v2056_v39, %v1565_v15  ;;  %v581_v24 = vstv %s1765_s13  ;;  %s2240_s3 = sld [smem:[#allocation9 + $0x1e]] }
  0x79   :  { %v579_v51 = vmul.f32 %v578_v19, %v1567_v16  ;;  %v584_v47 = vstv %s1659_s0  ;;  %v536_v48 = vadd.f32 %v534_v55, %v532_v12  ;;  %v537_v33 = vadd.f32 %v535_v56, %v533_v26  ;;  %s2187_s0 = sld [smem:[#allocation9 + $0x1a]] }
  0x7a   :  { %v577_v32 = vadd.f32 %v576_v29, %v575_v42  ;;  %v582_v40 = vmul.f32 %v581_v24, %v1595_v30  ;;  %v573_v62 = vadd.f32 %v572_v18, %v570_v50  ;;  %v585_v63 = vmul.f32 %v584_v47, %v1531_v1  ;;  %s2260_s13 = sld [smem:[#allocation9 + $0x20]] }
  0x7b   :  { %v586_v17 = vstv %s1736_s10  ;;  %v591_v37 = vstv %s1798_s17  ;;  %v548_v60 = vadd.f32 %v546_v53, %v544_v11  ;;  %v589_v22 = vmul.f32 %v1836_v34, %v1567_v16  ;;  %s2225_s10 = sld [smem:[#allocation9 + $0x1d]] }
  0x7c   :  { %v580_v49 = vadd.f32 %v579_v51, %v577_v32  ;;  %v587_v27 = vmul.f32 %v586_v17, %v1533_v2  ;;  %v592_v19 = vmul.f32 %v591_v37, %v1595_v30  ;;  %v594_v9 = vstv %s1688_s7  ;;  %s2191_s7 = sld [smem:[#allocation9 + $0x1b]] }
  0x7d   :  { %v596_v55 = vstv %s1761_s12  ;;  %v599_v56 = vstv %s1789_s16  ;;  %v595_v50 = vmul.f32 %v594_v9, %v1531_v1  ;;  %v551_v11 = vmul.f32 %v2056_v39, %v1580_v21  ;;  %s2246_s12 = sld [smem:[#allocation9 + $0x1f]] }
  0x7e   :  { %v583_v12 = vadd.f32 %v582_v40, %v580_v49  ;;  %v588_v26 = vadd.f32 %v587_v27, %v585_v63  ;;  %v597_v18 = vmul.f32 %v596_v55, %v1533_v2  ;;  %v554_v42 = vmul.f32 %v2065_v36, %v1611_v41  ;;  %s2274_s16 = sld [smem:[#allocation9 + $0x21]] }
  0x7f   :  { %v600_v53 = vmul.f32 %v599_v56, %v1567_v16  ;;  %v605_v34 = vperm.slane %v573_v62, 0  ;;  %v602_v24 = vmul.f32 %v1921_v4, %v1595_v30  ;;  %v549_v1 = vadd.f32 %v547_v31, %v545_v38  ;;  %s2280_s17 = sld [smem:[#allocation9 + $0x22]] }
  0x80   :  { %v590_v29 = vadd.f32 %v589_v22, %v588_v26  ;;  %v598_v51 = vadd.f32 %v597_v18, %v595_v50  ;;  %v610_v47 = vperm.slane %v583_v12, 0  ;;  %v552_v9 = vadd.f32 %v550_v20, %v548_v60 }
  0x81   :  { %v607_v2 = vmul.f32 %v605_v34, %v1527_v0  ;;  %v608_v32 = vmul.f32 %v605_v34, %v1535_v5  ;;  %v501_v30 = vadd.f32 %v2104_v52, %v2113_v3  ;;  %v520_v4 = vadd.f32 %v2119_v59, %v2121_v35 }
  0x82   :  { %v593_v40 = vadd.f32 %v592_v19, %v590_v29  ;;  %v601_v63 = vadd.f32 %v600_v53, %v598_v51  ;;  %v612_v16 = vmul.f32 %v610_v47, %v1537_v6  ;;  %v613_v62 = vmul.f32 %v610_v47, %v1539_v7  ;;  %v2262_v53 = vld [vmem:[#allocation2] sm:$0xff]  ;;  %v2265_v29 = vld [vmem:[#allocation2 + $0x8] sm:$0xff] }
  0x83   :  { %v521_v0 = vadd.f32 %v2127_v44, %v2123_v8  ;;  %v555_v5 = vmul.f32 %v2065_v36, %v1618_v46  ;;  %v540_v20 = vadd.f32 %v2135_v58, %v536_v48  ;;  %v541_v17 = vadd.f32 %v2139_v10, %v537_v33 }
  0x84   :  { %v603_v38 = vadd.f32 %v602_v24, %v601_v63  ;;  %v614_v6 = vadd.f32 %v612_v16, %v607_v2  ;;  %v615_v31 = vadd.f32 %v613_v62, %v608_v32  ;;  %v617_v7 = vperm.slane %v593_v40, 0  ;;  %v2268_v24 = vld [vmem:[#allocation2 + $0x10] sm:$0xff] }
  0x85   :  { %v553_v52 = vadd.f32 %v551_v11, %v549_v1  ;;  %v558_v3 = vmul.f32 %v2098_v61, %v1782_v13  ;;  %v556_v59 = vadd.f32 %v554_v42, %v552_v9  ;;  %v2211_v37 = vmul.f32 %v2100_v54, %v1872_v23  ;;  %v2271_v1 = vld [vmem:[#allocation2 + $0x18] sm:$0xff] }
  0x86   :  { %v619_v35 = vmul.f32 %v617_v7, %v1565_v15  ;;  %v620_v8 = vmul.f32 %v617_v7, %v1580_v21  ;;  %v624_v44 = vperm.slane %v603_v38, 0  ;;  %v2215_v60 = vmul.f32 %v2115_v45, %v1869_v43 }
  0x87   :  { %v2218_v58 = vmul.f32 %v501_v30, %v1872_v23  ;;  %v2221_v10 = vmul.f32 %v520_v4, %v1869_v43  ;;  %v2228_v45 = vmul.f32 %v521_v0, %v1872_v23  ;;  %v2231_v27 = vmul.f32 %v540_v20, %v1869_v43 }
  0x88   :  { %v621_v48 = vadd.f32 %v619_v35, %v614_v6  ;;  %v622_v33 = vadd.f32 %v620_v8, %v615_v31  ;;  %v626_v49 = vmul.f32 %v624_v44, %v1611_v41  ;;  %v627_v54 = vmul.f32 %v624_v44, %v1618_v46 }
  0x89   :  { %2892 = vst [vmem:[#allocation34_spill] sm:$0xff] %v2231_v27  ;;  %v2234_v22 = vmul.f32 %v541_v17, %v1872_v23  ;;  %v2238_v19 = vmul.f32 %v2098_v61, %v1784_v14  ;;  %v2242_v55 = vadd.f32 %v555_v5, %v553_v52  ;;  %v2244_v56 = vadd.f32 %v558_v3, %v556_v59 }
  0x8a   :  { %v628_v12 = vadd.f32 %v626_v49, %v621_v48  ;;  %v629_v26 = vadd.f32 %v627_v54, %v622_v33  ;;  %v2249_v50 = vstv %s2183_s26  ;;  %v2252_v18 = vstv %s2187_s0  ;;  %v2310_v33 = vld [vmem:[#allocation2 + $0x20] sm:$0xff]  ;;  %s2555_s26 = sld [smem:[#allocation8 + $0x25]] }
  0x8b   :  { %2893 = vst [vmem:[#allocation35_spill] sm:$0xff] %v2234_v22  ;;  %v2255_v11 = vstv %s2191_s7  ;;  %v2258_v42 = vstv %s2201_s1  ;;  %v2293_v6 = vstv %s2225_s10  ;;  %v776_v20 = vmul.f32 %v2265_v29, %v2249_v50  ;;  %v2903_v22 = vld [vmem:[#allocation25_spill] sm:$0xff]  ;;  %s2561_s0 = sld [smem:[#allocation8 + $0x29]] }
  0x8c   :  { %2894 = vst [vmem:[#allocation36_spill] sm:$0xff] %v2238_v19  ;;  %v630_v34 = vmul.f32 %v2262_v53, %v628_v12  ;;  %v631_v51 = vmul.f32 %v2265_v29, %v629_v26  ;;  %v639_v47 = vmul.f32 %v2268_v24, %v628_v12  ;;  %v640_v9 = vmul.f32 %v2271_v1, %v629_v26  ;;  %s2567_s7 = sld [smem:[#allocation8 + $0x2d]] }
  0x8d   :  { %2895 = vst [vmem:[#allocation37_spill] sm:$0xff] %v2242_v55  ;;  %v648_v2 = vmul.f32 %v628_v12, %v1565_v15  ;;  %v649_v32 = vmul.f32 %v629_v26, %v1580_v21  ;;  %v657_v40 = vmul.f32 %v628_v12, %v1611_v41  ;;  %v658_v63 = vmul.f32 %v629_v26, %v1618_v46  ;;  %s2573_s1 = sld [smem:[#allocation8 + $0x22]] }
  0x8e   :  { %2896 = vst [vmem:[#allocation38_spill] sm:$0xff] %v2244_v56  ;;  %v632_v16 = vadd.f32 %v631_v51, %v630_v34  ;;  %v641_v62 = vadd.f32 %v640_v9, %v639_v47  ;;  %v666_v30 = vmul.f32 %v628_v12, %v1782_v13  ;;  %v667_v4 = vmul.f32 %v629_v26, %v1784_v14  ;;  %s2585_s10 = sld [smem:[#allocation8 + $0x26]] }
  0x8f   :  { %v650_v0 = vadd.f32 %v649_v32, %v648_v2  ;;  %v659_v5 = vadd.f32 %v658_v63, %v657_v40  ;;  %v775_v15 = vmul.f32 %v2262_v53, %v2249_v50  ;;  %v777_v21 = vmul.f32 %v2268_v24, %v2252_v18 }
  0x90   :  { %v633_v41 = vrot.slane %v632_v16, 4  ;;  %v642_v46 = vrot.slane %v641_v62, 4  ;;  %v668_v38 = vadd.f32 %v667_v4, %v666_v30  ;;  %v778_v17 = vmul.f32 %v2271_v1, %v2252_v18 }
  0x91   :  { %v651_v31 = vrot.slane %v650_v0, 4  ;;  %v660_v7 = vrot.slane %v659_v5, 4  ;;  %v2304_v35 = vstv %s2240_s3  ;;  %v779_v48 = vadd.f32 %v777_v21, %v775_v15  ;;  %s2595_s3 = sld [smem:[#allocation8 + $0x2a]] }
  0x92   :  { %v634_v52 = vadd.f32 %v633_v41, %v632_v16  ;;  %v643_v3 = vadd.f32 %v642_v46, %v641_v62  ;;  %v669_v59 = vrot.slane %v668_v38, 4  ;;  %v781_v49 = vmul.f32 %v2310_v33, %v2255_v11  ;;  %v2326_v16 = vld [vmem:[#allocation2 + $0x28] sm:$0xff] }
  0x93   :  { %v652_v8 = vadd.f32 %v651_v31, %v650_v0  ;;  %v661_v44 = vadd.f32 %v660_v7, %v659_v5  ;;  %v2315_v34 = vstv %s2246_s12  ;;  %v2320_v9 = vstv %s2260_s13  ;;  %v2332_v5 = vld [vmem:[#allocation2 + $0x30] sm:$0xff]  ;;  %s2603_s12 = sld [smem:[#allocation8 + $0x2e]] }
  0x94   :  { %v635_v54 = vrot.slane %v634_v52, 2  ;;  %v644_v12 = vrot.slane %v643_v3, 2  ;;  %v670_v26 = vadd.f32 %v669_v59, %v668_v38  ;;  %v780_v2 = vadd.f32 %v778_v17, %v776_v20  ;;  %s2615_s13 = sld [smem:[#allocation8 + $0x23]] }
  0x95   :  { %v653_v51 = vrot.slane %v652_v8, 2  ;;  %v662_v47 = vrot.slane %v661_v44, 2  ;;  %v782_v62 = vmul.f32 %v2326_v16, %v2255_v11  ;;  %v783_v0 = vadd.f32 %v781_v49, %v779_v48  ;;  %v2365_v49 = vld [vmem:[#allocation2 + $0x38] sm:$0xff] }
  0x96   :  { %v636_v32 = vadd.f32 %v635_v54, %v634_v52  ;;  %v645_v40 = vadd.f32 %v644_v12, %v643_v3  ;;  %v671_v63 = vrot.slane %v670_v26, 2  ;;  %v785_v15 = vmul.f32 %v2332_v5, %v2258_v42 }
  0x97   :  { %v654_v30 = vadd.f32 %v653_v51, %v652_v8  ;;  %v663_v4 = vadd.f32 %v662_v47, %v661_v44  ;;  %v2337_v46 = vstv %s2274_s16  ;;  %v2340_v38 = vstv %s2280_s17  ;;  %s2623_s16 = sld [smem:[#allocation8 + $0x27]] }
  0x98   :  { %v637_v21 = vrot.slane %v636_v32, 1  ;;  %v646_v41 = vrot.slane %v645_v40, 1  ;;  %v672_v7 = vadd.f32 %v671_v63, %v670_v26  ;;  %v2345_v20 = vstv %s2284_s28  ;;  %s2629_s17 = sld [smem:[#allocation8 + $0x2b]] }
  0x99   :  { %v655_v31 = vrot.slane %v654_v30, 1  ;;  %v2348_v17 = vstv %s2286_s29  ;;  %v664_v59 = vrot.slane %v663_v4, 1  ;;  %v2357_v8 = vstv %s2295_s27  ;;  %s2635_s28 = sld [smem:[#allocation8 + $0x2f]] }
  0x9a   :  { %v2352_v52 = vadd.f32 %v637_v21, %v636_v32  ;;  %v2354_v3 = vadd.f32 %v646_v41, %v645_v40  ;;  %v784_v48 = vadd.f32 %v782_v62, %v780_v2  ;;  %v786_v54 = vmul.f32 %v2365_v49, %v2258_v42  ;;  %s2659_s29 = sld [smem:[#allocation8 + $0x30]] }
  0x9b   :  { %v2361_v44 = vadd.f32 %v655_v31, %v654_v30  ;;  %v787_v12 = vadd.f32 %v785_v15, %v783_v0  ;;  %v789_v2 = vmul.f32 %v2293_v6, %v1782_v13  ;;  %v673_v32 = vrot.slane %v672_v7, 1  ;;  %s2663_s27 = sld [smem:[#allocation8 + $0x34]] }
  0x9c   :  { %2897 = vst [vmem:[#allocation39_spill] sm:$0xff] %v2352_v52  ;;  %v677_v26 = vmul.f32 %v2249_v50, %v2352_v52  ;;  %v680_v51 = vmul.f32 %v2252_v18, %v2354_v3  ;;  %v697_v47 = vmul.f32 %v2304_v35, %v2352_v52  ;;  %v700_v40 = vmul.f32 %v2315_v34, %v2354_v3 }
  0x9d   :  { %2898 = vst [vmem:[#allocation40_spill] sm:$0xff] %v2354_v3  ;;  %v2382_v50 = vstv %s2297_s5  ;;  %v2385_v18 = vstv %s2306_s6  ;;  %v2387_v63 = vadd.f32 %v664_v59, %v663_v4  ;;  %v684_v30 = vmul.f32 %v2255_v11, %v2361_v44  ;;  %s2678_s5 = sld [smem:[#allocation8 + $0x31]] }
  0x9e   :  { %2899 = vst [vmem:[#allocation41_spill] sm:$0xff] %v2361_v44  ;;  %v681_v62 = vadd.f32 %v680_v51, %v677_v26  ;;  %v2392_v0 = vstv %s2308_s30  ;;  %v701_v15 = vadd.f32 %v700_v40, %v697_v47  ;;  %v704_v21 = vmul.f32 %v2320_v9, %v2361_v44  ;;  %s2685_s6 = sld [smem:[#allocation8 + $0x35]] }
  0x9f   :  { %2900 = vst [vmem:[#allocation42_spill] sm:$0xff] %v2387_v63  ;;  %v788_v41 = vadd.f32 %v786_v54, %v784_v48  ;;  %v790_v31 = vmul.f32 %v2293_v6, %v1784_v14  ;;  %v2399_v61 = vstv %s2317_s8  ;;  %v2402_v4 = vstv %s2322_s2  ;;  %s2693_s30 = sld [smem:[#allocation8 + $0x38]] }
  0xa0   :  { %v2405_v59 = vstv %s2324_s9  ;;  %v791_v11 = vadd.f32 %v789_v2, %v787_v12  ;;  %v2407_v26 = vadd.f32 %v673_v32, %v672_v7  ;;  %v2410_v51 = vstv %s2330_s11  ;;  %s2697_s8 = sld [smem:[#allocation8 + $0x32]] }
  0xa1   :  { %v2413_v47 = vstv %s2342_s14  ;;  %v2416_v48 = vstv %s2350_s15  ;;  %v685_v54 = vadd.f32 %v684_v30, %v681_v62  ;;  %v688_v40 = vmul.f32 %v2258_v42, %v2387_v63  ;;  %v2902_v62 = vld [vmem:[#allocation24_spill] sm:$0xff]  ;;  %s2702_s2 = sld [smem:[#allocation8 + $0x39]] }
  0xa2   :  { %v717_v36 = vmul.f32 %v2345_v20, %v2352_v52  ;;  %v720_v39 = vmul.f32 %v2348_v17, %v2354_v3  ;;  %v705_v28 = vadd.f32 %v704_v21, %v701_v15  ;;  %v708_v7 = vmul.f32 %v2337_v46, %v2387_v63  ;;  %s2710_s9 = sld [smem:[#allocation8 + $0x3c]] }
  0xa3   :  { %v2427_v12 = vstv %s2359_s19  ;;  %v792_v2 = vadd.f32 %v790_v31, %v788_v41  ;;  %v2430_v32 = vstv %s2363_s18  ;;  %v2433_v23 = vstv %s2375_s20  ;;  %s2714_s11 = sld [smem:[#allocation8 + $0x36]] }
  0xa4   :  { %2901 = vst [vmem:[#allocation43_spill] sm:$0xff] %v2433_v23  ;;  %v2436_v30 = vmul.f32 %v791_v11, %v2902_v62  ;;  %v797_v42 = vmul.f32 %v2262_v53, %v2304_v35  ;;  %v692_v56 = vmul.f32 %v2293_v6, %v2407_v26  ;;  %v737_v15 = vmul.f32 %v2392_v0, %v2352_v52  ;;  %s2717_s14 = sld [smem:[#allocation8 + $0x3d]] }
  0xa5   :  { %v740_v21 = vmul.f32 %v2399_v61, %v2354_v3  ;;  %v798_v41 = vmul.f32 %v2265_v29, %v2304_v35  ;;  %v689_v31 = vadd.f32 %v688_v40, %v685_v54  ;;  %v721_v43 = vadd.f32 %v720_v39, %v717_v36  ;;  %s2722_s15 = sld [smem:[#allocation8 + $0x3a]] }
  0xa6   :  { %v724_v11 = vmul.f32 %v2357_v8, %v2361_v44  ;;  %v799_v19 = vmul.f32 %v2268_v24, %v2315_v34  ;;  %v709_v55 = vadd.f32 %v708_v7, %v705_v28  ;;  %v712_v6 = vmul.f32 %v2340_v38, %v2407_v26  ;;  %s2733_s19 = sld [smem:[#allocation8 + $0x3e]] }
  0xa7   :  { %v728_v52 = vmul.f32 %v2382_v50, %v2387_v63  ;;  %v2457_v3 = vmul.f32 %v792_v2, %v2903_v22  ;;  %v800_v35 = vmul.f32 %v2271_v1, %v2315_v34  ;;  %v803_v39 = vmul.f32 %v2310_v33, %v2320_v9  ;;  %s2747_s18 = sld [smem:[#allocation8 + $0x33]] }
  0xa8   :  { %v801_v36 = vadd.f32 %v799_v19, %v797_v42  ;;  %v804_v54 = vmul.f32 %v2326_v16, %v2320_v9  ;;  %v732_v28 = vmul.f32 %v2385_v18, %v2407_v26  ;;  %v741_v40 = vadd.f32 %v740_v21, %v737_v15  ;;  %s2755_s20 = sld [smem:[#allocation8 + $0x37]] }
  0xa9   :  { %v744_v7 = vmul.f32 %v2402_v4, %v2361_v44  ;;  %v748_v2 = vmul.f32 %v2405_v59, %v2387_v63  ;;  %v2471_v27 = vadd.f32 %v692_v56, %v689_v31  ;;  %v725_v34 = vadd.f32 %v724_v11, %v721_v43 }
  0xaa   :  { %v752_v19 = vmul.f32 %v2410_v51, %v2407_v26  ;;  %v802_v42 = vadd.f32 %v800_v35, %v798_v41  ;;  %v805_v23 = vadd.f32 %v803_v39, %v801_v36  ;;  %v807_v9 = vmul.f32 %v2332_v5, %v2337_v46 }
  0xab   :  { %v808_v15 = vmul.f32 %v2365_v49, %v2337_v46  ;;  %v819_v21 = vmul.f32 %v2262_v53, %v2345_v20  ;;  %v2481_v44 = vadd.f32 %v712_v6, %v709_v55  ;;  %v820_v43 = vmul.f32 %v2265_v29, %v2345_v20 }
  0xac   :  { %v806_v63 = vadd.f32 %v804_v54, %v802_v42  ;;  %v821_v56 = vmul.f32 %v2268_v24, %v2348_v17  ;;  %v745_v41 = vadd.f32 %v744_v7, %v741_v40  ;;  %v822_v31 = vmul.f32 %v2271_v1, %v2348_v17 }
  0xad   :  { %v825_v11 = vmul.f32 %v2310_v33, %v2357_v8  ;;  %v826_v46 = vmul.f32 %v2326_v16, %v2357_v8  ;;  %v811_v55 = vmul.f32 %v2340_v38, %v1782_v13  ;;  %v812_v6 = vmul.f32 %v2340_v38, %v1784_v14 }
  0xae   :  { %v823_v20 = vadd.f32 %v821_v56, %v819_v21  ;;  %v829_v35 = vmul.f32 %v2332_v5, %v2382_v50  ;;  %v809_v36 = vadd.f32 %v807_v9, %v805_v23  ;;  %v810_v39 = vadd.f32 %v808_v15, %v806_v63 }
  0xaf   :  { %v824_v54 = vadd.f32 %v822_v31, %v820_v43  ;;  %v830_v17 = vmul.f32 %v2365_v49, %v2382_v50  ;;  %v833_v8 = vmul.f32 %v2385_v18, %v1782_v13  ;;  %v834_v7 = vmul.f32 %v2385_v18, %v1784_v14 }
  0xb0   :  { %v827_v40 = vadd.f32 %v825_v11, %v823_v20  ;;  %v841_v38 = vmul.f32 %v2262_v53, %v2392_v0  ;;  %v842_v21 = vmul.f32 %v2265_v29, %v2392_v0  ;;  %v843_v23 = vmul.f32 %v2268_v24, %v2399_v61  ;;  %v2525_v20 = vld [vmem:[#allocation2 + $0x40] sm:$0xff] }
  0xb1   :  { %v828_v42 = vadd.f32 %v826_v46, %v824_v54  ;;  %v844_v50 = vmul.f32 %v2271_v1, %v2399_v61  ;;  %v729_v63 = vadd.f32 %v728_v52, %v725_v34  ;;  %v749_v9 = vadd.f32 %v748_v2, %v745_v41 }
  0xb2   :  { %v831_v15 = vadd.f32 %v829_v35, %v827_v40  ;;  %v847_v13 = vmul.f32 %v2310_v33, %v2402_v4  ;;  %v845_v18 = vadd.f32 %v843_v23, %v841_v38  ;;  %v848_v56 = vmul.f32 %v2326_v16, %v2402_v4 }
  0xb3   :  { %v832_v14 = vadd.f32 %v830_v17, %v828_v42  ;;  %v846_v43 = vadd.f32 %v844_v50, %v842_v21  ;;  %v813_v31 = vadd.f32 %v811_v55, %v809_v36  ;;  %v814_v0 = vadd.f32 %v812_v6, %v810_v39  ;;  %v2529_v55 = vld [vmem:[#allocation2 + $0x48] sm:$0xff] }
  0xb4   :  { %v851_v11 = vmul.f32 %v2332_v5, %v2405_v59  ;;  %v852_v61 = vmul.f32 %v2365_v49, %v2405_v59  ;;  %v835_v52 = vadd.f32 %v833_v8, %v831_v15  ;;  %v849_v34 = vadd.f32 %v847_v13, %v845_v18  ;;  %v2904_v8 = vld [vmem:[#allocation26_spill] sm:$0xff]  ;;  %v2906_v13 = vld [vmem:[#allocation31_spill] sm:$0xff] }
  0xb5   :  { %v836_v2 = vadd.f32 %v834_v7, %v832_v14  ;;  %v850_v41 = vadd.f32 %v848_v56, %v846_v43  ;;  %v733_v46 = vadd.f32 %v732_v28, %v729_v63  ;;  %v855_v4 = vmul.f32 %v2525_v20, %v2410_v51 }
  0xb6   :  { %v856_v6 = vmul.f32 %v2529_v55, %v2410_v51  ;;  %v863_v59 = vmul.f32 %v2262_v53, %v2413_v47  ;;  %v853_v35 = vadd.f32 %v851_v11, %v849_v34  ;;  %v864_v28 = vmul.f32 %v2265_v29, %v2413_v47 }
  0xb7   :  { %v854_v36 = vadd.f32 %v852_v61, %v850_v41  ;;  %v865_v39 = vmul.f32 %v2268_v24, %v2416_v48  ;;  %v753_v54 = vadd.f32 %v752_v19, %v749_v9  ;;  %v815_v17 = vmul.f32 %v813_v31, %v2902_v62  ;;  %v2905_v19 = vld [vmem:[#allocation27_spill] sm:$0xff] }
  0xb8   :  { %v816_v51 = vmul.f32 %v814_v0, %v2903_v22  ;;  %v866_v40 = vmul.f32 %v2271_v1, %v2416_v48  ;;  %v694_v7 = vadd.f32 %v2471_v27, %v2904_v8  ;;  %v795_v38 = vadd.f32 %v2436_v30, %v2111_v25  ;;  %v2909_v8 = vld [vmem:[#allocation35_spill] sm:$0xff] }
  0xb9   :  { %v837_v42 = vmul.f32 %v835_v52, %v2902_v62  ;;  %v838_v21 = vmul.f32 %v836_v2, %v2903_v22  ;;  %v714_v23 = vadd.f32 %v2481_v44, %v2905_v19  ;;  %v796_v50 = vadd.f32 %v2457_v3, %v2211_v37  ;;  %v1365_v2 = vld [vmem:[#allocation6 + $0x1] sm:$0x1] }
  0xba   :  { %v857_v63 = vadd.f32 %v855_v4, %v853_v35  ;;  %v858_v9 = vadd.f32 %v856_v6, %v854_v36  ;;  %v867_v27 = vadd.f32 %v865_v39, %v863_v59  ;;  %v868_v15 = vadd.f32 %v866_v40, %v864_v28  ;;  %v1366_v4 = vld [vmem:[#allocation6 + $0x2] sm:$0x1]  ;;  %v1367_v59 = vld [vmem:[#allocation6 + $0x3] sm:$0x1] }
  0xbb   :  { %v869_v25 = vmul.f32 %v2310_v33, %v2427_v12  ;;  %v870_v30 = vmul.f32 %v2326_v16, %v2427_v12  ;;  %v734_v14 = vadd.f32 %v733_v46, %v2906_v13  ;;  %v754_v44 = vadd.f32 %v753_v54, %v2095_v57 }
  0xbc   :  { %v817_v37 = vadd.f32 %v815_v17, %v2215_v60  ;;  %v818_v3 = vadd.f32 %v816_v51, %v2218_v58  ;;  %v2576_v18 = vadd.f32 %v837_v42, %v2221_v10  ;;  %v2579_v43 = vadd.f32 %v838_v21, %v2228_v45  ;;  %v2907_v58 = vld [vmem:[#allocation43_spill] sm:$0xff]  ;;  %v1364_v10 = vld [vmem:[#allocation6] sm:$0x1] }
  0xbd   :  { %v873_v56 = vmul.f32 %v2332_v5, %v2430_v32  ;;  %v874_v31 = vmul.f32 %v2365_v49, %v2430_v32  ;;  %v859_v57 = vmul.f32 %v857_v63, %v2902_v62  ;;  %v860_v60 = vmul.f32 %v858_v9, %v2903_v22 }
  0xbe   :  { %v2591_v0 = vmul.f32 %v2525_v20, %v2907_v58  ;;  %v2593_v11 = vadd.f32 %v1364_v10, %v694_v7  ;;  %v871_v45 = vadd.f32 %v869_v25, %v867_v27  ;;  %v872_v61 = vadd.f32 %v870_v30, %v868_v15 }
  0xbf   :  { %v2599_v52 = vmul.f32 %v2529_v55, %v2907_v58  ;;  %v2601_v34 = vadd.f32 %v1365_v2, %v714_v23  ;;  %v2606_v41 = vadd.f32 %v2262_v53, %v795_v38  ;;  %v2609_v46 = vadd.f32 %v2265_v29, %v796_v50  ;;  %v2908_v29 = vld [vmem:[#allocation34_spill] sm:$0xff] }
  0xc0   :  { %v2611_v6 = vadd.f32 %v1366_v4, %v734_v14  ;;  %v2613_v35 = vadd.f32 %v1367_v59, %v754_v44  ;;  %v2618_v36 = vadd.f32 %v2268_v24, %v817_v37  ;;  %v901_v28 = vstv %s2521_s21  ;;  %s2759_s21 = sld [smem:[#allocation8 + $0x3b]] }
  0xc1   :  { %v904_v53 = vstv %s2523_s22  ;;  %v908_v39 = vstv %s2535_s23  ;;  %v861_v54 = vadd.f32 %v859_v57, %v2908_v29  ;;  %v902_v17 = vmul.f32 %v901_v28, %v2593_v11  ;;  %s2763_s22 = sld [smem:[#allocation8 + $0x3f]] }
  0xc2   :  { %v905_v51 = vmul.f32 %v904_v53, %v2601_v34  ;;  %v909_v40 = vmul.f32 %v908_v39, %v2611_v6  ;;  %v862_v24 = vadd.f32 %v860_v60, %v2909_v8  ;;  %v912_v7 = vstv %s2541_s24  ;;  %s2788_s23 = sld [smem:[#allocation9 + $0x46]] }
  0xc3   :  { %v916_v38 = vstv %s2547_s25  ;;  %v919_v42 = vstv %s2555_s26  ;;  %v875_v21 = vadd.f32 %v873_v56, %v871_v45  ;;  %v913_v23 = vmul.f32 %v912_v7, %v2613_v35  ;;  %s2790_s24 = sld [smem:[#allocation9 + $0x47]] }
  0xc4   :  { %v906_v19 = vadd.f32 %v905_v51, %v902_v17  ;;  %v917_v50 = vmul.f32 %v916_v38, %v2593_v11  ;;  %v2640_v63 = vadd.f32 %v2271_v1, %v818_v3  ;;  %v920_v9 = vmul.f32 %v919_v42, %v2601_v34  ;;  %s2812_s25 = sld [smem:[#allocation9 + $0x48]] }
  0xc5   :  { %v923_v27 = vstv %s2561_s0  ;;  %v927_v15 = vstv %s2567_s7  ;;  %v876_v25 = vadd.f32 %v874_v31, %v872_v61  ;;  %v931_v37 = vstv %s2573_s1  ;;  %s2814_s26 = sld [smem:[#allocation9 + $0x49]] }
  0xc6   :  { %v910_v30 = vadd.f32 %v909_v40, %v906_v19  ;;  %v924_v13 = vmul.f32 %v923_v27, %v2611_v6  ;;  %v928_v14 = vmul.f32 %v927_v15, %v2613_v35  ;;  %v921_v44 = vadd.f32 %v920_v9, %v917_v50  ;;  %s2826_s0 = sld [smem:[#allocation9 + $0x4a]] }
  0xc7   :  { %v934_v56 = vstv %s2585_s10  ;;  %v938_v57 = vstv %s2595_s3  ;;  %v932_v3 = vmul.f32 %v931_v37, %v2593_v11  ;;  %v942_v31 = vstv %s2603_s12  ;;  %s2828_s7 = sld [smem:[#allocation9 + $0x5f]] }
  0xc8   :  { %v914_v1 = vadd.f32 %v913_v23, %v910_v30  ;;  %v935_v60 = vmul.f32 %v934_v56, %v2601_v34  ;;  %v939_v10 = vmul.f32 %v938_v57, %v2611_v6  ;;  %v925_v45 = vadd.f32 %v924_v13, %v921_v44  ;;  %v2910_v13 = vld [vmem:[#allocation37_spill] sm:$0xff]  ;;  %v2912_v56 = vld [vmem:[#allocation19_spill] sm:$0xff]  ;;  %s2830_s1 = sld [smem:[#allocation9 + $0x60]] }
  0xc9   :  { %v946_v61 = vstv %s2615_s13  ;;  %v949_v2 = vstv %s2623_s16  ;;  %v943_v59 = vmul.f32 %v942_v31, %v2613_v35  ;;  %v953_v29 = vstv %s2629_s17  ;;  %s2833_s10 = sld [smem:[#allocation9 + $0x61]]  ;;  %s1482_s13 = smov [#allocation11]  }
  0xca   :  { %v936_v4 = vadd.f32 %v935_v60, %v932_v3  ;;  %v947_v28 = vmul.f32 %v946_v61, %v2593_v11  ;;  %v950_v53 = vmul.f32 %v949_v2, %v2601_v34  ;;  %v929_v39 = vadd.f32 %v928_v14, %v925_v45  ;;  %v2911_v14 = vld [vmem:[#allocation36_spill] sm:$0xff]  ;;  %s2835_s3 = sld [smem:[#allocation9 + $0x62]]  ;;  %s1208_s16 = sshll.u32 %s1482_s13, 4  ;;  %s1209_s16 = int_to_ptr.vmem [resolvable:$true] %s1208_s16 }
  0xcb   :  { %v957_v17 = vstv %s2635_s28  ;;  %v961_v51 = vperm.slane %v914_v1, 0  ;;  %v954_v7 = vmul.f32 %v953_v29, %v2611_v6  ;;  %v2669_v42 = vadd.f32 %v2310_v33, %v2576_v18  ;;  %s2838_s12 = sld [smem:[#allocation9 + $0x63]] }
  0xcc   :  { %v940_v40 = vadd.f32 %v939_v10, %v936_v4  ;;  %v951_v8 = vadd.f32 %v950_v53, %v947_v28  ;;  %v958_v38 = vmul.f32 %v957_v17, %v2613_v35  ;;  %v966_v50 = vperm.slane %v929_v39, 0  ;;  %v2916_v28 = vld [vmem:[#allocation28_spill] sm:$0xff] }
  0xcd   :  { %v963_v19 = vmul.f32 %v961_v51, %v2606_v41  ;;  %v964_v23 = vmul.f32 %v961_v51, %v2609_v46  ;;  %v879_v9 = vadd.f32 %v2591_v0, %v875_v21  ;;  %v2676_v27 = vadd.f32 %v2326_v16, %v2579_v43 }
  0xce   :  { %v944_v15 = vadd.f32 %v943_v59, %v940_v40  ;;  %v955_v30 = vadd.f32 %v954_v7, %v951_v8  ;;  %v561_v44 = vadd.f32 %v2911_v14, %v2910_v13  ;;  %v880_v33 = vadd.f32 %v2599_v52, %v876_v25  ;;  %v2913_v52 = vld [vmem:[#allocation38_spill] sm:$0xff]  ;;  %v2915_v59 = vld [vmem:[#allocation17_spill] sm:$0xff] }
  0xcf   :  { %v968_v18 = vmul.f32 %v966_v50, %v2618_v36  ;;  %v969_v37 = vmul.f32 %v966_v50, %v2640_v63  ;;  %v2688_v0 = vadd.f32 %v2332_v5, %v861_v54  ;;  %v2691_v16 = vadd.f32 %v2365_v49, %v862_v24  ;;  %v2914_v24 = vld [vmem:[#allocation20_spill] sm:$0xff] }
  0xd0   :  { %v959_v43 = vadd.f32 %v958_v38, %v955_v30  ;;  %v973_v21 = vperm.slane %v944_v15, 0  ;;  %v562_v25 = vmul.f32 %v2913_v52, %v2912_v56  ;;  %v881_v3 = vmul.f32 %v879_v9, %v2902_v62  ;;  %v2917_v9 = vld [vmem:[#allocation18_spill] sm:$0xff]  ;;  %v2918_v15 = vld [vmem:[#allocation29_spill] sm:$0xff] }
  0xd1   :  { %v970_v57 = vadd.f32 %v968_v18, %v963_v19  ;;  %v971_v1 = vadd.f32 %v969_v37, %v964_v23  ;;  %v563_v60 = vmul.f32 %v561_v44, %v2914_v24  ;;  %v882_v10 = vmul.f32 %v880_v33, %v2903_v22  ;;  %v2920_v56 = vld [vmem:[#allocation30_spill] sm:$0xff] }
  0xd2   :  { %v975_v5 = vmul.f32 %v973_v21, %v2669_v42  ;;  %v976_v54 = vmul.f32 %v973_v21, %v2676_v27  ;;  %v980_v49 = vperm.slane %v959_v43, 0  ;;  %v1051_v45 = vstv %s2659_s29  ;;  %v2919_v21 = vld [vmem:[#allocation21_spill] sm:$0xff]  ;;  %s1210_s29 = sshll.u32 %s2855_s4, 4  ;;  %s1211_s29 = int_to_ptr.hbm [resolvable:$true] %s1210_s29 }
  0xd3   :  { %v1054_v31 = vstv %s2663_s27  ;;  %v447_v53 = vmul.f32 %v2916_v28, %v2915_v59  ;;  %v883_v39 = vadd.f32 %v881_v3, %v562_v25  ;;  %v1066_v17 = vstv %s2678_s5 }
  0xd4   :  { %v977_v61 = vadd.f32 %v975_v5, %v970_v57  ;;  %v978_v2 = vadd.f32 %v976_v54, %v971_v1  ;;  %v982_v4 = vmul.f32 %v980_v49, %v2688_v0  ;;  %v983_v62 = vmul.f32 %v980_v49, %v2691_v16 }
  0xd5   :  { %v884_v51 = vadd.f32 %v882_v10, %v563_v60  ;;  %v1052_v40 = vmul.f32 %v1051_v45, %v2593_v11  ;;  %v1055_v8 = vmul.f32 %v1054_v31, %v2601_v34  ;;  %v1069_v7 = vstv %s2685_s6 }
  0xd6   :  { %v984_v29 = vadd.f32 %v982_v4, %v977_v61  ;;  %v985_v22 = vadd.f32 %v983_v62, %v978_v2  ;;  %v450_v30 = vmul.f32 %v2918_v15, %v2917_v9  ;;  %v1058_v13 = vstv %s2693_s30 }
  0xd7   :  { %v1067_v14 = vmul.f32 %v1066_v17, %v2593_v11  ;;  %v1081_v44 = vstv %s2697_s8  ;;  %v1070_v37 = vmul.f32 %v1069_v7, %v2601_v34  ;;  %v1073_v43 = vstv %s2702_s2 }
  0xd8   :  { %v986_v38 = vmul.f32 %v984_v29, %v2606_v41  ;;  %v987_v19 = vmul.f32 %v985_v22, %v2609_v46  ;;  %v995_v23 = vmul.f32 %v984_v29, %v2618_v36  ;;  %v996_v50 = vmul.f32 %v985_v22, %v2640_v63 }
  0xd9   :  { %v1004_v33 = vmul.f32 %v984_v29, %v2669_v42  ;;  %v1005_v18 = vmul.f32 %v985_v22, %v2676_v27  ;;  %v454_v52 = vmul.f32 %v2920_v56, %v2919_v21  ;;  %v2742_v25 = vadd.f32 %v2525_v20, %v883_v39 }
  0xda   :  { %v2745_v57 = vadd.f32 %v2529_v55, %v884_v51  ;;  %v988_v1 = vadd.f32 %v987_v19, %v986_v38  ;;  %v997_v3 = vadd.f32 %v996_v50, %v995_v23  ;;  %v1056_v5 = vadd.f32 %v1055_v8, %v1052_v40 }
  0xdb   :  { %v1059_v54 = vmul.f32 %v1058_v13, %v2611_v6  ;;  %v1082_v49 = vmul.f32 %v1081_v44, %v2593_v11  ;;  %v1013_v24 = vmul.f32 %v984_v29, %v2688_v0  ;;  %v1062_v60 = vstv %s2710_s9  ;;  %v2922_v44 = vld [vmem:[#allocation32_spill] sm:$0xff] }
  0xdc   :  { %v1074_v20 = vmul.f32 %v1073_v43, %v2611_v6  ;;  %v1084_v10 = vstv %s2714_s11  ;;  %v1006_v55 = vadd.f32 %v1005_v18, %v1004_v33  ;;  %v1014_v45 = vmul.f32 %v985_v22, %v2691_v16 }
  0xdd   :  { %v1071_v31 = vadd.f32 %v1070_v37, %v1067_v14  ;;  %v1085_v61 = vmul.f32 %v1084_v10, %v2601_v34  ;;  %v451_v2 = vadd.f32 %v450_v30, %v447_v53  ;;  %v989_v4 = vrot.slane %v988_v1, 4 }
  0xde   :  { %v1077_v62 = vstv %s2717_s14  ;;  %v1088_v59 = vstv %s2722_s15  ;;  %v998_v28 = vrot.slane %v997_v3, 4  ;;  %v1060_v39 = vadd.f32 %v1059_v54, %v1056_v5 }
  0xdf   :  { %v1063_v17 = vmul.f32 %v1062_v60, %v2613_v35  ;;  %v1086_v51 = vadd.f32 %v1085_v61, %v1082_v49  ;;  %v1022_v40 = vmul.f32 %v984_v29, %v2742_v25  ;;  %v1023_v8 = vmul.f32 %v985_v22, %v2745_v57  ;;  %v2921_v29 = vld [vmem:[#allocation22_spill] sm:$0xff] }
  0xe0   :  { %v1089_v7 = vmul.f32 %v1088_v59, %v2611_v6  ;;  %v1092_v38 = vstv %s2733_s19  ;;  %v1007_v53 = vrot.slane %v1006_v55, 4  ;;  %v1015_v19 = vadd.f32 %v1014_v45, %v1013_v24  ;;  %v2924_v45 = vld [vmem:[#allocation33_spill] sm:$0xff] }
  0xe1   :  { %v1075_v23 = vadd.f32 %v1074_v20, %v1071_v31  ;;  %v1078_v50 = vmul.f32 %v1077_v62, %v2613_v35  ;;  %v990_v9 = vadd.f32 %v989_v4, %v988_v1  ;;  %v1093_v30 = vmul.f32 %v1092_v38, %v2613_v35  ;;  %v2926_v4 = vld [vmem:[#allocation40_spill] sm:$0xff] }
  0xe2   :  { %v1090_v15 = vadd.f32 %v1089_v7, %v1086_v51  ;;  %v1096_v13 = vstv %s2747_s18  ;;  %v455_v14 = vadd.f32 %v454_v52, %v451_v2  ;;  %v458_v22 = vmul.f32 %v2922_v44, %v2921_v29  ;;  %v2923_v52 = vld [vmem:[#allocation23_spill] sm:$0xff] }
  0xe3   :  { %v999_v33 = vadd.f32 %v998_v28, %v997_v3  ;;  %v1097_v18 = vmul.f32 %v1096_v13, %v2593_v11  ;;  %v1024_v37 = vadd.f32 %v1023_v8, %v1022_v40  ;;  %v1064_v43 = vadd.f32 %v1063_v17, %v1060_v39  ;;  %v2925_v2 = vld [vmem:[#allocation39_spill] sm:$0xff] }
  0xe4   :  { %v1099_v21 = vstv %s2755_s20  ;;  %v1008_v56 = vadd.f32 %v1007_v53, %v1006_v55  ;;  %v1016_v5 = vrot.slane %v1015_v19, 4  ;;  %v1079_v54 = vadd.f32 %v1078_v50, %v1075_v23 }
  0xe5   :  { %v1100_v1 = vmul.f32 %v1099_v21, %v2601_v34  ;;  %v991_v49 = vrot.slane %v990_v9, 2  ;;  %v1094_v24 = vadd.f32 %v1093_v30, %v1090_v15  ;;  %v1103_v60 = vstv %s2759_s21 }
  0xe6   :  { %v1107_v20 = vstv %s2763_s22  ;;  %v459_v10 = vadd.f32 %v458_v22, %v455_v14  ;;  %v462_v31 = vmul.f32 %v2924_v45, %v2923_v52  ;;  %v1000_v61 = vrot.slane %v999_v33, 2 }
  0xe7   :  { %v1101_v3 = vadd.f32 %v1100_v1, %v1097_v18  ;;  %v757_v11 = vmul.f32 %v2413_v47, %v2925_v2  ;;  %v760_v55 = vmul.f32 %v2416_v48, %v2926_v4  ;;  %v1104_v62 = vmul.f32 %v1103_v60, %v2611_v6 }
  0xe8   :  { %v1108_v34 = vmul.f32 %v1107_v20, %v2613_v35  ;;  %v1017_v59 = vadd.f32 %v1016_v5, %v1015_v19  ;;  %v1025_v28 = vrot.slane %v1024_v37, 4  ;;  %v1111_v39 = vperm.slane %v1064_v43, 0 }
  0xe9   :  { %v1116_v17 = vperm.slane %v1079_v54, 0  ;;  %v992_v51 = vadd.f32 %v991_v49, %v990_v9  ;;  %v1009_v40 = vrot.slane %v1008_v56, 2  ;;  %v1105_v8 = vadd.f32 %v1104_v62, %v1101_v3  ;;  %v2927_v9 = vld [vmem:[#allocation41_spill] sm:$0xff] }
  0xea   :  { %v1123_v7 = vperm.slane %v1094_v24, 0  ;;  %v1001_v47 = vadd.f32 %v1000_v61, %v999_v33  ;;  %v1113_v38 = vmul.f32 %v1111_v39, %v2606_v41  ;;  %v1114_v48 = vmul.f32 %v1111_v39, %v2609_v46 }
  0xeb   :  { %v1118_v6 = vmul.f32 %v1116_v17, %v2618_v36  ;;  %v1109_v35 = vadd.f32 %v1108_v34, %v1105_v8  ;;  %v1119_v53 = vmul.f32 %v1116_v17, %v2640_v63  ;;  %v761_v50 = vadd.f32 %v760_v55, %v757_v11 }
  0xec   :  { %v1125_v19 = vmul.f32 %v1123_v7, %v2669_v42  ;;  %v1126_v23 = vmul.f32 %v1123_v7, %v2676_v27  ;;  %v764_v15 = vmul.f32 %v2427_v12, %v2927_v9  ;;  %v1018_v13 = vrot.slane %v1017_v59, 2  ;;  %v2928_v12 = vld [vmem:[#allocation42_spill] sm:$0xff] }
  0xed   :  { %v1120_v30 = vadd.f32 %v1118_v6, %v1113_v38  ;;  %v1026_v14 = vadd.f32 %v1025_v28, %v1024_v37  ;;  %v1121_v29 = vadd.f32 %v1119_v53, %v1114_v48  ;;  %v1130_v44 = vperm.slane %v1109_v35, 0 }
  0xee   :  { %v993_v22 = vrot.slane %v992_v51, 1  ;;  %v1002_v33 = vrot.slane %v1001_v47, 1  ;;  %v1010_v18 = vadd.f32 %v1009_v40, %v1008_v56  ;;  %v2800_v21 = vadd.f32 %v462_v31, %v459_v10 }
  0xef   :  { %v1127_v43 = vadd.f32 %v1125_v19, %v1120_v30  ;;  %v1128_v5 = vadd.f32 %v1126_v23, %v1121_v29  ;;  %v1132_v54 = vmul.f32 %v1130_v44, %v2688_v0  ;;  %v1133_v1 = vmul.f32 %v1130_v44, %v2691_v16 }
  0xf0   :  { %v765_v49 = vadd.f32 %v764_v15, %v761_v50  ;;  %v768_v24 = vmul.f32 %v2430_v32, %v2928_v12  ;;  %v2808_v37 = vmul.f32 %v2907_v58, %v2407_v26  ;;  %v1032_v60 = vstv %s2788_s23 }
  0xf1   :  { %v1027_v20 = vrot.slane %v1026_v14, 2  ;;  %v1035_v52 = vstv %s2790_s24  ;;  %v1134_v56 = vadd.f32 %v1132_v54, %v1127_v43  ;;  %v1135_v10 = vadd.f32 %v1133_v1, %v1128_v5 }
  0xf2   :  { %v994_v45 = vadd.f32 %v993_v22, %v992_v51  ;;  %v1003_v31 = vadd.f32 %v1002_v33, %v1001_v47  ;;  %v1011_v61 = vrot.slane %v1010_v18, 1  ;;  %v1019_v3 = vadd.f32 %v1018_v13, %v1017_v59 }
  0xf3   :  { %v1136_v2 = vmul.f32 %v1134_v56, %v2606_v41  ;;  %v1137_v32 = vmul.f32 %v1135_v10, %v2609_v46  ;;  %v1145_v26 = vmul.f32 %v1134_v56, %v2618_v36  ;;  %v1146_v58 = vmul.f32 %v1135_v10, %v2640_v63 }
  0xf4   :  { %v1154_v11 = vmul.f32 %v1134_v56, %v2669_v42  ;;  %v1155_v4 = vmul.f32 %v1135_v10, %v2676_v27  ;;  %v1163_v55 = vmul.f32 %v1134_v56, %v2688_v0  ;;  %v1164_v62 = vmul.f32 %v1135_v10, %v2691_v16 }
  0xf5   :  { %v1138_v34 = vadd.f32 %v1137_v32, %v1136_v2  ;;  %v1147_v59 = vadd.f32 %v1146_v58, %v1145_v26  ;;  %v1172_v28 = vmul.f32 %v1134_v56, %v2742_v25  ;;  %v1173_v41 = vmul.f32 %v1135_v10, %v2745_v57 }
  0xf6   :  { %v1020_v46 = vrot.slane %v1019_v3, 1  ;;  %v1028_v39 = vadd.f32 %v1027_v20, %v1026_v14  ;;  %v1156_v36 = vadd.f32 %v1155_v4, %v1154_v11  ;;  %v1165_v63 = vadd.f32 %v1164_v62, %v1163_v55 }
  0xf7   :  { %v1012_v42 = vadd.f32 %v1011_v61, %v1010_v18  ;;  %v1139_v17 = vrot.slane %v1138_v34, 4  ;;  %v1148_v27 = vrot.slane %v1147_v59, 4  ;;  %v1174_v51 = vadd.f32 %v1173_v41, %v1172_v28 }
  0xf8   :  { %v1033_v0 = vmul.f32 %v1032_v60, %v994_v45  ;;  %v1036_v16 = vmul.f32 %v1035_v52, %v1003_v31  ;;  %v1157_v40 = vrot.slane %v1156_v36, 4  ;;  %v1166_v25 = vrot.slane %v1165_v63, 4 }
  0xf9   :  { %v1039_v57 = vstv %s2812_s25  ;;  %v1140_v8 = vadd.f32 %v1139_v17, %v1138_v34  ;;  %v1149_v7 = vadd.f32 %v1148_v27, %v1147_v59  ;;  %v1175_v47 = vrot.slane %v1174_v51, 4 }
  0xfa   :  { %v1021_v38 = vadd.f32 %v1020_v46, %v1019_v3  ;;  %v1029_v48 = vrot.slane %v1028_v39, 1  ;;  %v1158_v6 = vadd.f32 %v1157_v40, %v1156_v36  ;;  %v1167_v35 = vadd.f32 %v1166_v25, %v1165_v63  ;;  %v97_v63 = vld [vmem:[#allocation6 + $0x4] sm:$0x1] }
  0xfb   :  { %v1043_v53 = vstv %s2814_s26  ;;  %v1141_v19 = vrot.slane %v1140_v8, 2  ;;  %v1150_v23 = vrot.slane %v1149_v7, 2  ;;  %v1176_v50 = vadd.f32 %v1175_v47, %v1174_v51 }
  0xfc   :  { %v1037_v9 = vadd.f32 %v1036_v16, %v1033_v0  ;;  %v1040_v15 = vmul.f32 %v1039_v57, %v1012_v42  ;;  %v1159_v30 = vrot.slane %v1158_v6, 2  ;;  %v1168_v13 = vrot.slane %v1167_v35, 2 }
  0xfd   :  { %v769_v14 = vadd.f32 %v768_v24, %v765_v49  ;;  %v1142_v29 = vadd.f32 %v1141_v19, %v1140_v8  ;;  %v1151_v44 = vadd.f32 %v1150_v23, %v1149_v7  ;;  %v1177_v22 = vrot.slane %v1176_v50, 2 }
  0xfe   :  { %v1030_v33 = vadd.f32 %v1029_v48, %v1028_v39  ;;  %v1044_v18 = vmul.f32 %v1043_v53, %v1021_v38  ;;  %v1160_v43 = vadd.f32 %v1159_v30, %v1158_v6  ;;  %v1169_v5 = vadd.f32 %v1168_v13, %v1167_v35 }
  0xff   :  { %v1143_v54 = vrot.slane %v1142_v29, 1  ;;  %v1152_v1 = vrot.slane %v1151_v44, 1  ;;  %v1178_v12 = vadd.f32 %v1177_v22, %v1176_v50  ;;  %v1182_v60 = vstv %s2828_s7 }
 0x100   :  { %v1041_v20 = vadd.f32 %v1040_v15, %v1037_v9  ;;  %v1161_v52 = vrot.slane %v1160_v43, 1  ;;  %v1170_v56 = vrot.slane %v1169_v5, 1  ;;  %v1185_v10 = vstv %s2830_s1 }
 0x101   :  { %v1144_v49 = vadd.f32 %v1143_v54, %v1142_v29  ;;  %v1153_v24 = vadd.f32 %v1152_v1, %v1151_v44  ;;  %v1179_v45 = vrot.slane %v1178_v12, 1  ;;  %v1189_v31 = vstv %s2833_s10 }
 0x102   :  { %v1047_v61 = vstv %s2826_s0  ;;  %v1162_v3 = vadd.f32 %v1161_v52, %v1160_v43  ;;  %v1171_v2 = vadd.f32 %v1170_v56, %v1169_v5  ;;  %v1193_v32 = vstv %s2835_s3 }
 0x103   :  { %v773_v26 = vadd.f32 %v2808_v37, %v769_v14  ;;  %v1180_v58 = vadd.f32 %v1179_v45, %v1178_v12  ;;  %v1183_v11 = vmul.f32 %v1182_v60, %v1144_v49  ;;  %v1186_v4 = vmul.f32 %v1185_v10, %v1153_v24 }
 0x104   :  { %v1190_v55 = vmul.f32 %v1189_v31, %v1162_v3  ;;  %v1197_v62 = vstv %s2838_s12  ;;  %v1045_v34 = vadd.f32 %v1044_v18, %v1041_v20  ;;  %v1048_v59 = vmul.f32 %v1047_v61, %v1030_v33 }
 0x105   :  { %v1187_v28 = vadd.f32 %v1186_v4, %v1183_v11  ;;  %v1194_v41 = vmul.f32 %v1193_v32, %v1171_v2  ;;  %v774_v46 = vadd.f32 %v773_v26, %v2800_v21  ;;  %v1198_v36 = vmul.f32 %v1197_v62, %v1180_v58 }
 0x106   :  { %v1049_v42 = vadd.f32 %v1048_v59, %v1045_v34 }
 0x107   :  { %v1191_v39 = vadd.f32 %v1190_v55, %v1187_v28  ;;  %v899_v27 = vadd.f32 %v774_v46, %v97_v63 }
 0x109   :  { %v1195_v17 = vadd.f32 %v1194_v41, %v1191_v39 }
 0x10b   :  { %v1199_v51 = vadd.f32 %v1198_v36, %v1195_v17 }
 0x10d   :  { %v1200_v37 = vadd.f32 %v1199_v51, %v1049_v42 }
 0x10f   :  { %v1201_v0 = vadd.f32 %v1200_v37, %v899_v27 }
 0x111   :  { %1202 = vst [vmem:[#allocation11] sm:$0x1] %v1201_v0 }
 0x112   :  { %1213 = dma.vmem_to_hbm [thread:$0]  %s1209_s16, 16, %s1211_s29, [#allocation4]  }
 0x113   :  { %1472 = dma.done.wait [#allocation4], 16  }
 0x114   :  { %1473 = vsyncadd [#allocation4], 4294967280 }
 0x115   :  { %1218 = vsyncpa [#allocation3], 1 }
 0x116   :  { %1219 = vsyncpa [#allocation7], 1 }
 0x117   :  { %1220 = vsyncpa [#allocation4], 1 }
 0x118   :  { %1221 = vsyncpa [#allocation5], 1 }
 0x119   :  { %1222 = vsyncpa [#allocation10], 1 }

</bundles_post_ra>
